<compile_context>
chip_gen: v6e
topology: v6e:2x2x1
jax: 0.10.0
libtpu: 0.0.40
codegen_flags: <defaults>
</compile_context>

<pallas_src>
import functools
import numpy as np
import jax
import jax.numpy as jnp
from jax.experimental import pallas as pl
from jax.experimental.pallas import tpu as pltpu

# ------------------------- module hyper-parameters -------------------------
D_VALUE = 32
D_QUERY = 32
R = 4
QUERY_HEADS = 2              # unused by forward(), kept for parity
N_EXPERTS = 128
NUM_CORES = 4
TOPK = 8
VEF = 4                      # virtual_expansion_factor (perfect square)
E = 2                        # int(sqrt(VEF))
NUM_LAYERS = 1

MID = D_QUERY // 2           # 16
DK = D_QUERY // (2 * R)      # 4
DVPC = D_VALUE // NUM_CORES  # 8
MAX_BT = 256                 # token-tile cap (keeps live intermediates well
                             # inside the default scoped-VMEM limit)

# layout ("token-major"): flattened token axis (bs = b*seq) on sublanes,
# feature / expert axis on lanes:
#   q_all    : (BS, 2*R*E*DK)                row-features | col-features
#   w_big    : (2*R*E*DK, 2*R*E*N_EXPERTS)   block-diagonal key matrices
#   pm_stack : (VEF*N_EXPERTS, D_VALUE)      projector-folded memories (bf16)
#   out      : (BS, D_VALUE)


# ------------------------------ Pallas kernel ------------------------------
def _topm_mask(x, m):
    """Binary mask (1.0/0.0) of the top-m entries along the last axis.

    Exactly m ones per row, first index wins on ties (matches stable topk)."""
    n = x.shape[-1]
    iota = jax.lax.broadcasted_iota(jnp.int32, x.shape, len(x.shape) - 1)
    cur = x
    mask = jnp.zeros_like(x)
    for _ in range(m):
        mx = jnp.max(cur, axis=-1, keepdims=True)
        pos = jnp.min(jnp.where(cur == mx, iota, n), axis=-1, keepdims=True)
        hot = (iota == pos).astype(x.dtype)
        mask = mask + hot
        cur = jnp.where(hot > 0, -jnp.inf, cur)
    return mask


def _usm_kernel(tvec, uvec, dc, q_ref, w_ref, pm_ref, out_ref):
    # tvec, uvec, dc are tuples of python floats (SVD-derived T / U rows and
    # diag(C) = sum_i diag(C_i)), closed over at trace time.
    bt = q_ref.shape[0]
    n = N_EXPERTS

    # ---- step 1: fused key scoring, one (BT,64)x(64,2048) MXU matmul ------
    s_flat = jnp.dot(q_ref[...], w_ref[...], preferred_element_type=jnp.float32)

    def chunk(part, ri, ei):               # part 0 -> row scores, 1 -> col
        base = part * (R * E * n) + (ri * E + ei) * n
        return s_flat[:, base:base + n]    # (BT, N), lane-aligned static slice

    s_row = [[chunk(0, ri, ei) for ei in range(E)] for ri in range(R)]
    s_col = [[chunk(1, ri, ei) for ei in range(E)] for ri in range(R)]

    # ---- step 2: row/col scores + ONE batched top-m over (4*BT, N) --------
    sc_list = []
    for ei in range(E):                    # row scores (contract r with U)
        sc = s_row[0][ei] * uvec[0]
        for ri in range(1, R):
            sc = sc + s_row[ri][ei] * uvec[ri]
        sc_list.append(sc)
    for ei in range(E):                    # col scores (contract r with T)
        sc = s_col[0][ei] * tvec[0]
        for ri in range(1, R):
            sc = sc + s_col[ri][ei] * tvec[ri]
        sc_list.append(sc)
    sc_stack = jnp.concatenate(sc_list, axis=0)            # (4*BT, N)
    m_stack = _topm_mask(sc_stack, TOPK)
    mask_row = [m_stack[ei * bt:(ei + 1) * bt] for ei in range(E)]
    mask_col = [m_stack[(E + ei) * bt:(E + ei + 1) * bt] for ei in range(E)]

    # masked S; the raw s_row/s_col slices are dead after this point
    ms_row = [[s_row[ri][ei] * mask_row[ei] for ei in range(E)] for ri in range(R)]
    ms_col = [[s_col[ri][ei] * mask_col[ei] for ei in range(E)] for ri in range(R)]

    # ---- step 3: tucker grid for all VEF (ei,ej) combos, sublane-stacked --
    g_list = []
    for ei in range(E):
        for ej in range(E):
            g = dc[0] * ms_row[0][ei] * ms_col[0][ej]
            for ri in range(1, R):
                g = g + dc[ri] * ms_row[ri][ei] * ms_col[ri][ej]
            g_list.append(g)
    g_stack = jnp.concatenate(g_list, axis=0)               # (VEF*BT, N)

    # ---- step 4: softmax + batched top-m, single fused memory read --------
    gmax = jnp.max(g_stack, axis=-1, keepdims=True)
    ex = jnp.exp(g_stack - gmax)
    inv = pl.reciprocal(jnp.sum(ex, axis=-1, keepdims=True), approx=True)
    sm = ex * inv
    # top-m of softmax == top-m of g (monotone); keep only those probs
    w_stack = sm * _topm_mask(g_stack, TOPK)                # (VEF*BT, N)

    # lane-concat the VEF weight blocks -> one K=512 matmul (bf16 operands,
    # f32 accumulation) that directly yields the output tile.
    w_all = jnp.concatenate([w_stack[p * bt:(p + 1) * bt] for p in range(VEF)],
                            axis=-1)                        # (BT, VEF*N)
    acc = jnp.dot(w_all.astype(pm_ref.dtype), pm_ref[...],
                  preferred_element_type=jnp.float32)       # (BT, D_VALUE)
    out_ref[...] = acc.astype(out_ref.dtype)


# ------------------------------ wrapper glue -------------------------------
def _pick_bt(bs):
    """Largest tile (multiple of 8, <= MAX_BT) that keeps >= 2 grid steps."""
    for cand in (256, 128, 64, 32, 16, 8):
        if cand <= MAX_BT and bs % cand == 0 and bs // cand >= 2:
            return cand
    return 8


def ultra_sparse_memory_mlp(Q, params):
    """Q: (b, seq_len, E, D_QUERY) f32  ->  out: (b*seq_len, D_VALUE) f32."""
    b, seq, ef, dq = Q.shape
    mid = dq // 2
    Q_row = Q[..., :mid].reshape(-1, R, E, mid // R)
    Q_col = Q[..., mid:].reshape(-1, R, E, mid // R)
    BS = Q_row.shape[0]
    assert BS % 8 == 0
    bt = _pick_bt(BS)

    q_all = jnp.concatenate(
        [Q_row.reshape(BS, R * E * DK), Q_col.reshape(BS, R * E * DK)], axis=-1)

    kernel = functools.partial(
        _usm_kernel, params["T_tuple"], params["U_tuple"], params["dc_tuple"])

    grid = (BS // bt,)
    out = pl.pallas_call(
        kernel,
        out_shape=jax.ShapeDtypeStruct((BS, D_VALUE), jnp.float32),
        grid=grid,
        in_specs=[
            pl.BlockSpec((bt, 2 * R * E * DK), lambda i: (i, 0)),
            pl.BlockSpec((2 * R * E * DK, 2 * R * E * N_EXPERTS),
                         lambda i: (0, 0)),
            pl.BlockSpec((VEF * N_EXPERTS, D_VALUE), lambda i: (0, 0)),
        ],
        out_specs=pl.BlockSpec((bt, D_VALUE), lambda i: (i, 0)),
        compiler_params=pltpu.CompilerParams(
            dimension_semantics=("parallel",)),
    )(q_all, params["w_big"], params["pm_stack"])
    # TODO(synk): the 32-lane output is stored with masked vst; a lane-dense
    # (BT/4, 128) packing would need a sublane->lane repack that is not worth
    # it while the kernel is compute-bound.
    return out


# ------------------------ deterministic parameter init ----------------------
def init_params(key):
    ks = jax.random.split(key, 5)
    Cs = jax.random.normal(ks[0], (NUM_CORES, R, R), jnp.float32)
    C = Cs.sum(0)
    K_row = jax.random.normal(ks[1], (R, N_EXPERTS, E, DK), jnp.float32)
    K_col = jax.random.normal(ks[2], (R, N_EXPERTS, E, DK), jnp.float32)
    scale = (VEF / (2 * TOPK * R * NUM_LAYERS)) ** 0.5
    phys = jax.random.normal(ks[3], (NUM_CORES, N_EXPERTS, DVPC), jnp.float32) * scale
    proj = jax.random.normal(ks[4], (NUM_CORES, VEF, DVPC, DVPC), jnp.float32) * scale

    # torch.svd returns (U, S, V) with C = U S V^T; module uses T = V[:1],
    # U = U[:1].  Done host-side with numpy (one-off, not a per-token op).
    C_np = np.asarray(C)
    U_np, _, Vh_np = np.linalg.svd(C_np)
    T_row = Vh_np.T[0, :]            # first row of V
    U_row = U_np[0, :]               # first row of U
    dc = np.diag(C_np)               # diag(sum_i C_i) == sum_i diag(C_i)

    # One fused block-diagonal key matrix: 2*R*E blocks of (DK, N).
    # Blocks 0..R*E-1 come from K_row, blocks R*E..2*R*E-1 from K_col;
    # block (ri, ei) = K[ri, :, ei, :]^T.
    def fused_block_diag_keys(Kr, Kc):
        W = np.zeros((2 * R * E * DK, 2 * R * E * N_EXPERTS), np.float32)
        for part, K in enumerate((Kr, Kc)):
            Kt = np.transpose(np.asarray(K), (0, 2, 3, 1))   # (R, E, DK, N)
            for ri in range(R):
                for ei in range(E):
                    blk = part * R * E + ri * E + ei
                    W[blk * DK:(blk + 1) * DK,
                      blk * N_EXPERTS:(blk + 1) * N_EXPERTS] = Kt[ri, ei]
        return jnp.asarray(W)

    # Physical memories stacked core-major along the value columns.
    pm_all_np = np.concatenate([np.asarray(phys[c]) for c in range(NUM_CORES)],
                               axis=-1)                      # (N, D_VALUE)

    # Per-p virtual projectors, block-diagonal over cores (matches torch.cat),
    # then folded into the physical memories: pm_stack[p] = pm_all @ pj[p].
    proj_np = np.asarray(proj)
    pm_stack_np = np.zeros((VEF * N_EXPERTS, D_VALUE), np.float32)
    for p in range(VEF):
        pj_p = np.zeros((D_VALUE, D_VALUE), np.float32)
        for c in range(NUM_CORES):
            pj_p[c * DVPC:(c + 1) * DVPC, c * DVPC:(c + 1) * DVPC] = proj_np[c, p]
        pm_stack_np[p * N_EXPERTS:(p + 1) * N_EXPERTS] = pm_all_np @ pj_p

    return dict(
        Cs=Cs, C=C, K_row=K_row, K_col=K_col, phys=phys, proj=proj,
        T=jnp.asarray(T_row, jnp.float32), U=jnp.asarray(U_row, jnp.float32),
        dc=jnp.asarray(dc, jnp.float32),
        T_tuple=tuple(float(v) for v in T_row),
        U_tuple=tuple(float(v) for v in U_row),
        dc_tuple=tuple(float(v) for v in dc),
        w_big=fused_block_diag_keys(K_row, K_col),
        pm_stack=jnp.asarray(pm_stack_np, jnp.bfloat16),
    )


# --------------------------- pure-JAX reference -----------------------------
def reference_forward(Q, params):
    K_row, K_col = params["K_row"], params["K_col"]
    Tvec, Uvec, dc = params["T"], params["U"], params["dc"]
    phys, proj = params["phys"], params["proj"]

    mid = Q.shape[-1] // 2
    Q_row = Q[..., :mid].reshape(-1, R, E, mid // R)
    Q_col = Q[..., mid:].reshape(-1, R, E, mid // R)

    S_col = jnp.einsum("rnek,brek->bren", K_col, Q_col)
    S_row = jnp.einsum("rnek,brek->bren", K_row, Q_row)

    def binmask(x, m):
        _, idx = jax.lax.top_k(x, m)
        return jax.nn.one_hot(idx, x.shape[-1], dtype=x.dtype).sum(-2)

    scores_col = jnp.einsum("r,bren->ben", Tvec, S_col)
    S_col = S_col * binmask(scores_col, TOPK)[:, None]
    scores_row = jnp.einsum("r,bren->ben", Uvec, S_row)
    S_row = S_row * binmask(scores_row, TOPK)[:, None]

    # repeated 'r' on C_i -> diagonal; summed over cores == diag(C)
    grid = jnp.einsum("r,brin,brjn->bijn", dc, S_row, S_col)
    grid = grid.reshape(grid.shape[0], VEF, grid.shape[-1])
    Scores, Indices = jax.lax.top_k(jax.nn.softmax(grid, axis=-1), TOPK)

    # TODO(synk): torch.randperm slot shuffle is order-invariant under the sum
    # below, so it is omitted.
    outs = []
    for c in range(NUM_CORES):
        core_out = jnp.zeros((grid.shape[0], DVPC), jnp.float32)
        for p in range(VEF):
            gathered = phys[c][Indices[:, p, :]]                 # (bs, m, dvpc)
            nv = jnp.einsum("bmd,bm->bd", gathered, Scores[:, p, :])
            core_out = core_out + nv @ proj[c, p]
        outs.append(core_out)
    return jnp.concatenate(outs, axis=-1)


# ---------------------------------- main ------------------------------------
if __name__ == "__main__":
    key = jax.random.PRNGKey(0)
    pkey, qkey = jax.random.split(key)
    params = init_params(pkey)

    b, seq = 2, 8
    # Q: (b, seq, expansion_factor=sqrt(VEF), d_query)
    Q = jax.random.normal(qkey, (b, seq, E, D_QUERY), jnp.float32)

    out = ultra_sparse_memory_mlp(Q, params)
    out = jax.block_until_ready(out)
    assert out.shape == (b * seq, D_VALUE) and bool(jnp.all(jnp.isfinite(out)))

    ref = reference_forward(Q, params)
    err = jnp.abs(out - ref)
    tol = 1e-2 * jnp.abs(ref) + 1e-3
    frac_bad = float(jnp.mean((err > tol).astype(jnp.float32)))
    # Small slack covers top-k tie flips under different f32 accumulation
    # orders and the bf16 read matmul; a real bug would mismatch everywhere.
    assert frac_bad < 0.1, f"mismatch fraction {frac_bad}"

    print("KERNEL_OK")
</pallas_src>

<mosaic_0001>
module attributes {stable_mosaic.version = 11 : i64} {
  func.func @_usm_kernel(%arg0: i32, %arg1: memref<8x64xf32, #tpu.memory_space<vmem>>, %arg2: memref<64x2048xf32, #tpu.memory_space<vmem>>, %arg3: memref<512x32xbf16, #tpu.memory_space<vmem>>, %arg4: memref<8x32xf32, #tpu.memory_space<vmem>>) attributes {dimension_semantics = [#tpu.dimension_semantics<parallel>], iteration_bounds = array<i64: 2>, scalar_prefetch = 0 : i64, scratch_operands = 0 : i64, tpu.core_type = #tpu.core_type<tc>, window_params = [{transform_indices = @transform_0, window_bounds = array<i64: 8, 64>}, {pipeline_mode = #tpu.pipeline_mode<synchronous>, transform_indices = @transform_1, window_bounds = array<i64: 64, 2048>}, {pipeline_mode = #tpu.pipeline_mode<synchronous>, transform_indices = @transform_2, window_bounds = array<i64: 512, 32>}, {transform_indices = @transform_3, window_bounds = array<i64: 8, 32>}]} {
    %c0 = arith.constant 0 : index
    %c0_0 = arith.constant 0 : index
    %0 = vector.load %arg1[%c0, %c0_0] : memref<8x64xf32, #tpu.memory_space<vmem>>, vector<8x64xf32>
    %c0_1 = arith.constant 0 : index
    %c0_2 = arith.constant 0 : index
    %1 = vector.load %arg2[%c0_1, %c0_2] : memref<64x2048xf32, #tpu.memory_space<vmem>>, vector<64x2048xf32>
    %cst = arith.constant dense<0.000000e+00> : vector<8x2048xf32>
    %2 = tpu.matmul %0, %1, %cst {dimension_numbers = #tpu.dot_dimension_numbers<[1], [0], [0], [1], [0, 0, 1, 1], [], []>} : vector<8x64xf32>, vector<64x2048xf32>, vector<8x2048xf32> -> vector<8x2048xf32>
    %3 = vector.extract_strided_slice %2 {offsets = [0, 0], sizes = [8, 128], strides = [1, 1]} : vector<8x2048xf32> to vector<8x128xf32>
    %4 = vector.extract_strided_slice %2 {offsets = [0, 128], sizes = [8, 128], strides = [1, 1]} : vector<8x2048xf32> to vector<8x128xf32>
    %5 = vector.extract_strided_slice %2 {offsets = [0, 256], sizes = [8, 128], strides = [1, 1]} : vector<8x2048xf32> to vector<8x128xf32>
    %6 = vector.extract_strided_slice %2 {offsets = [0, 384], sizes = [8, 128], strides = [1, 1]} : vector<8x2048xf32> to vector<8x128xf32>
    %7 = vector.extract_strided_slice %2 {offsets = [0, 512], sizes = [8, 128], strides = [1, 1]} : vector<8x2048xf32> to vector<8x128xf32>
    %8 = vector.extract_strided_slice %2 {offsets = [0, 640], sizes = [8, 128], strides = [1, 1]} : vector<8x2048xf32> to vector<8x128xf32>
    %9 = vector.extract_strided_slice %2 {offsets = [0, 768], sizes = [8, 128], strides = [1, 1]} : vector<8x2048xf32> to vector<8x128xf32>
    %10 = vector.extract_strided_slice %2 {offsets = [0, 896], sizes = [8, 128], strides = [1, 1]} : vector<8x2048xf32> to vector<8x128xf32>
    %11 = vector.extract_strided_slice %2 {offsets = [0, 1024], sizes = [8, 128], strides = [1, 1]} : vector<8x2048xf32> to vector<8x128xf32>
    %12 = vector.extract_strided_slice %2 {offsets = [0, 1152], sizes = [8, 128], strides = [1, 1]} : vector<8x2048xf32> to vector<8x128xf32>
    %13 = vector.extract_strided_slice %2 {offsets = [0, 1280], sizes = [8, 128], strides = [1, 1]} : vector<8x2048xf32> to vector<8x128xf32>
    %14 = vector.extract_strided_slice %2 {offsets = [0, 1408], sizes = [8, 128], strides = [1, 1]} : vector<8x2048xf32> to vector<8x128xf32>
    %15 = vector.extract_strided_slice %2 {offsets = [0, 1536], sizes = [8, 128], strides = [1, 1]} : vector<8x2048xf32> to vector<8x128xf32>
    %16 = vector.extract_strided_slice %2 {offsets = [0, 1664], sizes = [8, 128], strides = [1, 1]} : vector<8x2048xf32> to vector<8x128xf32>
    %17 = vector.extract_strided_slice %2 {offsets = [0, 1792], sizes = [8, 128], strides = [1, 1]} : vector<8x2048xf32> to vector<8x128xf32>
    %18 = vector.extract_strided_slice %2 {offsets = [0, 1920], sizes = [8, 128], strides = [1, 1]} : vector<8x2048xf32> to vector<8x128xf32>
    %cst_3 = arith.constant -6.314460e-01 : f32
    %19 = vector.broadcast %cst_3 : f32 to vector<8x128xf32>
    %20 = arith.mulf %3, %19 : vector<8x128xf32>
    %cst_4 = arith.constant 0.37956515 : f32
    %21 = vector.broadcast %cst_4 : f32 to vector<8x128xf32>
    %22 = arith.mulf %5, %21 : vector<8x128xf32>
    %23 = arith.addf %20, %22 : vector<8x128xf32>
    %cst_5 = arith.constant 0.665575743 : f32
    %24 = vector.broadcast %cst_5 : f32 to vector<8x128xf32>
    %25 = arith.mulf %7, %24 : vector<8x128xf32>
    %26 = arith.addf %23, %25 : vector<8x128xf32>
    %cst_6 = arith.constant 0.119227335 : f32
    %27 = vector.broadcast %cst_6 : f32 to vector<8x128xf32>
    %28 = arith.mulf %9, %27 : vector<8x128xf32>
    %29 = arith.addf %26, %28 : vector<8x128xf32>
    %cst_7 = arith.constant -6.314460e-01 : f32
    %30 = vector.broadcast %cst_7 : f32 to vector<8x128xf32>
    %31 = arith.mulf %4, %30 : vector<8x128xf32>
    %cst_8 = arith.constant 0.37956515 : f32
    %32 = vector.broadcast %cst_8 : f32 to vector<8x128xf32>
    %33 = arith.mulf %6, %32 : vector<8x128xf32>
    %34 = arith.addf %31, %33 : vector<8x128xf32>
    %cst_9 = arith.constant 0.665575743 : f32
    %35 = vector.broadcast %cst_9 : f32 to vector<8x128xf32>
    %36 = arith.mulf %8, %35 : vector<8x128xf32>
    %37 = arith.addf %34, %36 : vector<8x128xf32>
    %cst_10 = arith.constant 0.119227335 : f32
    %38 = vector.broadcast %cst_10 : f32 to vector<8x128xf32>
    %39 = arith.mulf %10, %38 : vector<8x128xf32>
    %40 = arith.addf %37, %39 : vector<8x128xf32>
    %cst_11 = arith.constant 0.489626229 : f32
    %41 = vector.broadcast %cst_11 : f32 to vector<8x128xf32>
    %42 = arith.mulf %11, %41 : vector<8x128xf32>
    %cst_12 = arith.constant 0.373617142 : f32
    %43 = vector.broadcast %cst_12 : f32 to vector<8x128xf32>
    %44 = arith.mulf %13, %43 : vector<8x128xf32>
    %45 = arith.addf %42, %44 : vector<8x128xf32>
    %cst_13 = arith.constant -0.20876196 : f32
    %46 = vector.broadcast %cst_13 : f32 to vector<8x128xf32>
    %47 = arith.mulf %15, %46 : vector<8x128xf32>
    %48 = arith.addf %45, %47 : vector<8x128xf32>
    %cst_14 = arith.constant 0.759667575 : f32
    %49 = vector.broadcast %cst_14 : f32 to vector<8x128xf32>
    %50 = arith.mulf %17, %49 : vector<8x128xf32>
    %51 = arith.addf %48, %50 : vector<8x128xf32>
    %cst_15 = arith.constant 0.489626229 : f32
    %52 = vector.broadcast %cst_15 : f32 to vector<8x128xf32>
    %53 = arith.mulf %12, %52 : vector<8x128xf32>
    %cst_16 = arith.constant 0.373617142 : f32
    %54 = vector.broadcast %cst_16 : f32 to vector<8x128xf32>
    %55 = arith.mulf %14, %54 : vector<8x128xf32>
    %56 = arith.addf %53, %55 : vector<8x128xf32>
    %cst_17 = arith.constant -0.20876196 : f32
    %57 = vector.broadcast %cst_17 : f32 to vector<8x128xf32>
    %58 = arith.mulf %16, %57 : vector<8x128xf32>
    %59 = arith.addf %56, %58 : vector<8x128xf32>
    %cst_18 = arith.constant 0.759667575 : f32
    %60 = vector.broadcast %cst_18 : f32 to vector<8x128xf32>
    %61 = arith.mulf %18, %60 : vector<8x128xf32>
    %62 = arith.addf %59, %61 : vector<8x128xf32>
    %63 = tpu.concatenate %29, %40, %51, %62 in 0 : vector<8x128xf32>, vector<8x128xf32>, vector<8x128xf32>, vector<8x128xf32> -> vector<32x128xf32>
    %64 = tpu.iota {dimensions = array<i32: 1>} : vector<32x128xi32>
    %cst_19 = arith.constant 0.000000e+00 : f32
    %65 = vector.broadcast %cst_19 : f32 to vector<32x128xf32>
    %cst_20 = arith.constant dense<0xFF800000> : vector<32xf32>
    %66 = vector.multi_reduction <maximumf>, %63, %cst_20 [1] : vector<32x128xf32> to vector<32xf32>
    %67 = vector.shape_cast %66 : vector<32xf32> to vector<32x1xf32>
    %68 = vector.broadcast %67 : vector<32x1xf32> to vector<32x128xf32>
    %69 = arith.cmpf oeq, %63, %68 : vector<32x128xf32>
    %c128_i32 = arith.constant 128 : i32
    %70 = vector.broadcast %c128_i32 : i32 to vector<32x128xi32>
    %71 = arith.select %69, %64, %70 : vector<32x128xi1>, vector<32x128xi32>
    %cst_21 = arith.constant dense<2147483647> : vector<32xi32>
    %72 = vector.multi_reduction <minsi>, %71, %cst_21 [1] : vector<32x128xi32> to vector<32xi32>
    %73 = vector.shape_cast %72 : vector<32xi32> to vector<32x1xi32>
    %74 = vector.broadcast %73 : vector<32x1xi32> to vector<32x128xi32>
    %75 = arith.cmpi eq, %64, %74 : vector<32x128xi32>
    %76 = arith.extui %75 : vector<32x128xi1> to vector<32x128xi32>
    %77 = arith.sitofp %76 : vector<32x128xi32> to vector<32x128xf32>
    %78 = arith.addf %65, %77 : vector<32x128xf32>
    %cst_22 = arith.constant 0.000000e+00 : f32
    %79 = vector.broadcast %cst_22 : f32 to vector<32x128xf32>
    %80 = arith.cmpf ogt, %77, %79 : vector<32x128xf32>
    %cst_23 = arith.constant 0xFF800000 : f32
    %81 = vector.broadcast %cst_23 : f32 to vector<32x128xf32>
    %82 = arith.select %80, %81, %63 : vector<32x128xi1>, vector<32x128xf32>
    %cst_24 = arith.constant dense<0xFF800000> : vector<32xf32>
    %83 = vector.multi_reduction <maximumf>, %82, %cst_24 [1] : vector<32x128xf32> to vector<32xf32>
    %84 = vector.shape_cast %83 : vector<32xf32> to vector<32x1xf32>
    %85 = vector.broadcast %84 : vector<32x1xf32> to vector<32x128xf32>
    %86 = arith.cmpf oeq, %82, %85 : vector<32x128xf32>
    %c128_i32_25 = arith.constant 128 : i32
    %87 = vector.broadcast %c128_i32_25 : i32 to vector<32x128xi32>
    %88 = arith.select %86, %64, %87 : vector<32x128xi1>, vector<32x128xi32>
    %cst_26 = arith.constant dense<2147483647> : vector<32xi32>
    %89 = vector.multi_reduction <minsi>, %88, %cst_26 [1] : vector<32x128xi32> to vector<32xi32>
    %90 = vector.shape_cast %89 : vector<32xi32> to vector<32x1xi32>
    %91 = vector.broadcast %90 : vector<32x1xi32> to vector<32x128xi32>
    %92 = arith.cmpi eq, %64, %91 : vector<32x128xi32>
    %93 = arith.extui %92 : vector<32x128xi1> to vector<32x128xi32>
    %94 = arith.sitofp %93 : vector<32x128xi32> to vector<32x128xf32>
    %95 = arith.addf %78, %94 : vector<32x128xf32>
    %cst_27 = arith.constant 0.000000e+00 : f32
    %96 = vector.broadcast %cst_27 : f32 to vector<32x128xf32>
    %97 = arith.cmpf ogt, %94, %96 : vector<32x128xf32>
    %cst_28 = arith.constant 0xFF800000 : f32
    %98 = vector.broadcast %cst_28 : f32 to vector<32x128xf32>
    %99 = arith.select %97, %98, %82 : vector<32x128xi1>, vector<32x128xf32>
    %cst_29 = arith.constant dense<0xFF800000> : vector<32xf32>
    %100 = vector.multi_reduction <maximumf>, %99, %cst_29 [1] : vector<32x128xf32> to vector<32xf32>
    %101 = vector.shape_cast %100 : vector<32xf32> to vector<32x1xf32>
    %102 = vector.broadcast %101 : vector<32x1xf32> to vector<32x128xf32>
    %103 = arith.cmpf oeq, %99, %102 : vector<32x128xf32>
    %c128_i32_30 = arith.constant 128 : i32
    %104 = vector.broadcast %c128_i32_30 : i32 to vector<32x128xi32>
    %105 = arith.select %103, %64, %104 : vector<32x128xi1>, vector<32x128xi32>
    %cst_31 = arith.constant dense<2147483647> : vector<32xi32>
    %106 = vector.multi_reduction <minsi>, %105, %cst_31 [1] : vector<32x128xi32> to vector<32xi32>
    %107 = vector.shape_cast %106 : vector<32xi32> to vector<32x1xi32>
    %108 = vector.broadcast %107 : vector<32x1xi32> to vector<32x128xi32>
    %109 = arith.cmpi eq, %64, %108 : vector<32x128xi32>
    %110 = arith.extui %109 : vector<32x128xi1> to vector<32x128xi32>
    %111 = arith.sitofp %110 : vector<32x128xi32> to vector<32x128xf32>
    %112 = arith.addf %95, %111 : vector<32x128xf32>
    %cst_32 = arith.constant 0.000000e+00 : f32
    %113 = vector.broadcast %cst_32 : f32 to vector<32x128xf32>
    %114 = arith.cmpf ogt, %111, %113 : vector<32x128xf32>
    %cst_33 = arith.constant 0xFF800000 : f32
    %115 = vector.broadcast %cst_33 : f32 to vector<32x128xf32>
    %116 = arith.select %114, %115, %99 : vector<32x128xi1>, vector<32x128xf32>
    %cst_34 = arith.constant dense<0xFF800000> : vector<32xf32>
    %117 = vector.multi_reduction <maximumf>, %116, %cst_34 [1] : vector<32x128xf32> to vector<32xf32>
    %118 = vector.shape_cast %117 : vector<32xf32> to vector<32x1xf32>
    %119 = vector.broadcast %118 : vector<32x1xf32> to vector<32x128xf32>
    %120 = arith.cmpf oeq, %116, %119 : vector<32x128xf32>
    %c128_i32_35 = arith.constant 128 : i32
    %121 = vector.broadcast %c128_i32_35 : i32 to vector<32x128xi32>
    %122 = arith.select %120, %64, %121 : vector<32x128xi1>, vector<32x128xi32>
    %cst_36 = arith.constant dense<2147483647> : vector<32xi32>
    %123 = vector.multi_reduction <minsi>, %122, %cst_36 [1] : vector<32x128xi32> to vector<32xi32>
    %124 = vector.shape_cast %123 : vector<32xi32> to vector<32x1xi32>
    %125 = vector.broadcast %124 : vector<32x1xi32> to vector<32x128xi32>
    %126 = arith.cmpi eq, %64, %125 : vector<32x128xi32>
    %127 = arith.extui %126 : vector<32x128xi1> to vector<32x128xi32>
    %128 = arith.sitofp %127 : vector<32x128xi32> to vector<32x128xf32>
    %129 = arith.addf %112, %128 : vector<32x128xf32>
    %cst_37 = arith.constant 0.000000e+00 : f32
    %130 = vector.broadcast %cst_37 : f32 to vector<32x128xf32>
    %131 = arith.cmpf ogt, %128, %130 : vector<32x128xf32>
    %cst_38 = arith.constant 0xFF800000 : f32
    %132 = vector.broadcast %cst_38 : f32 to vector<32x128xf32>
    %133 = arith.select %131, %132, %116 : vector<32x128xi1>, vector<32x128xf32>
    %cst_39 = arith.constant dense<0xFF800000> : vector<32xf32>
    %134 = vector.multi_reduction <maximumf>, %133, %cst_39 [1] : vector<32x128xf32> to vector<32xf32>
    %135 = vector.shape_cast %134 : vector<32xf32> to vector<32x1xf32>
    %136 = vector.broadcast %135 : vector<32x1xf32> to vector<32x128xf32>
    %137 = arith.cmpf oeq, %133, %136 : vector<32x128xf32>
    %c128_i32_40 = arith.constant 128 : i32
    %138 = vector.broadcast %c128_i32_40 : i32 to vector<32x128xi32>
    %139 = arith.select %137, %64, %138 : vector<32x128xi1>, vector<32x128xi32>
    %cst_41 = arith.constant dense<2147483647> : vector<32xi32>
    %140 = vector.multi_reduction <minsi>, %139, %cst_41 [1] : vector<32x128xi32> to vector<32xi32>
    %141 = vector.shape_cast %140 : vector<32xi32> to vector<32x1xi32>
    %142 = vector.broadcast %141 : vector<32x1xi32> to vector<32x128xi32>
    %143 = arith.cmpi eq, %64, %142 : vector<32x128xi32>
    %144 = arith.extui %143 : vector<32x128xi1> to vector<32x128xi32>
    %145 = arith.sitofp %144 : vector<32x128xi32> to vector<32x128xf32>
    %146 = arith.addf %129, %145 : vector<32x128xf32>
    %cst_42 = arith.constant 0.000000e+00 : f32
    %147 = vector.broadcast %cst_42 : f32 to vector<32x128xf32>
    %148 = arith.cmpf ogt, %145, %147 : vector<32x128xf32>
    %cst_43 = arith.constant 0xFF800000 : f32
    %149 = vector.broadcast %cst_43 : f32 to vector<32x128xf32>
    %150 = arith.select %148, %149, %133 : vector<32x128xi1>, vector<32x128xf32>
    %cst_44 = arith.constant dense<0xFF800000> : vector<32xf32>
    %151 = vector.multi_reduction <maximumf>, %150, %cst_44 [1] : vector<32x128xf32> to vector<32xf32>
    %152 = vector.shape_cast %151 : vector<32xf32> to vector<32x1xf32>
    %153 = vector.broadcast %152 : vector<32x1xf32> to vector<32x128xf32>
    %154 = arith.cmpf oeq, %150, %153 : vector<32x128xf32>
    %c128_i32_45 = arith.constant 128 : i32
    %155 = vector.broadcast %c128_i32_45 : i32 to vector<32x128xi32>
    %156 = arith.select %154, %64, %155 : vector<32x128xi1>, vector<32x128xi32>
    %cst_46 = arith.constant dense<2147483647> : vector<32xi32>
    %157 = vector.multi_reduction <minsi>, %156, %cst_46 [1] : vector<32x128xi32> to vector<32xi32>
    %158 = vector.shape_cast %157 : vector<32xi32> to vector<32x1xi32>
    %159 = vector.broadcast %158 : vector<32x1xi32> to vector<32x128xi32>
    %160 = arith.cmpi eq, %64, %159 : vector<32x128xi32>
    %161 = arith.extui %160 : vector<32x128xi1> to vector<32x128xi32>
    %162 = arith.sitofp %161 : vector<32x128xi32> to vector<32x128xf32>
    %163 = arith.addf %146, %162 : vector<32x128xf32>
    %cst_47 = arith.constant 0.000000e+00 : f32
    %164 = vector.broadcast %cst_47 : f32 to vector<32x128xf32>
    %165 = arith.cmpf ogt, %162, %164 : vector<32x128xf32>
    %cst_48 = arith.constant 0xFF800000 : f32
    %166 = vector.broadcast %cst_48 : f32 to vector<32x128xf32>
    %167 = arith.select %165, %166, %150 : vector<32x128xi1>, vector<32x128xf32>
    %cst_49 = arith.constant dense<0xFF800000> : vector<32xf32>
    %168 = vector.multi_reduction <maximumf>, %167, %cst_49 [1] : vector<32x128xf32> to vector<32xf32>
    %169 = vector.shape_cast %168 : vector<32xf32> to vector<32x1xf32>
    %170 = vector.broadcast %169 : vector<32x1xf32> to vector<32x128xf32>
    %171 = arith.cmpf oeq, %167, %170 : vector<32x128xf32>
    %c128_i32_50 = arith.constant 128 : i32
    %172 = vector.broadcast %c128_i32_50 : i32 to vector<32x128xi32>
    %173 = arith.select %171, %64, %172 : vector<32x128xi1>, vector<32x128xi32>
    %cst_51 = arith.constant dense<2147483647> : vector<32xi32>
    %174 = vector.multi_reduction <minsi>, %173, %cst_51 [1] : vector<32x128xi32> to vector<32xi32>
    %175 = vector.shape_cast %174 : vector<32xi32> to vector<32x1xi32>
    %176 = vector.broadcast %175 : vector<32x1xi32> to vector<32x128xi32>
    %177 = arith.cmpi eq, %64, %176 : vector<32x128xi32>
    %178 = arith.extui %177 : vector<32x128xi1> to vector<32x128xi32>
    %179 = arith.sitofp %178 : vector<32x128xi32> to vector<32x128xf32>
    %180 = arith.addf %163, %179 : vector<32x128xf32>
    %cst_52 = arith.constant 0.000000e+00 : f32
    %181 = vector.broadcast %cst_52 : f32 to vector<32x128xf32>
    %182 = arith.cmpf ogt, %179, %181 : vector<32x128xf32>
    %cst_53 = arith.constant 0xFF800000 : f32
    %183 = vector.broadcast %cst_53 : f32 to vector<32x128xf32>
    %184 = arith.select %182, %183, %167 : vector<32x128xi1>, vector<32x128xf32>
    %cst_54 = arith.constant dense<0xFF800000> : vector<32xf32>
    %185 = vector.multi_reduction <maximumf>, %184, %cst_54 [1] : vector<32x128xf32> to vector<32xf32>
    %186 = vector.shape_cast %185 : vector<32xf32> to vector<32x1xf32>
    %187 = vector.broadcast %186 : vector<32x1xf32> to vector<32x128xf32>
    %188 = arith.cmpf oeq, %184, %187 : vector<32x128xf32>
    %c128_i32_55 = arith.constant 128 : i32
    %189 = vector.broadcast %c128_i32_55 : i32 to vector<32x128xi32>
    %190 = arith.select %188, %64, %189 : vector<32x128xi1>, vector<32x128xi32>
    %cst_56 = arith.constant dense<2147483647> : vector<32xi32>
    %191 = vector.multi_reduction <minsi>, %190, %cst_56 [1] : vector<32x128xi32> to vector<32xi32>
    %192 = vector.shape_cast %191 : vector<32xi32> to vector<32x1xi32>
    %193 = vector.broadcast %192 : vector<32x1xi32> to vector<32x128xi32>
    %194 = arith.cmpi eq, %64, %193 : vector<32x128xi32>
    %195 = arith.extui %194 : vector<32x128xi1> to vector<32x128xi32>
    %196 = arith.sitofp %195 : vector<32x128xi32> to vector<32x128xf32>
    %197 = arith.addf %180, %196 : vector<32x128xf32>
    %198 = vector.extract_strided_slice %197 {offsets = [0, 0], sizes = [8, 128], strides = [1, 1]} : vector<32x128xf32> to vector<8x128xf32>
    %199 = vector.extract_strided_slice %197 {offsets = [8, 0], sizes = [8, 128], strides = [1, 1]} : vector<32x128xf32> to vector<8x128xf32>
    %200 = vector.extract_strided_slice %197 {offsets = [16, 0], sizes = [8, 128], strides = [1, 1]} : vector<32x128xf32> to vector<8x128xf32>
    %201 = vector.extract_strided_slice %197 {offsets = [24, 0], sizes = [8, 128], strides = [1, 1]} : vector<32x128xf32> to vector<8x128xf32>
    %202 = arith.mulf %3, %198 : vector<8x128xf32>
    %203 = arith.mulf %4, %199 : vector<8x128xf32>
    %204 = arith.mulf %5, %198 : vector<8x128xf32>
    %205 = arith.mulf %6, %199 : vector<8x128xf32>
    %206 = arith.mulf %7, %198 : vector<8x128xf32>
    %207 = arith.mulf %8, %199 : vector<8x128xf32>
    %208 = arith.mulf %9, %198 : vector<8x128xf32>
    %209 = arith.mulf %10, %199 : vector<8x128xf32>
    %210 = arith.mulf %11, %200 : vector<8x128xf32>
    %211 = arith.mulf %12, %201 : vector<8x128xf32>
    %212 = arith.mulf %13, %200 : vector<8x128xf32>
    %213 = arith.mulf %14, %201 : vector<8x128xf32>
    %214 = arith.mulf %15, %200 : vector<8x128xf32>
    %215 = arith.mulf %16, %201 : vector<8x128xf32>
    %216 = arith.mulf %17, %200 : vector<8x128xf32>
    %217 = arith.mulf %18, %201 : vector<8x128xf32>
    %cst_57 = arith.constant -1.62509155 : f32
    %218 = vector.broadcast %cst_57 : f32 to vector<8x128xf32>
    %219 = arith.mulf %218, %202 : vector<8x128xf32>
    %220 = arith.mulf %219, %210 : vector<8x128xf32>
    %cst_58 = arith.constant -2.60158014 : f32
    %221 = vector.broadcast %cst_58 : f32 to vector<8x128xf32>
    %222 = arith.mulf %221, %204 : vector<8x128xf32>
    %223 = arith.mulf %222, %212 : vector<8x128xf32>
    %224 = arith.addf %220, %223 : vector<8x128xf32>
    %cst_59 = arith.constant 0.182305694 : f32
    %225 = vector.broadcast %cst_59 : f32 to vector<8x128xf32>
    %226 = arith.mulf %225, %206 : vector<8x128xf32>
    %227 = arith.mulf %226, %214 : vector<8x128xf32>
    %228 = arith.addf %224, %227 : vector<8x128xf32>
    %cst_60 = arith.constant 4.04424763 : f32
    %229 = vector.broadcast %cst_60 : f32 to vector<8x128xf32>
    %230 = arith.mulf %229, %208 : vector<8x128xf32>
    %231 = arith.mulf %230, %216 : vector<8x128xf32>
    %232 = arith.addf %228, %231 : vector<8x128xf32>
    %cst_61 = arith.constant -1.62509155 : f32
    %233 = vector.broadcast %cst_61 : f32 to vector<8x128xf32>
    %234 = arith.mulf %233, %202 : vector<8x128xf32>
    %235 = arith.mulf %234, %211 : vector<8x128xf32>
    %cst_62 = arith.constant -2.60158014 : f32
    %236 = vector.broadcast %cst_62 : f32 to vector<8x128xf32>
    %237 = arith.mulf %236, %204 : vector<8x128xf32>
    %238 = arith.mulf %237, %213 : vector<8x128xf32>
    %239 = arith.addf %235, %238 : vector<8x128xf32>
    %cst_63 = arith.constant 0.182305694 : f32
    %240 = vector.broadcast %cst_63 : f32 to vector<8x128xf32>
    %241 = arith.mulf %240, %206 : vector<8x128xf32>
    %242 = arith.mulf %241, %215 : vector<8x128xf32>
    %243 = arith.addf %239, %242 : vector<8x128xf32>
    %cst_64 = arith.constant 4.04424763 : f32
    %244 = vector.broadcast %cst_64 : f32 to vector<8x128xf32>
    %245 = arith.mulf %244, %208 : vector<8x128xf32>
    %246 = arith.mulf %245, %217 : vector<8x128xf32>
    %247 = arith.addf %243, %246 : vector<8x128xf32>
    %cst_65 = arith.constant -1.62509155 : f32
    %248 = vector.broadcast %cst_65 : f32 to vector<8x128xf32>
    %249 = arith.mulf %248, %203 : vector<8x128xf32>
    %250 = arith.mulf %249, %210 : vector<8x128xf32>
    %cst_66 = arith.constant -2.60158014 : f32
    %251 = vector.broadcast %cst_66 : f32 to vector<8x128xf32>
    %252 = arith.mulf %251, %205 : vector<8x128xf32>
    %253 = arith.mulf %252, %212 : vector<8x128xf32>
    %254 = arith.addf %250, %253 : vector<8x128xf32>
    %cst_67 = arith.constant 0.182305694 : f32
    %255 = vector.broadcast %cst_67 : f32 to vector<8x128xf32>
    %256 = arith.mulf %255, %207 : vector<8x128xf32>
    %257 = arith.mulf %256, %214 : vector<8x128xf32>
    %258 = arith.addf %254, %257 : vector<8x128xf32>
    %cst_68 = arith.constant 4.04424763 : f32
    %259 = vector.broadcast %cst_68 : f32 to vector<8x128xf32>
    %260 = arith.mulf %259, %209 : vector<8x128xf32>
    %261 = arith.mulf %260, %216 : vector<8x128xf32>
    %262 = arith.addf %258, %261 : vector<8x128xf32>
    %cst_69 = arith.constant -1.62509155 : f32
    %263 = vector.broadcast %cst_69 : f32 to vector<8x128xf32>
    %264 = arith.mulf %263, %203 : vector<8x128xf32>
    %265 = arith.mulf %264, %211 : vector<8x128xf32>
    %cst_70 = arith.constant -2.60158014 : f32
    %266 = vector.broadcast %cst_70 : f32 to vector<8x128xf32>
    %267 = arith.mulf %266, %205 : vector<8x128xf32>
    %268 = arith.mulf %267, %213 : vector<8x128xf32>
    %269 = arith.addf %265, %268 : vector<8x128xf32>
    %cst_71 = arith.constant 0.182305694 : f32
    %270 = vector.broadcast %cst_71 : f32 to vector<8x128xf32>
    %271 = arith.mulf %270, %207 : vector<8x128xf32>
    %272 = arith.mulf %271, %215 : vector<8x128xf32>
    %273 = arith.addf %269, %272 : vector<8x128xf32>
    %cst_72 = arith.constant 4.04424763 : f32
    %274 = vector.broadcast %cst_72 : f32 to vector<8x128xf32>
    %275 = arith.mulf %274, %209 : vector<8x128xf32>
    %276 = arith.mulf %275, %217 : vector<8x128xf32>
    %277 = arith.addf %273, %276 : vector<8x128xf32>
    %278 = tpu.concatenate %232, %247, %262, %277 in 0 : vector<8x128xf32>, vector<8x128xf32>, vector<8x128xf32>, vector<8x128xf32> -> vector<32x128xf32>
    %cst_73 = arith.constant dense<0xFF800000> : vector<32xf32>
    %279 = vector.multi_reduction <maximumf>, %278, %cst_73 [1] : vector<32x128xf32> to vector<32xf32>
    %280 = vector.shape_cast %279 : vector<32xf32> to vector<32x1xf32>
    %281 = vector.broadcast %280 : vector<32x1xf32> to vector<32x128xf32>
    %282 = arith.subf %278, %281 : vector<32x128xf32>
    %283 = math.exp %282 : vector<32x128xf32>
    %cst_74 = arith.constant dense<0.000000e+00> : vector<32xf32>
    %284 = vector.multi_reduction <add>, %283, %cst_74 [1] : vector<32x128xf32> to vector<32xf32>
    %285 = vector.shape_cast %284 : vector<32xf32> to vector<32x1xf32>
    %286 = tpu.reciprocal %285 {approx = true} : vector<32x1xf32> -> vector<32x1xf32>
    %287 = vector.broadcast %286 : vector<32x1xf32> to vector<32x128xf32>
    %288 = arith.mulf %283, %287 : vector<32x128xf32>
    %289 = tpu.iota {dimensions = array<i32: 1>} : vector<32x128xi32>
    %cst_75 = arith.constant 0.000000e+00 : f32
    %290 = vector.broadcast %cst_75 : f32 to vector<32x128xf32>
    %cst_76 = arith.constant dense<0xFF800000> : vector<32xf32>
    %291 = vector.multi_reduction <maximumf>, %278, %cst_76 [1] : vector<32x128xf32> to vector<32xf32>
    %292 = vector.shape_cast %291 : vector<32xf32> to vector<32x1xf32>
    %293 = vector.broadcast %292 : vector<32x1xf32> to vector<32x128xf32>
    %294 = arith.cmpf oeq, %278, %293 : vector<32x128xf32>
    %c128_i32_77 = arith.constant 128 : i32
    %295 = vector.broadcast %c128_i32_77 : i32 to vector<32x128xi32>
    %296 = arith.select %294, %289, %295 : vector<32x128xi1>, vector<32x128xi32>
    %cst_78 = arith.constant dense<2147483647> : vector<32xi32>
    %297 = vector.multi_reduction <minsi>, %296, %cst_78 [1] : vector<32x128xi32> to vector<32xi32>
    %298 = vector.shape_cast %297 : vector<32xi32> to vector<32x1xi32>
    %299 = vector.broadcast %298 : vector<32x1xi32> to vector<32x128xi32>
    %300 = arith.cmpi eq, %289, %299 : vector<32x128xi32>
    %301 = arith.extui %300 : vector<32x128xi1> to vector<32x128xi32>
    %302 = arith.sitofp %301 : vector<32x128xi32> to vector<32x128xf32>
    %303 = arith.addf %290, %302 : vector<32x128xf32>
    %cst_79 = arith.constant 0.000000e+00 : f32
    %304 = vector.broadcast %cst_79 : f32 to vector<32x128xf32>
    %305 = arith.cmpf ogt, %302, %304 : vector<32x128xf32>
    %cst_80 = arith.constant 0xFF800000 : f32
    %306 = vector.broadcast %cst_80 : f32 to vector<32x128xf32>
    %307 = arith.select %305, %306, %278 : vector<32x128xi1>, vector<32x128xf32>
    %cst_81 = arith.constant dense<0xFF800000> : vector<32xf32>
    %308 = vector.multi_reduction <maximumf>, %307, %cst_81 [1] : vector<32x128xf32> to vector<32xf32>
    %309 = vector.shape_cast %308 : vector<32xf32> to vector<32x1xf32>
    %310 = vector.broadcast %309 : vector<32x1xf32> to vector<32x128xf32>
    %311 = arith.cmpf oeq, %307, %310 : vector<32x128xf32>
    %c128_i32_82 = arith.constant 128 : i32
    %312 = vector.broadcast %c128_i32_82 : i32 to vector<32x128xi32>
    %313 = arith.select %311, %289, %312 : vector<32x128xi1>, vector<32x128xi32>
    %cst_83 = arith.constant dense<2147483647> : vector<32xi32>
    %314 = vector.multi_reduction <minsi>, %313, %cst_83 [1] : vector<32x128xi32> to vector<32xi32>
    %315 = vector.shape_cast %314 : vector<32xi32> to vector<32x1xi32>
    %316 = vector.broadcast %315 : vector<32x1xi32> to vector<32x128xi32>
    %317 = arith.cmpi eq, %289, %316 : vector<32x128xi32>
    %318 = arith.extui %317 : vector<32x128xi1> to vector<32x128xi32>
    %319 = arith.sitofp %318 : vector<32x128xi32> to vector<32x128xf32>
    %320 = arith.addf %303, %319 : vector<32x128xf32>
    %cst_84 = arith.constant 0.000000e+00 : f32
    %321 = vector.broadcast %cst_84 : f32 to vector<32x128xf32>
    %322 = arith.cmpf ogt, %319, %321 : vector<32x128xf32>
    %cst_85 = arith.constant 0xFF800000 : f32
    %323 = vector.broadcast %cst_85 : f32 to vector<32x128xf32>
    %324 = arith.select %322, %323, %307 : vector<32x128xi1>, vector<32x128xf32>
    %cst_86 = arith.constant dense<0xFF800000> : vector<32xf32>
    %325 = vector.multi_reduction <maximumf>, %324, %cst_86 [1] : vector<32x128xf32> to vector<32xf32>
    %326 = vector.shape_cast %325 : vector<32xf32> to vector<32x1xf32>
    %327 = vector.broadcast %326 : vector<32x1xf32> to vector<32x128xf32>
    %328 = arith.cmpf oeq, %324, %327 : vector<32x128xf32>
    %c128_i32_87 = arith.constant 128 : i32
    %329 = vector.broadcast %c128_i32_87 : i32 to vector<32x128xi32>
    %330 = arith.select %328, %289, %329 : vector<32x128xi1>, vector<32x128xi32>
    %cst_88 = arith.constant dense<2147483647> : vector<32xi32>
    %331 = vector.multi_reduction <minsi>, %330, %cst_88 [1] : vector<32x128xi32> to vector<32xi32>
    %332 = vector.shape_cast %331 : vector<32xi32> to vector<32x1xi32>
    %333 = vector.broadcast %332 : vector<32x1xi32> to vector<32x128xi32>
    %334 = arith.cmpi eq, %289, %333 : vector<32x128xi32>
    %335 = arith.extui %334 : vector<32x128xi1> to vector<32x128xi32>
    %336 = arith.sitofp %335 : vector<32x128xi32> to vector<32x128xf32>
    %337 = arith.addf %320, %336 : vector<32x128xf32>
    %cst_89 = arith.constant 0.000000e+00 : f32
    %338 = vector.broadcast %cst_89 : f32 to vector<32x128xf32>
    %339 = arith.cmpf ogt, %336, %338 : vector<32x128xf32>
    %cst_90 = arith.constant 0xFF800000 : f32
    %340 = vector.broadcast %cst_90 : f32 to vector<32x128xf32>
    %341 = arith.select %339, %340, %324 : vector<32x128xi1>, vector<32x128xf32>
    %cst_91 = arith.constant dense<0xFF800000> : vector<32xf32>
    %342 = vector.multi_reduction <maximumf>, %341, %cst_91 [1] : vector<32x128xf32> to vector<32xf32>
    %343 = vector.shape_cast %342 : vector<32xf32> to vector<32x1xf32>
    %344 = vector.broadcast %343 : vector<32x1xf32> to vector<32x128xf32>
    %345 = arith.cmpf oeq, %341, %344 : vector<32x128xf32>
    %c128_i32_92 = arith.constant 128 : i32
    %346 = vector.broadcast %c128_i32_92 : i32 to vector<32x128xi32>
    %347 = arith.select %345, %289, %346 : vector<32x128xi1>, vector<32x128xi32>
    %cst_93 = arith.constant dense<2147483647> : vector<32xi32>
    %348 = vector.multi_reduction <minsi>, %347, %cst_93 [1] : vector<32x128xi32> to vector<32xi32>
    %349 = vector.shape_cast %348 : vector<32xi32> to vector<32x1xi32>
    %350 = vector.broadcast %349 : vector<32x1xi32> to vector<32x128xi32>
    %351 = arith.cmpi eq, %289, %350 : vector<32x128xi32>
    %352 = arith.extui %351 : vector<32x128xi1> to vector<32x128xi32>
    %353 = arith.sitofp %352 : vector<32x128xi32> to vector<32x128xf32>
    %354 = arith.addf %337, %353 : vector<32x128xf32>
    %cst_94 = arith.constant 0.000000e+00 : f32
    %355 = vector.broadcast %cst_94 : f32 to vector<32x128xf32>
    %356 = arith.cmpf ogt, %353, %355 : vector<32x128xf32>
    %cst_95 = arith.constant 0xFF800000 : f32
    %357 = vector.broadcast %cst_95 : f32 to vector<32x128xf32>
    %358 = arith.select %356, %357, %341 : vector<32x128xi1>, vector<32x128xf32>
    %cst_96 = arith.constant dense<0xFF800000> : vector<32xf32>
    %359 = vector.multi_reduction <maximumf>, %358, %cst_96 [1] : vector<32x128xf32> to vector<32xf32>
    %360 = vector.shape_cast %359 : vector<32xf32> to vector<32x1xf32>
    %361 = vector.broadcast %360 : vector<32x1xf32> to vector<32x128xf32>
    %362 = arith.cmpf oeq, %358, %361 : vector<32x128xf32>
    %c128_i32_97 = arith.constant 128 : i32
    %363 = vector.broadcast %c128_i32_97 : i32 to vector<32x128xi32>
    %364 = arith.select %362, %289, %363 : vector<32x128xi1>, vector<32x128xi32>
    %cst_98 = arith.constant dense<2147483647> : vector<32xi32>
    %365 = vector.multi_reduction <minsi>, %364, %cst_98 [1] : vector<32x128xi32> to vector<32xi32>
    %366 = vector.shape_cast %365 : vector<32xi32> to vector<32x1xi32>
    %367 = vector.broadcast %366 : vector<32x1xi32> to vector<32x128xi32>
    %368 = arith.cmpi eq, %289, %367 : vector<32x128xi32>
    %369 = arith.extui %368 : vector<32x128xi1> to vector<32x128xi32>
    %370 = arith.sitofp %369 : vector<32x128xi32> to vector<32x128xf32>
    %371 = arith.addf %354, %370 : vector<32x128xf32>
    %cst_99 = arith.constant 0.000000e+00 : f32
    %372 = vector.broadcast %cst_99 : f32 to vector<32x128xf32>
    %373 = arith.cmpf ogt, %370, %372 : vector<32x128xf32>
    %cst_100 = arith.constant 0xFF800000 : f32
    %374 = vector.broadcast %cst_100 : f32 to vector<32x128xf32>
    %375 = arith.select %373, %374, %358 : vector<32x128xi1>, vector<32x128xf32>
    %cst_101 = arith.constant dense<0xFF800000> : vector<32xf32>
    %376 = vector.multi_reduction <maximumf>, %375, %cst_101 [1] : vector<32x128xf32> to vector<32xf32>
    %377 = vector.shape_cast %376 : vector<32xf32> to vector<32x1xf32>
    %378 = vector.broadcast %377 : vector<32x1xf32> to vector<32x128xf32>
    %379 = arith.cmpf oeq, %375, %378 : vector<32x128xf32>
    %c128_i32_102 = arith.constant 128 : i32
    %380 = vector.broadcast %c128_i32_102 : i32 to vector<32x128xi32>
    %381 = arith.select %379, %289, %380 : vector<32x128xi1>, vector<32x128xi32>
    %cst_103 = arith.constant dense<2147483647> : vector<32xi32>
    %382 = vector.multi_reduction <minsi>, %381, %cst_103 [1] : vector<32x128xi32> to vector<32xi32>
    %383 = vector.shape_cast %382 : vector<32xi32> to vector<32x1xi32>
    %384 = vector.broadcast %383 : vector<32x1xi32> to vector<32x128xi32>
    %385 = arith.cmpi eq, %289, %384 : vector<32x128xi32>
    %386 = arith.extui %385 : vector<32x128xi1> to vector<32x128xi32>
    %387 = arith.sitofp %386 : vector<32x128xi32> to vector<32x128xf32>
    %388 = arith.addf %371, %387 : vector<32x128xf32>
    %cst_104 = arith.constant 0.000000e+00 : f32
    %389 = vector.broadcast %cst_104 : f32 to vector<32x128xf32>
    %390 = arith.cmpf ogt, %387, %389 : vector<32x128xf32>
    %cst_105 = arith.constant 0xFF800000 : f32
    %391 = vector.broadcast %cst_105 : f32 to vector<32x128xf32>
    %392 = arith.select %390, %391, %375 : vector<32x128xi1>, vector<32x128xf32>
    %cst_106 = arith.constant dense<0xFF800000> : vector<32xf32>
    %393 = vector.multi_reduction <maximumf>, %392, %cst_106 [1] : vector<32x128xf32> to vector<32xf32>
    %394 = vector.shape_cast %393 : vector<32xf32> to vector<32x1xf32>
    %395 = vector.broadcast %394 : vector<32x1xf32> to vector<32x128xf32>
    %396 = arith.cmpf oeq, %392, %395 : vector<32x128xf32>
    %c128_i32_107 = arith.constant 128 : i32
    %397 = vector.broadcast %c128_i32_107 : i32 to vector<32x128xi32>
    %398 = arith.select %396, %289, %397 : vector<32x128xi1>, vector<32x128xi32>
    %cst_108 = arith.constant dense<2147483647> : vector<32xi32>
    %399 = vector.multi_reduction <minsi>, %398, %cst_108 [1] : vector<32x128xi32> to vector<32xi32>
    %400 = vector.shape_cast %399 : vector<32xi32> to vector<32x1xi32>
    %401 = vector.broadcast %400 : vector<32x1xi32> to vector<32x128xi32>
    %402 = arith.cmpi eq, %289, %401 : vector<32x128xi32>
    %403 = arith.extui %402 : vector<32x128xi1> to vector<32x128xi32>
    %404 = arith.sitofp %403 : vector<32x128xi32> to vector<32x128xf32>
    %405 = arith.addf %388, %404 : vector<32x128xf32>
    %cst_109 = arith.constant 0.000000e+00 : f32
    %406 = vector.broadcast %cst_109 : f32 to vector<32x128xf32>
    %407 = arith.cmpf ogt, %404, %406 : vector<32x128xf32>
    %cst_110 = arith.constant 0xFF800000 : f32
    %408 = vector.broadcast %cst_110 : f32 to vector<32x128xf32>
    %409 = arith.select %407, %408, %392 : vector<32x128xi1>, vector<32x128xf32>
    %cst_111 = arith.constant dense<0xFF800000> : vector<32xf32>
    %410 = vector.multi_reduction <maximumf>, %409, %cst_111 [1] : vector<32x128xf32> to vector<32xf32>
    %411 = vector.shape_cast %410 : vector<32xf32> to vector<32x1xf32>
    %412 = vector.broadcast %411 : vector<32x1xf32> to vector<32x128xf32>
    %413 = arith.cmpf oeq, %409, %412 : vector<32x128xf32>
    %c128_i32_112 = arith.constant 128 : i32
    %414 = vector.broadcast %c128_i32_112 : i32 to vector<32x128xi32>
    %415 = arith.select %413, %289, %414 : vector<32x128xi1>, vector<32x128xi32>
    %cst_113 = arith.constant dense<2147483647> : vector<32xi32>
    %416 = vector.multi_reduction <minsi>, %415, %cst_113 [1] : vector<32x128xi32> to vector<32xi32>
    %417 = vector.shape_cast %416 : vector<32xi32> to vector<32x1xi32>
    %418 = vector.broadcast %417 : vector<32x1xi32> to vector<32x128xi32>
    %419 = arith.cmpi eq, %289, %418 : vector<32x128xi32>
    %420 = arith.extui %419 : vector<32x128xi1> to vector<32x128xi32>
    %421 = arith.sitofp %420 : vector<32x128xi32> to vector<32x128xf32>
    %422 = arith.addf %405, %421 : vector<32x128xf32>
    %423 = arith.mulf %288, %422 : vector<32x128xf32>
    %424 = vector.extract_strided_slice %423 {offsets = [0, 0], sizes = [8, 128], strides = [1, 1]} : vector<32x128xf32> to vector<8x128xf32>
    %425 = vector.extract_strided_slice %423 {offsets = [8, 0], sizes = [8, 128], strides = [1, 1]} : vector<32x128xf32> to vector<8x128xf32>
    %426 = vector.extract_strided_slice %423 {offsets = [16, 0], sizes = [8, 128], strides = [1, 1]} : vector<32x128xf32> to vector<8x128xf32>
    %427 = vector.extract_strided_slice %423 {offsets = [24, 0], sizes = [8, 128], strides = [1, 1]} : vector<32x128xf32> to vector<8x128xf32>
    %428 = tpu.concatenate %424, %425, %426, %427 in 1 : vector<8x128xf32>, vector<8x128xf32>, vector<8x128xf32>, vector<8x128xf32> -> vector<8x512xf32>
    %429 = arith.truncf %428 : vector<8x512xf32> to vector<8x512xbf16>
    %c0_114 = arith.constant 0 : index
    %c0_115 = arith.constant 0 : index
    %430 = vector.load %arg3[%c0_114, %c0_115] : memref<512x32xbf16, #tpu.memory_space<vmem>>, vector<512x32xbf16>
    %cst_116 = arith.constant dense<0.000000e+00> : vector<8x32xf32>
    %431 = tpu.matmul %429, %430, %cst_116 {dimension_numbers = #tpu.dot_dimension_numbers<[1], [0], [0], [1], [0, 0, 1, 1], [], []>} : vector<8x512xbf16>, vector<512x32xbf16>, vector<8x32xf32> -> vector<8x32xf32>
    %c0_117 = arith.constant 0 : index
    %c0_118 = arith.constant 0 : index
    %432 = vector.load %arg4[%c0_117, %c0_118] : memref<8x32xf32, #tpu.memory_space<vmem>>, vector<8x32xf32>
    tpu.vector_store %arg4[%c0_117, %c0_118], %431 {strides = array<i32>} : memref<8x32xf32, #tpu.memory_space<vmem>>, vector<8x32xf32>,
    return
  }
  func.func @transform_0(%arg0: i32) -> (i32, i32) {
    %c0_i32 = arith.constant 0 : i32
    %c0_i32_0 = arith.constant 0 : i32
    return %arg0, %c0_i32 : i32, i32
  }
  func.func @transform_1(%arg0: i32) -> (i32, i32) {
    %c0_i32 = arith.constant 0 : i32
    %c0_i32_0 = arith.constant 0 : i32
    %c0_i32_1 = arith.constant 0 : i32
    return %c0_i32, %c0_i32_0 : i32, i32
  }
  func.func @transform_2(%arg0: i32) -> (i32, i32) {
    %c0_i32 = arith.constant 0 : i32
    %c0_i32_0 = arith.constant 0 : i32
    %c0_i32_1 = arith.constant 0 : i32
    return %c0_i32, %c0_i32_0 : i32, i32
  }
  func.func @transform_3(%arg0: i32) -> (i32, i32) {
    %c0_i32 = arith.constant 0 : i32
    %c0_i32_0 = arith.constant 0 : i32
    return %arg0, %c0_i32 : i32, i32
  }
}

</mosaic_0001>

<bundles_post_ra>
// kernel: tpu_custom_call.1
= control target key start
LH: loop header
LB: loop body
LE: loop exit
PB: predicated region body
PF: predicated region fallthrough
CT: control target
= control target key end

     0   :  { %8 = vsyncpa [#allocation3], 0  ;;  %s4366_s0 = inlined_call_operand.vmem [shape: f32[16,64], index: 0, kind: input, shape index: {}]   ;;  %s4367_s1 = inlined_call_operand.hbm [shape: f32[64,2048], index: 1, kind: input, shape index: {}]   ;;  %s4368_s2 = inlined_call_operand.vmem [shape: bf16[512,32], index: 2, kind: input, shape index: {}]   ;;  %s4369_s3 = inlined_call_operand.hbm [shape: f32[16,32], index: 3, kind: output, shape index: {}]  }
   0x1   :  { %9 = vsyncpa [#allocation4], 0 }
   0x2   :  { %11 = vsyncpa [#allocation4 + $0x1], 0  ;;  %s3322_s12 = smov 0   ;;  %s3324_s13 = smov 0  }
   0x3   :  { %s3326_s14 = smov 0   ;;  %s3328_s15 = smov 0  }
   0x4 LB: > { %s3343_s16 = sadd.s32 4294967295, %s3295_s15   ;;  %s2944_s17 = sadd.s32 4294967294, %s3295_s15   ;;  %s3295_s15 = sphi %s3328_s15, %s4377_s15   ;;  %s3291_s14 = sphi %s3326_s14, %s4376_s14   ;;  %s3287_s13 = sphi %s3324_s13, %s4375_s13   ;;  %s3283_s12 = sphi %s3322_s12, %s4374_s12  }
   0x5   : > { %s3347_s18 = sadd.s32 1, %s3295_s15   ;;  %s92_s19 = sadd.s32 1, %s3291_s14 }
   0x6   : > { %s89_s20 = ssub.s32 %s3295_s15, %s3347_s18  ;;  %p102_p0 = scmp.ne.s32.totalorder %s3291_s14, %s3287_s13 }
   0x7   : > { %p90_p1 = scmp.eq.s32.totalorder %s89_s20, 0  ;;  %p103_p2 = scmp.eq.s32.totalorder %s3343_s16, 1 }
   0x8   : > { %p108_p3 = scmp.ne.s32.totalorder %s3287_s13, %s3283_s12  ;;  %p109_p4 = scmp.eq.s32.totalorder %s2944_s17, 1 }
   0x9   : > { %s3358_s21 = scalar_select %p90_p1, %s3291_s14, %s92_s19  }
   0xa   : > { %p3360_p5 = por %p103_p2, %p102_p0  ;;  %p3364_p6 = por %p109_p4, %p108_p3 }
   0xb   : > { %p2945_p7 = scmp.ge.s32.totalorder %s3295_s15, 1  ;;  %p116_p8 = scmp.lt.s32.totalorder %s3295_s15, 3 }
   0xc   : > { %s4371_s23 = scalar_select %p3364_p6, 1, 0 }
   0xd   : > { %p3118_p9 = scmp.eq.s32.totalorder %s3343_s16, 0  ;;  %p3371_p10 = pnand %p2945_p7, %p116_p8 }
   0xe   : > { %s3297_s25 = smov [#allocation2]  }
   0xf   : > { %s128_s26 = sshll.u32 %s3297_s25, 4  ;;  %p3110_p11 = pneg %p3371_p10  ;;  %s129_s26 = int_to_ptr.vmem [resolvable:$true] %s128_s26 }
  0x10   : > { %s3216_s27 = scalar_lea.vmem %s129_s26, 16384  ;;  %p3224_p3 = scmp.lt.s32.totalorder %s129_s26, %s129_s26 }
  0x11   : > { %p3111_p12 = pnand %p3118_p9, %p3110_p11  ;;  %p3217_p0 = scmp.ne.s32.totalorder %s129_s26, %s3216_s27 }
  0x12   : > { %p3225_p4 = scmp.lt.s32.totalorder %s3216_s27, %s3216_s27 }
  0x13   : > { %p3207_p13 = pneg %p3111_p12 }
  0x14   : > { %p3226_p6 = por %p3225_p4, %p3224_p3 }
  0x15   : > { %p3219_p1 = pnand %p3217_p0, %p3207_p13 }
  0x17   : > { %p3220_p2 = pneg %p3219_p1 }
  0x19   : > { %p3227_p7 = pnand %p3226_p6, %p3220_p2 }
  0x1b   : > { %3230 = shalt.err (!%p3227_p7)
}
  0x1c   : > { %s3298_s28 = smov 2048   ;;  %s3299_s29 = smov 128  }
  0x1d   : > { %3113 = dma.hbm_to_vmem [thread:$0]  (!%p3111_p12), %s4367_s1, 16384, %s129_s26, [#allocation3], %s3298_s28, %s3298_s28, %s3299_s29  }
  0x1e   : > { %154 = sbr.rel (%p3371_p10) target bundleno = 7421 (0x1cfd), region = 32 }
  0x23   : > { %3274 = dma.done.wait (%p3118_p9), [#allocation3], 16384  }
  0x24   : > { %3276 = vsyncadd (%p3118_p9), [#allocation3], 4294950912  ;;  %v3300_v0 = vmov 0.0   ;;  %v296_v1 = vld [vmem:[#allocation2 + $0x388] sm:$0xff]  ;;  %v298_v2 = vld [vmem:[#allocation2 + $0x398] sm:$0xff]  ;;  %p177_p6 = scmp.lt.s32.totalorder %s3343_s16, 1 }
  0x25   : > { %379 = vmatprep.mubr.f32.mxu0 %v3300_v0  ;;  %450 = vmatprep.mubr.f32.mxu1 %v3300_v0  ;;  %v295_v3 = vld [vmem:[#allocation2 + $0x380] sm:$0xff]  ;;  %v297_v4 = vld [vmem:[#allocation2 + $0x390] sm:$0xff]  ;;  %v280_v5 = vld [vmem:[#allocation2 + $0x308] sm:$0xff]  ;;  %vm311_vm0 = vcmask 523264   ;;  %s174_s29 = sand.u32 1, %s3287_s13   ;;  %s3057_s4 = sshll.u32 %s3343_s16, 7 }
  0x26   : > { %331 = vmatprep.subr.mxu0 %v296_v1  ;;  %402 = vmatprep.subr.mxu1 %v298_v2  ;;  %v282_v6 = vld [vmem:[#allocation2 + $0x318] sm:$0xff]  ;;  %v279_v7 = vld [vmem:[#allocation2 + $0x300] sm:$0xff]  ;;  %v281_v8 = vld [vmem:[#allocation2 + $0x310] sm:$0xff]  ;;  %s3394_s5 = scalar_select %p177_p6, %s3343_s16, 1 }
  0x27   : > { %332 = vmatpush1.msra.mxu0 %v295_v3  ;;  %403 = vmatpush1.msra.mxu1 %v297_v4  ;;  %v264_v9 = vld [vmem:[#allocation2 + $0x288] sm:$0xff]  ;;  %v266_v10 = vld [vmem:[#allocation2 + $0x298] sm:$0xff]  ;;  %v263_v11 = vld [vmem:[#allocation2 + $0x280] sm:$0xff]  ;;  %s2950_s30 = sshll.u32 %s174_s29, 3  ;;  %s2860_s10 = scalar_lea.sflag [#allocation4], %s174_s29 }
  0x28   : > { %333 = vmatprep.subr.mxu0 %v280_v5  ;;  %404 = vmatprep.subr.mxu1 %v282_v6  ;;  %v265_v12 = vld [vmem:[#allocation2 + $0x290] sm:$0xff]  ;;  %v248_v13 = vld [vmem:[#allocation2 + $0x208] sm:$0xff]  ;;  %v250_v14 = vld [vmem:[#allocation2 + $0x218] sm:$0xff]  ;;  %s2951_s6 = sshll.u32 %s3394_s5, 3  ;;  %s176_s5 = scalar_lea.vmem [#allocation5], %s2950_s30 }
  0x29   : > { %334 = vmatpush1.msra.mxu0 %v279_v7  ;;  %405 = vmatpush1.msra.mxu1 %v281_v8  ;;  %v247_v15 = vld [vmem:[#allocation2 + $0x200] sm:$0xff]  ;;  %v249_v16 = vld [vmem:[#allocation2 + $0x210] sm:$0xff]  ;;  %v232_v17 = vld [vmem:[#allocation2 + $0x188] sm:$0xff]  ;;  %s180_s9 = scalar_lea.vmem %s4366_s0, %s2951_s6  ;;  %s2873_s6 = sshll.u32 %s176_s5, 4  ;;  %s2874_s6 = int_to_ptr.vmem [resolvable:$true] %s2873_s6 }
  0x2a   : > { %335 = vmatprep.subr.mxu0 %v264_v9  ;;  %406 = vmatprep.subr.mxu1 %v266_v10  ;;  %v234_v18 = vld [vmem:[#allocation2 + $0x198] sm:$0xff]  ;;  %v231_v19 = vld [vmem:[#allocation2 + $0x180] sm:$0xff]  ;;  %v233_v20 = vld [vmem:[#allocation2 + $0x190] sm:$0xff]  ;;  %s3231_s11 = scalar_lea.vmem %s2874_s6, 128  ;;  %s3301_s16 = smov [#allocation5]  }
  0x2b   : > { %336 = vmatpush1.msra.mxu0 %v263_v11  ;;  %407 = vmatpush1.msra.mxu1 %v265_v12  ;;  %v216_v21 = vld [vmem:[#allocation2 + $0x108] sm:$0xff]  ;;  %v218_v22 = vld [vmem:[#allocation2 + $0x118] sm:$0xff]  ;;  %v215_v23 = vld [vmem:[#allocation2 + $0x100] sm:$0xff]  ;;  %p3232_p8 = scmp.ne.s32.totalorder %s2874_s6, %s3231_s11  ;;  %s3235_s17 = sshll.u32 %s3301_s16, 4  ;;  %s3236_s17 = int_to_ptr.vmem [resolvable:$false] %s3235_s17 }
  0x2c   : > { %337 = vmatprep.subr.mxu0 %v248_v13  ;;  %408 = vmatprep.subr.mxu1 %v250_v14  ;;  %v217_v24 = vld [vmem:[#allocation2 + $0x110] sm:$0xff]  ;;  %v200_v25 = vld [vmem:[#allocation2 + $0x88] sm:$0xff]  ;;  %v202_v26 = vld [vmem:[#allocation2 + $0x98] sm:$0xff]  ;;  %s3237_s19 = scalar_lea.vmem %s3236_s17, 256  ;;  %p3238_p11 = scmp.lt.s32.totalorder %s2874_s6, %s3236_s17 }
  0x2d   : > { %338 = vmatpush1.msra.mxu0 %v247_v15  ;;  %409 = vmatpush1.msra.mxu1 %v249_v16  ;;  %v199_v27 = vld [vmem:[#allocation2 + $0x80] sm:$0xff]  ;;  %v201_v28 = vld [vmem:[#allocation2 + $0x90] sm:$0xff]  ;;  %v184_v29 = vld [vmem:[#allocation2 + $0x8] sm:$0xff]  ;;  %p3233_p9 = pnand %p3232_p8, %p3360_p5  ;;  %p3239_p12 = scmp.lt.s32.totalorder %s3237_s19, %s3231_s11 }
  0x2e   : > { %339 = vmatprep.subr.mxu0 %v232_v17  ;;  %410 = vmatprep.subr.mxu1 %v234_v18  ;;  %v186_v30 = vld [vmem:[#allocation2 + $0x18] sm:$0xff]  ;;  %v183_v31 = vld [vmem:[#allocation2] sm:$0xff]  ;;  %v185_v32 = vld [vmem:[#allocation2 + $0x10] sm:$0xff] }
  0x2f   : > { %340 = vmatpush1.msra.mxu0 %v231_v19  ;;  %411 = vmatpush1.msra.mxu1 %v233_v20  ;;  %v3400_v33 = vld [vmem:[%s180_s9] sm:$0xff]  ;;  %v300_v34 = vld [vmem:[#allocation2 + $0x3a8] sm:$0xff]  ;;  %v302_v35 = vld [vmem:[#allocation2 + $0x3b8] sm:$0xff]  ;;  %s4331_s9 = scalar_lea.hbm %s4369_s3, %s3057_s4  ;;  %p3234_p10 = pneg %p3233_p9 }
  0x30   : > { %341 = vmatprep.subr.mxu0 %v216_v21  ;;  %412 = vmatprep.subr.mxu1 %v218_v22  ;;  %v299_v36 = vld [vmem:[#allocation2 + $0x3a0] sm:$0xff]  ;;  %v301_v37 = vld [vmem:[#allocation2 + $0x3b0] sm:$0xff]  ;;  %v284_v38 = vld [vmem:[#allocation2 + $0x328] sm:$0xff]  ;;  %p3240_p13 = por %p3239_p12, %p3238_p11 }
  0x31   : > { %342 = vmatpush1.msra.mxu0 %v215_v23  ;;  %413 = vmatpush1.msra.mxu1 %v217_v24  ;;  %v286_v39 = vld [vmem:[#allocation2 + $0x338] sm:$0xff]  ;;  %v283_v40 = vld [vmem:[#allocation2 + $0x320] sm:$0xff]  ;;  %v285_v41 = vld [vmem:[#allocation2 + $0x330] sm:$0xff] }
  0x32   : > { %343 = vmatprep.subr.mxu0 %v200_v25  ;;  %414 = vmatprep.subr.mxu1 %v202_v26  ;;  %v268_v42 = vld [vmem:[#allocation2 + $0x2a8] sm:$0xff]  ;;  %v270_v43 = vld [vmem:[#allocation2 + $0x2b8] sm:$0xff]  ;;  %v267_v44 = vld [vmem:[#allocation2 + $0x2a0] sm:$0xff]  ;;  %p3241_p0 = pnand %p3240_p13, %p3234_p10 }
  0x33   : > { %344 = vmatpush1.msra.mxu0 %v199_v27  ;;  %415 = vmatpush1.msra.mxu1 %v201_v28  ;;  %v269_v45 = vld [vmem:[#allocation2 + $0x2b0] sm:$0xff]  ;;  %v252_v46 = vld [vmem:[#allocation2 + $0x228] sm:$0xff]  ;;  %v254_v47 = vld [vmem:[#allocation2 + $0x238] sm:$0xff] }
  0x34   : > { %345 = vmatprep.subr.mxu0 %v184_v29  ;;  %416 = vmatprep.subr.mxu1 %v186_v30  ;;  %v251_v48 = vld [vmem:[#allocation2 + $0x220] sm:$0xff]  ;;  %v253_v49 = vld [vmem:[#allocation2 + $0x230] sm:$0xff]  ;;  %v236_v50 = vld [vmem:[#allocation2 + $0x1a8] sm:$0xff] }
  0x35   : > { %346 = vmatpush1.msra.mxu0 %v183_v31  ;;  %417 = vmatpush1.msra.mxu1 %v185_v32  ;;  %v238_v51 = vld [vmem:[#allocation2 + $0x1b8] sm:$0xff]  ;;  %v235_v52 = vld [vmem:[#allocation2 + $0x1a0] sm:$0xff]  ;;  %v237_v53 = vld [vmem:[#allocation2 + $0x1b0] sm:$0xff] }
  0x36   : > { %2952 = vmatmul.mubr.msk.f32.vlgmr.msra.gmra.mxu0 %vm311_vm0, %v3400_v33  ;;  %2953 = vmatmul.mubr.msk.f32.vlgmr.msra.gmra.mxu1 %vm311_vm0, %v3400_v33  ;;  %v220_v54 = vld [vmem:[#allocation2 + $0x128] sm:$0xff]  ;;  %v222_v55 = vld [vmem:[#allocation2 + $0x138] sm:$0xff]  ;;  %v219_v56 = vld [vmem:[#allocation2 + $0x120] sm:$0xff] }
  0x37   : > { %473 = vmatprep.subr.mxu0 %v300_v34  ;;  %544 = vmatprep.subr.mxu1 %v302_v35  ;;  %v221_v57 = vld [vmem:[#allocation2 + $0x130] sm:$0xff]  ;;  %v204_v58 = vld [vmem:[#allocation2 + $0xa8] sm:$0xff]  ;;  %v206_v59 = vld [vmem:[#allocation2 + $0xb8] sm:$0xff] }
  0x38   : > { %474 = vmatpush1.msra.mxu0 %v299_v36  ;;  %545 = vmatpush1.msra.mxu1 %v301_v37  ;;  %v203_v60 = vld [vmem:[#allocation2 + $0xa0] sm:$0xff]  ;;  %v205_v61 = vld [vmem:[#allocation2 + $0xb0] sm:$0xff]  ;;  %v188_v62 = vld [vmem:[#allocation2 + $0x28] sm:$0xff] }
  0x39   : > { %475 = vmatprep.subr.mxu0 %v284_v38  ;;  %546 = vmatprep.subr.mxu1 %v286_v39  ;;  %v190_v63 = vld [vmem:[#allocation2 + $0x38] sm:$0xff]  ;;  %v187_v1 = vld [vmem:[#allocation2 + $0x20] sm:$0xff]  ;;  %v189_v2 = vld [vmem:[#allocation2 + $0x30] sm:$0xff] }
  0x3a   : > { %476 = vmatpush1.msra.mxu0 %v283_v40  ;;  %547 = vmatpush1.msra.mxu1 %v285_v41  ;;  %v304_v3 = vld [vmem:[#allocation2 + $0x3c8] sm:$0xff]  ;;  %v306_v4 = vld [vmem:[#allocation2 + $0x3d8] sm:$0xff]  ;;  %v303_v5 = vld [vmem:[#allocation2 + $0x3c0] sm:$0xff] }
  0x3b   : > { %477 = vmatprep.subr.mxu0 %v268_v42  ;;  %548 = vmatprep.subr.mxu1 %v270_v43  ;;  %v305_v6 = vld [vmem:[#allocation2 + $0x3d0] sm:$0xff]  ;;  %v288_v7 = vld [vmem:[#allocation2 + $0x348] sm:$0xff]  ;;  %v290_v8 = vld [vmem:[#allocation2 + $0x358] sm:$0xff] }
  0x3c   : > { %478 = vmatpush1.msra.mxu0 %v267_v44  ;;  %549 = vmatpush1.msra.mxu1 %v269_v45  ;;  %v287_v9 = vld [vmem:[#allocation2 + $0x340] sm:$0xff]  ;;  %v289_v10 = vld [vmem:[#allocation2 + $0x350] sm:$0xff]  ;;  %v272_v11 = vld [vmem:[#allocation2 + $0x2c8] sm:$0xff] }
  0x3d   : > { %479 = vmatprep.subr.mxu0 %v252_v46  ;;  %550 = vmatprep.subr.mxu1 %v254_v47  ;;  %v274_v12 = vld [vmem:[#allocation2 + $0x2d8] sm:$0xff]  ;;  %v271_v13 = vld [vmem:[#allocation2 + $0x2c0] sm:$0xff]  ;;  %v273_v14 = vld [vmem:[#allocation2 + $0x2d0] sm:$0xff] }
  0x3e   : > { %480 = vmatpush1.msra.mxu0 %v251_v48  ;;  %551 = vmatpush1.msra.mxu1 %v253_v49  ;;  %v256_v15 = vld [vmem:[#allocation2 + $0x248] sm:$0xff]  ;;  %v258_v16 = vld [vmem:[#allocation2 + $0x258] sm:$0xff]  ;;  %v255_v17 = vld [vmem:[#allocation2 + $0x240] sm:$0xff] }
  0x3f   : > { %481 = vmatprep.subr.mxu0 %v236_v50  ;;  %552 = vmatprep.subr.mxu1 %v238_v51  ;;  %v257_v18 = vld [vmem:[#allocation2 + $0x250] sm:$0xff]  ;;  %v240_v19 = vld [vmem:[#allocation2 + $0x1c8] sm:$0xff]  ;;  %v242_v20 = vld [vmem:[#allocation2 + $0x1d8] sm:$0xff] }
  0x40   : > { %482 = vmatpush1.msra.mxu0 %v235_v52  ;;  %553 = vmatpush1.msra.mxu1 %v237_v53  ;;  %v239_v21 = vld [vmem:[#allocation2 + $0x1c0] sm:$0xff]  ;;  %v241_v22 = vld [vmem:[#allocation2 + $0x1d0] sm:$0xff]  ;;  %v224_v23 = vld [vmem:[#allocation2 + $0x148] sm:$0xff] }
  0x41   : > { %483 = vmatprep.subr.mxu0 %v220_v54  ;;  %554 = vmatprep.subr.mxu1 %v222_v55  ;;  %v226_v24 = vld [vmem:[#allocation2 + $0x158] sm:$0xff]  ;;  %v223_v25 = vld [vmem:[#allocation2 + $0x140] sm:$0xff]  ;;  %v225_v26 = vld [vmem:[#allocation2 + $0x150] sm:$0xff] }
  0x42   : > { %484 = vmatpush1.msra.mxu0 %v219_v56  ;;  %555 = vmatpush1.msra.mxu1 %v221_v57  ;;  %v208_v27 = vld [vmem:[#allocation2 + $0xc8] sm:$0xff]  ;;  %v210_v28 = vld [vmem:[#allocation2 + $0xd8] sm:$0xff]  ;;  %v207_v29 = vld [vmem:[#allocation2 + $0xc0] sm:$0xff] }
  0x43   : > { %485 = vmatprep.subr.mxu0 %v204_v58  ;;  %556 = vmatprep.subr.mxu1 %v206_v59  ;;  %v209_v30 = vld [vmem:[#allocation2 + $0xd0] sm:$0xff]  ;;  %v192_v31 = vld [vmem:[#allocation2 + $0x48] sm:$0xff]  ;;  %v194_v32 = vld [vmem:[#allocation2 + $0x58] sm:$0xff] }
  0x44   : > { %486 = vmatpush1.msra.mxu0 %v203_v60  ;;  %557 = vmatpush1.msra.mxu1 %v205_v61  ;;  %v191_v34 = vld [vmem:[#allocation2 + $0x40] sm:$0xff]  ;;  %v193_v35 = vld [vmem:[#allocation2 + $0x50] sm:$0xff]  ;;  %v308_v36 = vld [vmem:[#allocation2 + $0x3e8] sm:$0xff] }
  0x45   : > { %487 = vmatprep.subr.mxu0 %v188_v62  ;;  %558 = vmatprep.subr.mxu1 %v190_v63  ;;  %v310_v37 = vld [vmem:[#allocation2 + $0x3f8] sm:$0xff]  ;;  %v307_v38 = vld [vmem:[#allocation2 + $0x3e0] sm:$0xff]  ;;  %v309_v39 = vld [vmem:[#allocation2 + $0x3f0] sm:$0xff] }
  0x46   : > { %488 = vmatpush1.msra.mxu0 %v187_v1  ;;  %521 = vmatprep.mubr.f32.mxu0 %v3300_v0  ;;  %v292_v40 = vld [vmem:[#allocation2 + $0x368] sm:$0xff]  ;;  %v294_v41 = vld [vmem:[#allocation2 + $0x378] sm:$0xff]  ;;  %v291_v42 = vld [vmem:[#allocation2 + $0x360] sm:$0xff] }
  0x47   : > { %559 = vmatpush1.msra.mxu1 %v189_v2  ;;  %2954 = vmatmul.mubr.msk.f32.vlgmr.msra.gmra.mxu0 %vm311_vm0, %v3400_v33  ;;  %v293_v43 = vld [vmem:[#allocation2 + $0x370] sm:$0xff]  ;;  %v276_v44 = vld [vmem:[#allocation2 + $0x2e8] sm:$0xff]  ;;  %v278_v45 = vld [vmem:[#allocation2 + $0x2f8] sm:$0xff] }
  0x48   : > { %592 = vmatprep.mubr.f32.mxu1 %v3300_v0  ;;  %615 = vmatprep.subr.mxu0 %v304_v3  ;;  %v275_v46 = vld [vmem:[#allocation2 + $0x2e0] sm:$0xff]  ;;  %v277_v47 = vld [vmem:[#allocation2 + $0x2f0] sm:$0xff]  ;;  %v260_v48 = vld [vmem:[#allocation2 + $0x268] sm:$0xff] }
  0x49   : > { %686 = vmatprep.subr.mxu1 %v306_v4  ;;  %2955 = vmatmul.mubr.msk.f32.vlgmr.msra.gmra.mxu1 %vm311_vm0, %v3400_v33  ;;  %v262_v49 = vld [vmem:[#allocation2 + $0x278] sm:$0xff]  ;;  %v259_v50 = vld [vmem:[#allocation2 + $0x260] sm:$0xff]  ;;  %v261_v51 = vld [vmem:[#allocation2 + $0x270] sm:$0xff] }
  0x4a   : > { %616 = vmatpush1.msra.mxu0 %v303_v5  ;;  %687 = vmatpush1.msra.mxu1 %v305_v6  ;;  %v244_v52 = vld [vmem:[#allocation2 + $0x1e8] sm:$0xff]  ;;  %v246_v53 = vld [vmem:[#allocation2 + $0x1f8] sm:$0xff]  ;;  %v243_v54 = vld [vmem:[#allocation2 + $0x1e0] sm:$0xff] }
  0x4b   : > { %617 = vmatprep.subr.mxu0 %v288_v7  ;;  %688 = vmatprep.subr.mxu1 %v290_v8  ;;  %v245_v55 = vld [vmem:[#allocation2 + $0x1f0] sm:$0xff]  ;;  %v228_v56 = vld [vmem:[#allocation2 + $0x168] sm:$0xff]  ;;  %v230_v57 = vld [vmem:[#allocation2 + $0x178] sm:$0xff] }
  0x4c   : > { %618 = vmatpush1.msra.mxu0 %v287_v9  ;;  %689 = vmatpush1.msra.mxu1 %v289_v10  ;;  %v227_v58 = vld [vmem:[#allocation2 + $0x160] sm:$0xff]  ;;  %v229_v59 = vld [vmem:[#allocation2 + $0x170] sm:$0xff]  ;;  %v212_v60 = vld [vmem:[#allocation2 + $0xe8] sm:$0xff] }
  0x4d   : > { %619 = vmatprep.subr.mxu0 %v272_v11  ;;  %690 = vmatprep.subr.mxu1 %v274_v12  ;;  %v214_v61 = vld [vmem:[#allocation2 + $0xf8] sm:$0xff]  ;;  %v211_v62 = vld [vmem:[#allocation2 + $0xe0] sm:$0xff]  ;;  %v213_v63 = vld [vmem:[#allocation2 + $0xf0] sm:$0xff] }
  0x4e   : > { %620 = vmatpush1.msra.mxu0 %v271_v13  ;;  %691 = vmatpush1.msra.mxu1 %v273_v14  ;;  %v196_v1 = vld [vmem:[#allocation2 + $0x68] sm:$0xff]  ;;  %v198_v2 = vld [vmem:[#allocation2 + $0x78] sm:$0xff]  ;;  %v195_v3 = vld [vmem:[#allocation2 + $0x60] sm:$0xff] }
  0x4f   : > { %621 = vmatprep.subr.mxu0 %v256_v15  ;;  %692 = vmatprep.subr.mxu1 %v258_v16  ;;  %v197_v4 = vld [vmem:[#allocation2 + $0x70] sm:$0xff] }
  0x50   : > { %622 = vmatpush1.msra.mxu0 %v255_v17  ;;  %693 = vmatpush1.msra.mxu1 %v257_v18 }
  0x51   : > { %623 = vmatprep.subr.mxu0 %v240_v19  ;;  %694 = vmatprep.subr.mxu1 %v242_v20 }
  0x52   : > { %624 = vmatpush1.msra.mxu0 %v239_v21  ;;  %695 = vmatpush1.msra.mxu1 %v241_v22 }
  0x53   : > { %625 = vmatprep.subr.mxu0 %v224_v23  ;;  %696 = vmatprep.subr.mxu1 %v226_v24 }
  0x54   : > { %626 = vmatpush1.msra.mxu0 %v223_v25  ;;  %697 = vmatpush1.msra.mxu1 %v225_v26 }
  0x55   : > { %627 = vmatprep.subr.mxu0 %v208_v27  ;;  %698 = vmatprep.subr.mxu1 %v210_v28 }
  0x56   : > { %628 = vmatpush1.msra.mxu0 %v207_v29  ;;  %699 = vmatpush1.msra.mxu1 %v209_v30 }
  0x57   : > { %629 = vmatprep.subr.mxu0 %v192_v31  ;;  %700 = vmatprep.subr.mxu1 %v194_v32 }
  0x58   : > { %630 = vmatpush1.msra.mxu0 %v191_v34  ;;  %663 = vmatprep.mubr.f32.mxu0 %v3300_v0 }
  0x59   : > { %701 = vmatpush1.msra.mxu1 %v193_v35  ;;  %734 = vmatprep.mubr.f32.mxu1 %v3300_v0 }
  0x5a   : > { %2956 = vmatmul.mubr.msk.f32.vlgmr.msra.gmra.mxu0 %vm311_vm0, %v3400_v33  ;;  %2957 = vmatmul.mubr.msk.f32.vlgmr.msra.gmra.mxu1 %vm311_vm0, %v3400_v33 }
  0x5b   : > { %757 = vmatprep.subr.mxu0 %v308_v36  ;;  %828 = vmatprep.subr.mxu1 %v310_v37 }
  0x5c   : > { %758 = vmatpush1.msra.mxu0 %v307_v38  ;;  %829 = vmatpush1.msra.mxu1 %v309_v39 }
  0x5d   : > { %759 = vmatprep.subr.mxu0 %v292_v40  ;;  %830 = vmatprep.subr.mxu1 %v294_v41 }
  0x5e   : > { %760 = vmatpush1.msra.mxu0 %v291_v42  ;;  %831 = vmatpush1.msra.mxu1 %v293_v43 }
  0x5f   : > { %761 = vmatprep.subr.mxu0 %v276_v44  ;;  %832 = vmatprep.subr.mxu1 %v278_v45 }
  0x60   : > { %762 = vmatpush1.msra.mxu0 %v275_v46  ;;  %833 = vmatpush1.msra.mxu1 %v277_v47 }
  0x61   : > { %763 = vmatprep.subr.mxu0 %v260_v48  ;;  %834 = vmatprep.subr.mxu1 %v262_v49  ;;  %v911_v49 = vlaneseq }
  0x62   : > { %764 = vmatpush1.msra.mxu0 %v259_v50  ;;  %835 = vmatpush1.msra.mxu1 %v261_v51 }
  0x63   : > { %765 = vmatprep.subr.mxu0 %v244_v52  ;;  %836 = vmatprep.subr.mxu1 %v246_v53  ;;  %v3484_v50 = vand.u32 127, %v911_v49 }
  0x64   : > { %766 = vmatpush1.msra.mxu0 %v243_v54  ;;  %837 = vmatpush1.msra.mxu1 %v245_v55 }
  0x65   : > { %767 = vmatprep.subr.mxu0 %v228_v56  ;;  %838 = vmatprep.subr.mxu1 %v230_v57 }
  0x66   : > { %768 = vmatpush1.msra.mxu0 %v227_v58  ;;  %839 = vmatpush1.msra.mxu1 %v229_v59 }
  0x67   : > { %769 = vmatprep.subr.mxu0 %v212_v60  ;;  %840 = vmatprep.subr.mxu1 %v214_v61 }
  0x68   : > { %770 = vmatpush1.msra.mxu0 %v211_v62  ;;  %841 = vmatpush1.msra.mxu1 %v213_v63 }
  0x69   : > { %771 = vmatprep.subr.mxu0 %v196_v1  ;;  %842 = vmatprep.subr.mxu1 %v198_v2 }
  0x6a   : > { %772 = vmatpush1.msra.mxu0 %v195_v3  ;;  %805 = vmatprep.mubr.f32.mxu0 %v3300_v0 }
  0x6b   : > { %843 = vmatpush1.msra.mxu1 %v197_v4  ;;  %876 = vmatprep.mubr.f32.mxu1 %v3300_v0 }
  0x6c   : > { %2958 = vmatmul.mubr.msk.f32.vlgmr.msra.gmra.mxu0 %vm311_vm0, %v3400_v33  ;;  %2959 = vmatmul.mubr.msk.f32.vlgmr.msra.gmra.mxu1 %vm311_vm0, %v3400_v33 }
  0xf6   : > { %v3424_v5 = vpop.f32.mrf.mxu0  ;;  %v3426_v6 = vpop.f32.mrf.mxu1 }
  0xf7   : > { %v883_v9 = vmul.f32 -0.631446, %v3424_v5  ;;  %v884_v10 = vmul.f32 0.37956515, %v3426_v6 }
  0xf8   : > { %v3428_v7 = vpop.f32.mrf.mxu0  ;;  %v3430_v8 = vpop.f32.mrf.mxu1 }
  0xf9   : > { %v890_v11 = vmul.f32 -0.631446, %v3428_v7  ;;  %v891_v12 = vmul.f32 0.37956515, %v3430_v8  ;;  %v885_v14 = vadd.f32 %v884_v10, %v883_v9 }
  0xfb   : > { %v892_v17 = vadd.f32 %v891_v12, %v890_v11 }
 0x107   : > { %v3436_v13 = vpop.f32.mrf.mxu0 }
 0x108   : > { %v886_v33 = vmul.f32 0.66557574, %v3436_v13 }
 0x109   : > { %v3439_v15 = vpop.f32.mrf.mxu1  ;;  %v3441_v16 = vpop.f32.mrf.mxu0 }
 0x10a   : > { %v887_v18 = vadd.f32 %v886_v33, %v885_v14  ;;  %v888_v19 = vmul.f32 0.119227335, %v3439_v15  ;;  %v893_v20 = vmul.f32 0.66557574, %v3441_v16 }
 0x10b   : > { %v3445_v21 = vpop.f32.mrf.mxu1 }
 0x10c   : > { %v3447_v22 = vadd.f32 %v888_v19, %v887_v18  ;;  %v894_v23 = vadd.f32 %v893_v20, %v892_v17  ;;  %v895_v24 = vmul.f32 0.119227335, %v3445_v21 }
 0x10e   : > { %913 = vmax.xlane.f32.xlu0 %v3447_v22  ;;  %v3451_v25 = vadd.f32 %v895_v24, %v894_v23 }
 0x112   : > { %915 = vmax.xlane.f32.xlu0 %v3451_v25 }
 0x11a   : > { %v3454_v26 = vpop.f32.mrf.mxu0  ;;  %v3456_v27 = vpop.f32.mrf.mxu1 }
 0x11b   : > { %v897_v35 = vmul.f32 0.48962623, %v3454_v26  ;;  %v898_v36 = vmul.f32 0.37361714, %v3456_v27 }
 0x11c   : > { %v3458_v28 = vpop.f32.mrf.mxu0  ;;  %v3460_v29 = vpop.f32.mrf.mxu1 }
 0x11d   : > { %v904_v30 = vmul.f32 0.48962623, %v3458_v28  ;;  %v905_v31 = vmul.f32 0.37361714, %v3460_v29  ;;  %v899_v42 = vadd.f32 %v898_v36, %v897_v35 }
 0x11f   : > { %v906_v39 = vadd.f32 %v905_v31, %v904_v30 }
 0x12c   : > { %v3464_v32 = vpop.f32.mrf.mxu0  ;;  %v3466_v34 = vpop.f32.mrf.mxu1 }
 0x12d   : > { %v900_v40 = vmul.f32 -0.20876196, %v3464_v32  ;;  %v902_v46 = vmul.f32 0.7596676, %v3466_v34 }
 0x12e   : > { %v3470_v37 = vpop.f32.mrf.mxu0  ;;  %v3472_v38 = vpop.f32.mrf.mxu1 }
 0x12f   : > { %v907_v41 = vmul.f32 -0.20876196, %v3470_v37  ;;  %v909_v44 = vmul.f32 0.7596676, %v3472_v38  ;;  %v901_v45 = vadd.f32 %v900_v40, %v899_v42 }
 0x131   : > { %v908_v43 = vadd.f32 %v907_v41, %v906_v39  ;;  %v3481_v48 = vadd.f32 %v902_v46, %v901_v45 }
 0x133   : > { %v3478_v47 = vadd.f32 %v909_v44, %v908_v43 }
 0x135   : > { %919 = vmax.xlane.f32.xlu1 %v3478_v47 }
 0x139   : > { %917 = vmax.xlane.f32.xlu1 %v3481_v48 }
 0x197   : > { %v914_v51 = vpop.xlane.xlu0 %913 }
 0x198   : > { %vm921_vm1 = vcmp.eq.f32.partialorder %v3447_v22, %v914_v51 }
 0x199   : > { %v925_v52 = vsel %vm921_vm1, %v3484_v50, 128 }
 0x19a   : > { %v930_v53 = vshra.s32 %v925_v52, 16  ;;  %v929_v4 = vand.u32 65535, %v925_v52 }
 0x19b   : > { %v916_v54 = vpop.xlane.xlu0 %915 }
 0x19c   : > { %vm922_vm2 = vcmp.eq.f32.partialorder %v3451_v25, %v916_v54  ;;  %v932_v55 = vcvt.s32.f32 %v930_v53  ;;  %v931_v10 = vcvt.s32.f32 %v929_v4 }
 0x19d   : > { %v926_v56 = vsel %vm922_vm2, %v3484_v50, 128 }
 0x19e   : > { %933 = vmin.xlane.f32.xlu0 %v932_v55  ;;  %v944_v57 = vshra.s32 %v926_v56, 16  ;;  %v943_v11 = vand.u32 65535, %v926_v56 }
 0x1a0   : > { %v946_v58 = vcvt.s32.f32 %v944_v57  ;;  %v945_v33 = vcvt.s32.f32 %v943_v11 }
 0x1a2   : > { %947 = vmin.xlane.f32.xlu1 %v946_v58 }
 0x1be   : > { %v920_v59 = vpop.xlane.xlu1 %919 }
 0x1bf   : > { %vm924_vm3 = vcmp.eq.f32.partialorder %v3478_v47, %v920_v59 }
 0x1c0   : > { %v928_v60 = vsel %vm924_vm3, %v3484_v50, 128 }
 0x1c1   : > { %v972_v61 = vshra.s32 %v928_v60, 16  ;;  %v971_v18 = vand.u32 65535, %v928_v60 }
 0x1c2   : > { %v918_v62 = vpop.xlane.xlu1 %917 }
 0x1c3   : > { %vm923_vm4 = vcmp.eq.f32.partialorder %v3481_v48, %v918_v62  ;;  %v974_v63 = vcvt.s32.f32 %v972_v61  ;;  %v973_v20 = vcvt.s32.f32 %v971_v18 }
 0x1c4   : > { %v927_v1 = vsel %vm923_vm4, %v3484_v50, 128 }
 0x1c5   : > { %975 = vmin.xlane.f32.xlu0 %v974_v63  ;;  %v958_v2 = vshra.s32 %v927_v1, 16  ;;  %v957_v23 = vand.u32 65535, %v927_v1 }
 0x1c7   : > { %v960_v3 = vcvt.s32.f32 %v958_v2  ;;  %v959_v31 = vcvt.s32.f32 %v957_v23 }
 0x1c9   : > { %961 = vmin.xlane.f32.xlu1 %v960_v3 }
 0x227   : > { %v934_v9 = vpop.xlane.xlu0 %933 }
 0x228   : > { %vm935_vm5 = vcmp.eq.f32.partialorder %v932_v55, %v934_v9  ;;  %v940_v36 = vcvt.f32.s32 %v934_v9 }
 0x229   : > { %v936_v12 = vsel %vm935_vm5, %v931_v10, inf }
 0x22a   : > { %937 = vmin.xlane.f32.xlu0 %v936_v12  ;;  %v941_v40 = vshll.u32 %v940_v36, 16 }
 0x22b   : > { %v948_v14 = vpop.xlane.xlu1 %947 }
 0x22c   : > { %vm949_vm6 = vcmp.eq.f32.partialorder %v946_v58, %v948_v14  ;;  %v954_v41 = vcvt.f32.s32 %v948_v14 }
 0x22d   : > { %v950_v17 = vsel %vm949_vm6, %v945_v33, inf }
 0x22e   : > { %951 = vmin.xlane.f32.xlu1 %v950_v17  ;;  %v955_v45 = vshll.u32 %v954_v41, 16 }
 0x24e   : > { %v976_v19 = vpop.xlane.xlu0 %975 }
 0x24f   : > { %vm977_vm7 = vcmp.eq.f32.partialorder %v974_v63, %v976_v19  ;;  %v982_v55 = vcvt.f32.s32 %v976_v19 }
 0x250   : > { %v978_v24 = vsel %vm977_vm7, %v973_v20, inf }
 0x251   : > { %979 = vmin.xlane.f32.xlu0 %v978_v24  ;;  %v983_v57 = vshll.u32 %v982_v55, 16 }
 0x252   : > { %v962_v30 = vpop.xlane.xlu1 %961 }
 0x253   : > { %vm963_vm8 = vcmp.eq.f32.partialorder %v960_v3, %v962_v30  ;;  %v968_v58 = vcvt.f32.s32 %v962_v30 }
 0x254   : > { %v964_v35 = vsel %vm963_vm8, %v959_v31, inf }
 0x255   : > { %965 = vmin.xlane.f32.xlu1 %v964_v35  ;;  %v969_v61 = vshll.u32 %v968_v58, 16 }
 0x2b3   : > { %v938_v39 = vpop.xlane.xlu0 %937 }
 0x2b4   : > { %v939_v42 = vcvt.f32.s32 %v938_v39 }
 0x2b6   : > { %v942_v43 = vadd.s32 %v941_v40, %v939_v42 }
 0x2b7   : > { %v952_v44 = vpop.xlane.xlu1 %951 }
 0x2b8   : > { %v953_v46 = vcvt.f32.s32 %v952_v44  ;;  %vm985_vm9 = vcmp.eq.s32.totalorder %v3484_v50, %v942_v43 }
 0x2b9   : > { %v3496_v49 = vsel %vm985_vm9, 1.0, %v3300_v0 }
 0x2ba   : > { %v956_v51 = vadd.s32 %v955_v45, %v953_v46  ;;  %vm1001_vm10 = vcmp.gt.f32.partialorder %v3496_v49, 0.0 }
 0x2bb   : > { %v3500_v52 = vsel %vm1001_vm10, -inf, %v3447_v22 }
 0x2bc   : > { %1009 = vmax.xlane.f32.xlu0 %v3500_v52  ;;  %vm986_vm11 = vcmp.eq.s32.totalorder %v3484_v50, %v956_v51 }
 0x2bd   : > { %v3505_v53 = vsel %vm986_vm11, 1.0, %v3300_v0 }
 0x2be   : > { %vm1002_vm12 = vcmp.gt.f32.partialorder %v3505_v53, 0.0 }
 0x2bf   : > { %v3509_v54 = vsel %vm1002_vm12, -inf, %v3451_v25 }
 0x2c0   : > { %1011 = vmax.xlane.f32.xlu1 %v3509_v54 }
 0x2da   : > { %v980_v56 = vpop.xlane.xlu0 %979 }
 0x2db   : > { %v981_v22 = vcvt.f32.s32 %v980_v56 }
 0x2dd   : > { %v984_v59 = vadd.s32 %v983_v57, %v981_v22 }
 0x2de   : > { %v966_v60 = vpop.xlane.xlu1 %965 }
 0x2df   : > { %v967_v62 = vcvt.f32.s32 %v966_v60  ;;  %vm988_vm13 = vcmp.eq.s32.totalorder %v3484_v50, %v984_v59 }
 0x2e0   : > { %v3514_v63 = vsel %vm988_vm13, 1.0, %v3300_v0 }
 0x2e1   : > { %v970_v1 = vadd.s32 %v969_v61, %v967_v62  ;;  %vm1004_vm14 = vcmp.gt.f32.partialorder %v3514_v63, 0.0 }
 0x2e2   : > { %v3518_v25 = vsel %vm1004_vm14, -inf, %v3478_v47 }
 0x2e3   : > { %1015 = vmax.xlane.f32.xlu0 %v3518_v25  ;;  %vm987_vm15 = vcmp.eq.s32.totalorder %v3484_v50, %v970_v1 }
 0x2e4   : > { %v3523_v2 = vsel %vm987_vm15, 1.0, %v3300_v0 }
 0x2e5   : > { %vm1003_vm0 = vcmp.gt.f32.partialorder %v3523_v2, 0.0 }
 0x2e6   : > { %v3527_v3 = vsel %vm1003_vm0, -inf, %v3481_v48 }
 0x2e7   : > { %1013 = vmax.xlane.f32.xlu1 %v3527_v3 }
 0x345   : > { %v1010_v4 = vpop.xlane.xlu0 %1009 }
 0x346   : > { %vm1017_vm1 = vcmp.eq.f32.partialorder %v3500_v52, %v1010_v4 }
 0x347   : > { %v1021_v47 = vsel %vm1017_vm1, %v3484_v50, 128 }
 0x348   : > { %v1026_v9 = vshra.s32 %v1021_v47, 16  ;;  %v1025_v31 = vand.u32 65535, %v1021_v47 }
 0x349   : > { %v1012_v10 = vpop.xlane.xlu1 %1011 }
 0x34a   : > { %vm1018_vm2 = vcmp.eq.f32.partialorder %v3509_v54, %v1012_v10  ;;  %v1028_v11 = vcvt.s32.f32 %v1026_v9  ;;  %v1027_v36 = vcvt.s32.f32 %v1025_v31 }
 0x34b   : > { %v1022_v12 = vsel %vm1018_vm2, %v3484_v50, 128 }
 0x34c   : > { %1029 = vmin.xlane.f32.xlu0 %v1028_v11  ;;  %v1040_v14 = vshra.s32 %v1022_v12, 16  ;;  %v1039_v39 = vand.u32 65535, %v1022_v12 }
 0x34e   : > { %v1042_v33 = vcvt.s32.f32 %v1040_v14  ;;  %v1041_v42 = vcvt.s32.f32 %v1039_v39 }
 0x350   : > { %1043 = vmin.xlane.f32.xlu1 %v1042_v33 }
 0x36c   : > { %v1016_v48 = vpop.xlane.xlu0 %1015 }
 0x36d   : > { %vm1020_vm3 = vcmp.eq.f32.partialorder %v3518_v25, %v1016_v48 }
 0x36e   : > { %v1024_v17 = vsel %vm1020_vm3, %v3484_v50, 128 }
 0x36f   : > { %v1068_v18 = vshra.s32 %v1024_v17, 16  ;;  %v1067_v44 = vand.u32 65535, %v1024_v17 }
 0x370   : > { %v1014_v19 = vpop.xlane.xlu1 %1013 }
 0x371   : > { %vm1019_vm4 = vcmp.eq.f32.partialorder %v3527_v3, %v1014_v19  ;;  %v1070_v20 = vcvt.s32.f32 %v1068_v18  ;;  %v1069_v46 = vcvt.s32.f32 %v1067_v44 }
 0x372   : > { %v1023_v23 = vsel %vm1019_vm4, %v3484_v50, 128 }
 0x373   : > { %1071 = vmin.xlane.f32.xlu0 %v1070_v20  ;;  %v1054_v24 = vshra.s32 %v1023_v23, 16  ;;  %v1053_v51 = vand.u32 65535, %v1023_v23 }
 0x375   : > { %v1056_v30 = vcvt.s32.f32 %v1054_v24  ;;  %v1055_v57 = vcvt.s32.f32 %v1053_v51 }
 0x377   : > { %1057 = vmin.xlane.f32.xlu1 %v1056_v30 }
 0x3d5   : > { %v1030_v35 = vpop.xlane.xlu0 %1029 }
 0x3d6   : > { %vm1031_vm5 = vcmp.eq.f32.partialorder %v1028_v11, %v1030_v35  ;;  %v1036_v22 = vcvt.f32.s32 %v1030_v35 }
 0x3d7   : > { %v1032_v40 = vsel %vm1031_vm5, %v1027_v36, inf }
 0x3d8   : > { %1033 = vmin.xlane.f32.xlu0 %v1032_v40  ;;  %v1037_v60 = vshll.u32 %v1036_v22, 16 }
 0x3d9   : > { %v1044_v41 = vpop.xlane.xlu1 %1043 }
 0x3da   : > { %vm1045_vm6 = vcmp.eq.f32.partialorder %v1042_v33, %v1044_v41  ;;  %v1050_v61 = vcvt.f32.s32 %v1044_v41 }
 0x3db   : > { %v1046_v43 = vsel %vm1045_vm6, %v1041_v42, inf }
 0x3dc   : > { %1047 = vmin.xlane.f32.xlu1 %v1046_v43  ;;  %v1051_v47 = vshll.u32 %v1050_v61, 16 }
 0x3fc   : > { %v1072_v45 = vpop.xlane.xlu0 %1071 }
 0x3fd   : > { %vm1073_vm7 = vcmp.eq.f32.partialorder %v1070_v20, %v1072_v45  ;;  %v1078_v48 = vcvt.f32.s32 %v1072_v45 }
 0x3fe   : > { %v1074_v55 = vsel %vm1073_vm7, %v1069_v46, inf }
 0x3ff   : > { %1075 = vmin.xlane.f32.xlu0 %v1074_v55  ;;  %v1079_v18 = vshll.u32 %v1078_v48, 16 }
 0x400   : > { %v1058_v56 = vpop.xlane.xlu1 %1057 }
 0x401   : > { %vm1059_vm8 = vcmp.eq.f32.partialorder %v1056_v30, %v1058_v56  ;;  %v1064_v19 = vcvt.f32.s32 %v1058_v56 }
 0x402   : > { %v1060_v58 = vsel %vm1059_vm8, %v1055_v57, inf }
 0x403   : > { %1061 = vmin.xlane.f32.xlu1 %v1060_v58  ;;  %v1065_v24 = vshll.u32 %v1064_v19, 16 }
 0x461   : > { %v1034_v59 = vpop.xlane.xlu0 %1033 }
 0x462   : > { %v1035_v62 = vcvt.f32.s32 %v1034_v59 }
 0x464   : > { %v1038_v1 = vadd.s32 %v1037_v60, %v1035_v62 }
 0x465   : > { %v1048_v4 = vpop.xlane.xlu1 %1047 }
 0x466   : > { %v1049_v9 = vcvt.f32.s32 %v1048_v4  ;;  %vm1081_vm9 = vcmp.eq.s32.totalorder %v3484_v50, %v1038_v1 }
 0x467   : > { %v3540_v10 = vsel %vm1081_vm9, 1.0, %v3300_v0 }
 0x468   : > { %v1052_v11 = vadd.s32 %v1051_v47, %v1049_v9  ;;  %vm1097_vm10 = vcmp.gt.f32.partialorder %v3540_v10, 0.0 }
 0x469   : > { %v3544_v12 = vsel %vm1097_vm10, -inf, %v3500_v52 }
 0x46a   : > { %1105 = vmax.xlane.f32.xlu0 %v3544_v12  ;;  %vm1082_vm11 = vcmp.eq.s32.totalorder %v3484_v50, %v1052_v11 }
 0x46b   : > { %v3549_v14 = vsel %vm1082_vm11, 1.0, %v3300_v0 }
 0x46c   : > { %vm1098_vm12 = vcmp.gt.f32.partialorder %v3549_v14, 0.0 }
 0x46d   : > { %v3553_v33 = vsel %vm1098_vm12, -inf, %v3509_v54 }
 0x46e   : > { %1107 = vmax.xlane.f32.xlu1 %v3553_v33 }
 0x488   : > { %v1076_v17 = vpop.xlane.xlu0 %1075 }
 0x489   : > { %v1077_v52 = vcvt.f32.s32 %v1076_v17 }
 0x48b   : > { %v1080_v20 = vadd.s32 %v1079_v18, %v1077_v52 }
 0x48c   : > { %v1062_v23 = vpop.xlane.xlu1 %1061 }
 0x48d   : > { %v1063_v30 = vcvt.f32.s32 %v1062_v23  ;;  %vm1084_vm13 = vcmp.eq.s32.totalorder %v3484_v50, %v1080_v20 }
 0x48e   : > { %v3558_v31 = vsel %vm1084_vm13, 1.0, %v3300_v0 }
 0x48f   : > { %v1066_v35 = vadd.s32 %v1065_v24, %v1063_v30  ;;  %vm1100_vm14 = vcmp.gt.f32.partialorder %v3558_v31, 0.0 }
 0x490   : > { %v3562_v54 = vsel %vm1100_vm14, -inf, %v3518_v25 }
 0x491   : > { %1111 = vmax.xlane.f32.xlu0 %v3562_v54  ;;  %vm1083_vm15 = vcmp.eq.s32.totalorder %v3484_v50, %v1066_v35 }
 0x492   : > { %v3567_v36 = vsel %vm1083_vm15, 1.0, %v3300_v0 }
 0x493   : > { %vm1099_vm0 = vcmp.gt.f32.partialorder %v3567_v36, 0.0 }
 0x494   : > { %v3571_v39 = vsel %vm1099_vm0, -inf, %v3527_v3 }
 0x495   : > { %1109 = vmax.xlane.f32.xlu1 %v3571_v39 }
 0x4f3   : > { %v1106_v40 = vpop.xlane.xlu0 %1105 }
 0x4f4   : > { %vm1113_vm1 = vcmp.eq.f32.partialorder %v3544_v12, %v1106_v40 }
 0x4f5   : > { %v1117_v25 = vsel %vm1113_vm1, %v3484_v50, 128 }
 0x4f6   : > { %v1122_v41 = vshra.s32 %v1117_v25, 16  ;;  %v1121_v60 = vand.u32 65535, %v1117_v25 }
 0x4f7   : > { %v1108_v42 = vpop.xlane.xlu1 %1107 }
 0x4f8   : > { %vm1114_vm2 = vcmp.eq.f32.partialorder %v3553_v33, %v1108_v42  ;;  %v1124_v43 = vcvt.s32.f32 %v1122_v41  ;;  %v1123_v62 = vcvt.s32.f32 %v1121_v60 }
 0x4f9   : > { %v1118_v44 = vsel %vm1114_vm2, %v3484_v50, 128 }
 0x4fa   : > { %1125 = vmin.xlane.f32.xlu0 %v1124_v43  ;;  %v1136_v45 = vshra.s32 %v1118_v44, 16  ;;  %v1135_v1 = vand.u32 65535, %v1118_v44  ;;  %v1093_v44 = vadd.f32 %v3540_v10, %v3496_v49 }
 0x4fc   : > { %v1138_v46 = vcvt.s32.f32 %v1136_v45  ;;  %v1137_v9 = vcvt.s32.f32 %v1135_v1 }
 0x4fe   : > { %1139 = vmin.xlane.f32.xlu1 %v1138_v46 }
 0x51a   : > { %v1112_v3 = vpop.xlane.xlu0 %1111 }
 0x51b   : > { %vm1116_vm3 = vcmp.eq.f32.partialorder %v3562_v54, %v1112_v3 }
 0x51c   : > { %v1120_v51 = vsel %vm1116_vm3, %v3484_v50, 128 }
 0x51d   : > { %v1164_v55 = vshra.s32 %v1120_v51, 16  ;;  %v1163_v48 = vand.u32 65535, %v1120_v51 }
 0x51e   : > { %v1110_v56 = vpop.xlane.xlu1 %1109 }
 0x51f   : > { %vm1115_vm4 = vcmp.eq.f32.partialorder %v3571_v39, %v1110_v56  ;;  %v1166_v57 = vcvt.s32.f32 %v1164_v55  ;;  %v1165_v18 = vcvt.s32.f32 %v1163_v48  ;;  %v1095_v48 = vadd.f32 %v3567_v36, %v3523_v2 }
 0x520   : > { %v1119_v58 = vsel %vm1115_vm4, %v3484_v50, 128 }
 0x521   : > { %1167 = vmin.xlane.f32.xlu0 %v1166_v57  ;;  %v1150_v22 = vshra.s32 %v1119_v58, 16  ;;  %v1149_v19 = vand.u32 65535, %v1119_v58 }
 0x523   : > { %v1152_v59 = vcvt.s32.f32 %v1150_v22  ;;  %v1151_v23 = vcvt.s32.f32 %v1149_v19 }
 0x525   : > { %1153 = vmin.xlane.f32.xlu1 %v1152_v59 }
 0x583   : > { %v1126_v61 = vpop.xlane.xlu0 %1125 }
 0x584   : > { %vm1127_vm5 = vcmp.eq.f32.partialorder %v1124_v43, %v1126_v61  ;;  %v1132_v30 = vcvt.f32.s32 %v1126_v61 }
 0x585   : > { %v1128_v4 = vsel %vm1127_vm5, %v1123_v62, inf  ;;  %v1096_v62 = vadd.f32 %v3558_v31, %v3514_v63 }
 0x586   : > { %1129 = vmin.xlane.f32.xlu0 %v1128_v4  ;;  %v1133_v40 = vshll.u32 %v1132_v30, 16 }
 0x587   : > { %v1140_v47 = vpop.xlane.xlu1 %1139 }
 0x588   : > { %vm1141_vm6 = vcmp.eq.f32.partialorder %v1138_v46, %v1140_v47  ;;  %v1146_v25 = vcvt.f32.s32 %v1140_v47 }
 0x589   : > { %v1142_v11 = vsel %vm1141_vm6, %v1137_v9, inf }
 0x58a   : > { %1143 = vmin.xlane.f32.xlu1 %v1142_v11  ;;  %v1147_v45 = vshll.u32 %v1146_v25, 16 }
 0x5aa   : > { %v1168_v17 = vpop.xlane.xlu0 %1167 }
 0x5ab   : > { %vm1169_vm7 = vcmp.eq.f32.partialorder %v1166_v57, %v1168_v17  ;;  %v1094_v57 = vadd.f32 %v3549_v14, %v3505_v53  ;;  %v1174_v22 = vcvt.f32.s32 %v1168_v17 }
 0x5ac   : > { %v1170_v52 = vsel %vm1169_vm7, %v1165_v18, inf }
 0x5ad   : > { %1171 = vmin.xlane.f32.xlu0 %v1170_v52 }
 0x5ae   : > { %v1154_v20 = vpop.xlane.xlu1 %1153 }
 0x5af   : > { %vm1155_vm8 = vcmp.eq.f32.partialorder %v1152_v59, %v1154_v20  ;;  %v1175_v59 = vshll.u32 %v1174_v22, 16  ;;  %v1160_v60 = vcvt.f32.s32 %v1154_v20 }
 0x5b0   : > { %v1156_v24 = vsel %vm1155_vm8, %v1151_v23, inf }
 0x5b1   : > { %1157 = vmin.xlane.f32.xlu1 %v1156_v24  ;;  %v1161_v1 = vshll.u32 %v1160_v60, 16 }
 0x60f   : > { %v1130_v35 = vpop.xlane.xlu0 %1129 }
 0x610   : > { %v1131_v41 = vcvt.f32.s32 %v1130_v35 }
 0x612   : > { %v1134_v42 = vadd.s32 %v1133_v40, %v1131_v41 }
 0x613   : > { %v1144_v43 = vpop.xlane.xlu1 %1143 }
 0x614   : > { %v1145_v46 = vcvt.f32.s32 %v1144_v43  ;;  %vm1177_vm9 = vcmp.eq.s32.totalorder %v3484_v50, %v1134_v42 }
 0x615   : > { %v2968_v3 = vsel %vm1177_vm9, 1.0, %v3300_v0 }
 0x616   : > { %v1148_v51 = vadd.s32 %v1147_v45, %v1145_v46  ;;  %vm1193_vm10 = vcmp.gt.f32.partialorder %v2968_v3, 0.0  ;;  %v3586_v55 = vadd.f32 %v2968_v3, %v1093_v44 }
 0x617   : > { %v3589_v56 = vsel %vm1193_vm10, -inf, %v3544_v12 }
 0x618   : > { %1201 = vmax.xlane.f32.xlu0 %v3589_v56  ;;  %vm1178_vm11 = vcmp.eq.s32.totalorder %v3484_v50, %v1148_v51 }
 0x619   : > { %v2969_v49 = vsel %vm1178_vm11, 1.0, %v3300_v0 }
 0x61a   : > { %vm1194_vm12 = vcmp.gt.f32.partialorder %v2969_v49, 0.0  ;;  %v3596_v10 = vadd.f32 %v2969_v49, %v1094_v57 }
 0x61b   : > { %v3599_v58 = vsel %vm1194_vm12, -inf, %v3553_v33 }
 0x61c   : > { %1203 = vmax.xlane.f32.xlu1 %v3599_v58 }
 0x636   : > { %v1172_v12 = vpop.xlane.xlu0 %1171 }
 0x637   : > { %v1173_v61 = vcvt.f32.s32 %v1172_v12 }
 0x639   : > { %v1176_v53 = vadd.s32 %v1175_v59, %v1173_v61 }
 0x63a   : > { %v1158_v14 = vpop.xlane.xlu1 %1157 }
 0x63b   : > { %v1159_v4 = vcvt.f32.s32 %v1158_v14  ;;  %vm1180_vm13 = vcmp.eq.s32.totalorder %v3484_v50, %v1176_v53 }
 0x63c   : > { %v2971_v47 = vsel %vm1180_vm13, 1.0, %v3300_v0 }
 0x63d   : > { %v1162_v33 = vadd.s32 %v1161_v1, %v1159_v4  ;;  %vm1196_vm14 = vcmp.gt.f32.partialorder %v2971_v47, 0.0  ;;  %v3606_v9 = vadd.f32 %v2971_v47, %v1096_v62 }
 0x63e   : > { %v3609_v11 = vsel %vm1196_vm14, -inf, %v3562_v54 }
 0x63f   : > { %1207 = vmax.xlane.f32.xlu0 %v3609_v11  ;;  %vm1179_vm15 = vcmp.eq.s32.totalorder %v3484_v50, %v1162_v33 }
 0x640   : > { %v2970_v63 = vsel %vm1179_vm15, 1.0, %v3300_v0 }
 0x641   : > { %vm1195_vm0 = vcmp.gt.f32.partialorder %v2970_v63, 0.0  ;;  %v3616_v31 = vadd.f32 %v2970_v63, %v1095_v48 }
 0x642   : > { %v3619_v17 = vsel %vm1195_vm0, -inf, %v3571_v39 }
 0x643   : > { %1205 = vmax.xlane.f32.xlu1 %v3619_v17 }
 0x6a1   : > { %v1202_v18 = vpop.xlane.xlu0 %1201 }
 0x6a2   : > { %vm1209_vm1 = vcmp.eq.f32.partialorder %v3589_v56, %v1202_v18 }
 0x6a3   : > { %v1213_v54 = vsel %vm1209_vm1, %v3484_v50, 128 }
 0x6a4   : > { %v1218_v2 = vshra.s32 %v1213_v54, 16  ;;  %v1217_v43 = vand.u32 65535, %v1213_v54 }
 0x6a5   : > { %v1204_v36 = vpop.xlane.xlu1 %1203 }
 0x6a6   : > { %vm1210_vm2 = vcmp.eq.f32.partialorder %v3599_v58, %v1204_v36  ;;  %v1220_v19 = vcvt.s32.f32 %v1218_v2  ;;  %v1219_v45 = vcvt.s32.f32 %v1217_v43 }
 0x6a7   : > { %v1214_v52 = vsel %vm1210_vm2, %v3484_v50, 128 }
 0x6a8   : > { %1221 = vmin.xlane.f32.xlu0 %v1220_v19  ;;  %v1232_v20 = vshra.s32 %v1214_v52, 16  ;;  %v1231_v46 = vand.u32 65535, %v1214_v52 }
 0x6aa   : > { %v1234_v23 = vcvt.s32.f32 %v1232_v20  ;;  %v1233_v57 = vcvt.s32.f32 %v1231_v46 }
 0x6ac   : > { %1235 = vmin.xlane.f32.xlu1 %v1234_v23 }
 0x6c8   : > { %v1208_v39 = vpop.xlane.xlu0 %1207 }
 0x6c9   : > { %vm1212_vm3 = vcmp.eq.f32.partialorder %v3609_v11, %v1208_v39 }
 0x6ca   : > { %v1216_v24 = vsel %vm1212_vm3, %v3484_v50, 128 }
 0x6cb   : > { %v1260_v30 = vshra.s32 %v1216_v24, 16  ;;  %v1259_v22 = vand.u32 65535, %v1216_v24 }
 0x6cc   : > { %v1206_v35 = vpop.xlane.xlu1 %1205 }
 0x6cd   : > { %vm1211_vm4 = vcmp.eq.f32.partialorder %v3619_v17, %v1206_v35  ;;  %v1262_v40 = vcvt.s32.f32 %v1260_v30  ;;  %v1261_v59 = vcvt.s32.f32 %v1259_v22 }
 0x6ce   : > { %v1215_v25 = vsel %vm1211_vm4, %v3484_v50, 128 }
 0x6cf   : > { %1263 = vmin.xlane.f32.xlu0 %v1262_v40  ;;  %v1246_v41 = vshra.s32 %v1215_v25, 16  ;;  %v1245_v60 = vand.u32 65535, %v1215_v25 }
 0x6d1   : > { %v1248_v42 = vcvt.s32.f32 %v1246_v41  ;;  %v1247_v14 = vcvt.s32.f32 %v1245_v60 }
 0x6d3   : > { %1249 = vmin.xlane.f32.xlu1 %v1248_v42 }
 0x731   : > { %v1222_v44 = vpop.xlane.xlu0 %1221 }
 0x732   : > { %vm1223_vm5 = vcmp.eq.f32.partialorder %v1220_v19, %v1222_v44  ;;  %v1228_v1 = vcvt.f32.s32 %v1222_v44 }
 0x733   : > { %v1224_v3 = vsel %vm1223_vm5, %v1219_v45, inf }
 0x734   : > { %1225 = vmin.xlane.f32.xlu0 %v1224_v3  ;;  %v1229_v47 = vshll.u32 %v1228_v1, 16 }
 0x735   : > { %v1236_v51 = vpop.xlane.xlu1 %1235 }
 0x736   : > { %vm1237_vm6 = vcmp.eq.f32.partialorder %v1234_v23, %v1236_v51  ;;  %v1242_v33 = vcvt.f32.s32 %v1236_v51 }
 0x737   : > { %v1238_v49 = vsel %vm1237_vm6, %v1233_v57, inf }
 0x738   : > { %1239 = vmin.xlane.f32.xlu1 %v1238_v49  ;;  %v1243_v54 = vshll.u32 %v1242_v33, 16 }
 0x758   : > { %v1264_v12 = vpop.xlane.xlu0 %1263 }
 0x759   : > { %vm1265_vm7 = vcmp.eq.f32.partialorder %v1262_v40, %v1264_v12 }
 0x75a   : > { %v1266_v61 = vsel %vm1265_vm7, %v1261_v59, inf }
 0x75b   : > { %1267 = vmin.xlane.f32.xlu0 %v1266_v61 }
 0x75c   : > { %v1250_v53 = vpop.xlane.xlu1 %1249 }
 0x75d   : > { %vm1251_vm8 = vcmp.eq.f32.partialorder %v1248_v42, %v1250_v53 }
 0x75e   : > { %v1252_v62 = vsel %vm1251_vm8, %v1247_v14, inf }
 0x75f   : > { %1253 = vmin.xlane.f32.xlu1 %v1252_v62 }
 0x7bd   : > { %v1226_v4 = vpop.xlane.xlu0 %1225 }
 0x7be   : > { %v1227_v48 = vcvt.f32.s32 %v1226_v4 }
 0x7c0   : > { %v1230_v63 = vadd.s32 %v1229_v47, %v1227_v48 }
 0x7c1   : > { %v1240_v18 = vpop.xlane.xlu1 %1239 }
 0x7c2   : > { %v1241_v2 = vcvt.f32.s32 %v1240_v18  ;;  %vm1273_vm9 = vcmp.eq.s32.totalorder %v3484_v50, %v1230_v63 }
 0x7c3   : > { %v2972_v36 = vsel %vm1273_vm9, 1.0, %v3300_v0 }
 0x7c4   : > { %v1244_v19 = vadd.s32 %v1243_v54, %v1241_v2  ;;  %vm1289_vm10 = vcmp.gt.f32.partialorder %v2972_v36, 0.0  ;;  %v3633_v52 = vadd.f32 %v2972_v36, %v3586_v55  ;;  %v1270_v55 = vcvt.f32.s32 %v1264_v12 }
 0x7c5   : > { %v3636_v20 = vsel %vm1289_vm10, -inf, %v3589_v56  ;;  %v1256_v56 = vcvt.f32.s32 %v1250_v53 }
 0x7c6   : > { %1297 = vmax.xlane.f32.xlu0 %v3636_v20  ;;  %vm1274_vm11 = vcmp.eq.s32.totalorder %v3484_v50, %v1244_v19  ;;  %v1271_v35 = vshll.u32 %v1270_v55, 16 }
 0x7c7   : > { %v2973_v23 = vsel %vm1274_vm11, 1.0, %v3300_v0  ;;  %v1257_v42 = vshll.u32 %v1256_v56, 16 }
 0x7c8   : > { %vm1290_vm12 = vcmp.gt.f32.partialorder %v2973_v23, 0.0  ;;  %v3642_v39 = vadd.f32 %v2973_v23, %v3596_v10 }
 0x7c9   : > { %v3645_v24 = vsel %vm1290_vm12, -inf, %v3599_v58 }
 0x7ca   : > { %1299 = vmax.xlane.f32.xlu1 %v3645_v24 }
 0x7e4   : > { %v1268_v30 = vpop.xlane.xlu0 %1267 }
 0x7e5   : > { %v1269_v40 = vcvt.f32.s32 %v1268_v30 }
 0x7e7   : > { %v1272_v25 = vadd.s32 %v1271_v35, %v1269_v40 }
 0x7e8   : > { %v1254_v41 = vpop.xlane.xlu1 %1253 }
 0x7e9   : > { %v1255_v43 = vcvt.f32.s32 %v1254_v41  ;;  %vm1276_vm13 = vcmp.eq.s32.totalorder %v3484_v50, %v1272_v25 }
 0x7ea   : > { %v2975_v44 = vsel %vm1276_vm13, 1.0, %v3300_v0 }
 0x7eb   : > { %v1258_v10 = vadd.s32 %v1257_v42, %v1255_v43  ;;  %vm1292_vm14 = vcmp.gt.f32.partialorder %v2975_v44, 0.0  ;;  %v3651_v58 = vadd.f32 %v2975_v44, %v3606_v9 }
 0x7ec   : > { %v3654_v45 = vsel %vm1292_vm14, -inf, %v3609_v11 }
 0x7ed   : > { %1303 = vmax.xlane.f32.xlu0 %v3654_v45  ;;  %vm1275_vm15 = vcmp.eq.s32.totalorder %v3484_v50, %v1258_v10 }
 0x7ee   : > { %v2974_v46 = vsel %vm1275_vm15, 1.0, %v3300_v0 }
 0x7ef   : > { %vm1291_vm0 = vcmp.gt.f32.partialorder %v2974_v46, 0.0  ;;  %v3660_v3 = vadd.f32 %v2974_v46, %v3616_v31 }
 0x7f0   : > { %v3663_v51 = vsel %vm1291_vm0, -inf, %v3619_v17 }
 0x7f1   : > { %1301 = vmax.xlane.f32.xlu1 %v3663_v51 }
 0x84f   : > { %v1298_v9 = vpop.xlane.xlu0 %1297 }
 0x850   : > { %vm1305_vm1 = vcmp.eq.f32.partialorder %v3636_v20, %v1298_v9 }
 0x851   : > { %v1309_v11 = vsel %vm1305_vm1, %v3484_v50, 128 }
 0x852   : > { %v1314_v57 = vshra.s32 %v1309_v11, 16  ;;  %v1313_v47 = vand.u32 65535, %v1309_v11 }
 0x853   : > { %v1300_v49 = vpop.xlane.xlu1 %1299 }
 0x854   : > { %vm1306_vm2 = vcmp.eq.f32.partialorder %v3645_v24, %v1300_v49  ;;  %v1316_v22 = vcvt.s32.f32 %v1314_v57  ;;  %v1315_v48 = vcvt.s32.f32 %v1313_v47 }
 0x855   : > { %v1310_v12 = vsel %vm1306_vm2, %v3484_v50, 128 }
 0x856   : > { %1317 = vmin.xlane.f32.xlu0 %v1316_v22  ;;  %v1328_v31 = vshra.s32 %v1310_v12, 16  ;;  %v1327_v63 = vand.u32 65535, %v1310_v12 }
 0x858   : > { %v1330_v59 = vcvt.s32.f32 %v1328_v31  ;;  %v1329_v2 = vcvt.s32.f32 %v1327_v63 }
 0x85a   : > { %1331 = vmin.xlane.f32.xlu1 %v1330_v59 }
 0x876   : > { %v1304_v17 = vpop.xlane.xlu0 %1303 }
 0x877   : > { %vm1308_vm3 = vcmp.eq.f32.partialorder %v3654_v45, %v1304_v17 }
 0x878   : > { %v1312_v60 = vsel %vm1308_vm3, %v3484_v50, 128 }
 0x879   : > { %v1356_v61 = vshra.s32 %v1312_v60, 16  ;;  %v1355_v19 = vand.u32 65535, %v1312_v60 }
 0x87a   : > { %v1302_v53 = vpop.xlane.xlu1 %1301 }
 0x87b   : > { %vm1307_vm4 = vcmp.eq.f32.partialorder %v3663_v51, %v1302_v53  ;;  %v1358_v14 = vcvt.s32.f32 %v1356_v61  ;;  %v1357_v55 = vcvt.s32.f32 %v1355_v19 }
 0x87c   : > { %v1311_v62 = vsel %vm1307_vm4, %v3484_v50, 128 }
 0x87d   : > { %1359 = vmin.xlane.f32.xlu0 %v1358_v14  ;;  %v1342_v1 = vshra.s32 %v1311_v62, 16  ;;  %v1341_v30 = vand.u32 65535, %v1311_v62 }
 0x87f   : > { %v1344_v4 = vcvt.s32.f32 %v1342_v1  ;;  %v1343_v40 = vcvt.s32.f32 %v1341_v30 }
 0x881   : > { %1345 = vmin.xlane.f32.xlu1 %v1344_v4 }
 0x8df   : > { %v1318_v33 = vpop.xlane.xlu0 %1317 }
 0x8e0   : > { %vm1319_vm5 = vcmp.eq.f32.partialorder %v1316_v22, %v1318_v33  ;;  %v1324_v41 = vcvt.f32.s32 %v1318_v33 }
 0x8e1   : > { %v1320_v18 = vsel %vm1319_vm5, %v1315_v48, inf }
 0x8e2   : > { %1321 = vmin.xlane.f32.xlu0 %v1320_v18  ;;  %v1325_v43 = vshll.u32 %v1324_v41, 16 }
 0x8e3   : > { %v1332_v54 = vpop.xlane.xlu1 %1331 }
 0x8e4   : > { %vm1333_vm6 = vcmp.eq.f32.partialorder %v1330_v59, %v1332_v54  ;;  %v1338_v44 = vcvt.f32.s32 %v1332_v54 }
 0x8e5   : > { %v1334_v36 = vsel %vm1333_vm6, %v1329_v2, inf }
 0x8e6   : > { %1335 = vmin.xlane.f32.xlu1 %v1334_v36  ;;  %v1339_v11 = vshll.u32 %v1338_v44, 16 }
 0x906   : > { %v1360_v23 = vpop.xlane.xlu0 %1359 }
 0x907   : > { %vm1361_vm7 = vcmp.eq.f32.partialorder %v1358_v14, %v1360_v23 }
 0x908   : > { %v1362_v35 = vsel %vm1361_vm7, %v1357_v55, inf }
 0x909   : > { %1363 = vmin.xlane.f32.xlu0 %v1362_v35 }
 0x90a   : > { %v1346_v56 = vpop.xlane.xlu1 %1345 }
 0x90b   : > { %vm1347_vm8 = vcmp.eq.f32.partialorder %v1344_v4, %v1346_v56 }
 0x90c   : > { %v1348_v25 = vsel %vm1347_vm8, %v1343_v40, inf }
 0x90d   : > { %1349 = vmin.xlane.f32.xlu1 %v1348_v25 }
 0x96b   : > { %v1322_v42 = vpop.xlane.xlu0 %1321 }
 0x96c   : > { %v1323_v10 = vcvt.f32.s32 %v1322_v42 }
 0x96e   : > { %v1326_v46 = vadd.s32 %v1325_v43, %v1323_v10 }
 0x96f   : > { %v1336_v9 = vpop.xlane.xlu1 %1335 }
 0x970   : > { %v1337_v57 = vcvt.f32.s32 %v1336_v9  ;;  %vm1369_vm9 = vcmp.eq.s32.totalorder %v3484_v50, %v1326_v46 }
 0x971   : > { %v2976_v49 = vsel %vm1369_vm9, 1.0, %v3300_v0 }
 0x972   : > { %v1340_v22 = vadd.s32 %v1339_v11, %v1337_v57  ;;  %vm1385_vm10 = vcmp.gt.f32.partialorder %v2976_v49, 0.0  ;;  %v3677_v12 = vadd.f32 %v2976_v49, %v3633_v52  ;;  %v1366_v52 = vcvt.f32.s32 %v1360_v23 }
 0x973   : > { %v3680_v31 = vsel %vm1385_vm10, -inf, %v3636_v20  ;;  %v1352_v20 = vcvt.f32.s32 %v1346_v56 }
 0x974   : > { %1393 = vmax.xlane.f32.xlu0 %v3680_v31  ;;  %vm1370_vm11 = vcmp.eq.s32.totalorder %v3484_v50, %v1340_v22  ;;  %v1367_v53 = vshll.u32 %v1366_v52, 16 }
 0x975   : > { %v2977_v59 = vsel %vm1370_vm11, 1.0, %v3300_v0  ;;  %v1353_v4 = vshll.u32 %v1352_v20, 16 }
 0x976   : > { %vm1386_vm12 = vcmp.gt.f32.partialorder %v2977_v59, 0.0  ;;  %v3686_v17 = vadd.f32 %v2977_v59, %v3642_v39 }
 0x977   : > { %v3689_v60 = vsel %vm1386_vm12, -inf, %v3645_v24 }
 0x978   : > { %1395 = vmax.xlane.f32.xlu1 %v3689_v60 }
 0x992   : > { %v1364_v61 = vpop.xlane.xlu0 %1363 }
 0x993   : > { %v1365_v14 = vcvt.f32.s32 %v1364_v61 }
 0x995   : > { %v1368_v62 = vadd.s32 %v1367_v53, %v1365_v14 }
 0x996   : > { %v1350_v1 = vpop.xlane.xlu1 %1349 }
 0x997   : > { %v1351_v47 = vcvt.f32.s32 %v1350_v1  ;;  %vm1372_vm13 = vcmp.eq.s32.totalorder %v3484_v50, %v1368_v62 }
 0x998   : > { %v2979_v33 = vsel %vm1372_vm13, 1.0, %v3300_v0 }
 0x999   : > { %v1354_v39 = vadd.s32 %v1353_v4, %v1351_v47  ;;  %vm1388_vm14 = vcmp.gt.f32.partialorder %v2979_v33, 0.0  ;;  %v3695_v24 = vadd.f32 %v2979_v33, %v3651_v58 }
 0x99a   : > { %v3698_v48 = vsel %vm1388_vm14, -inf, %v3654_v45 }
 0x99b   : > { %1399 = vmax.xlane.f32.xlu0 %v3698_v48  ;;  %vm1371_vm15 = vcmp.eq.s32.totalorder %v3484_v50, %v1354_v39 }
 0x99c   : > { %v2978_v63 = vsel %vm1371_vm15, 1.0, %v3300_v0 }
 0x99d   : > { %vm1387_vm0 = vcmp.gt.f32.partialorder %v2978_v63, 0.0  ;;  %v3704_v18 = vadd.f32 %v2978_v63, %v3660_v3 }
 0x99e   : > { %v3707_v54 = vsel %vm1387_vm0, -inf, %v3663_v51 }
 0x99f   : > { %1397 = vmax.xlane.f32.xlu1 %v3707_v54 }
 0x9fd   : > { %v1394_v58 = vpop.xlane.xlu0 %1393 }
 0x9fe   : > { %vm1401_vm1 = vcmp.eq.f32.partialorder %v3680_v31, %v1394_v58 }
 0x9ff   : > { %v1405_v45 = vsel %vm1401_vm1, %v3484_v50, 128 }
 0xa00   : > { %v1410_v2 = vshra.s32 %v1405_v45, 16  ;;  %v1409_v43 = vand.u32 65535, %v1405_v45 }
 0xa01   : > { %v1396_v36 = vpop.xlane.xlu1 %1395 }
 0xa02   : > { %vm1402_vm2 = vcmp.eq.f32.partialorder %v3689_v60, %v1396_v36  ;;  %v1412_v19 = vcvt.s32.f32 %v1410_v2  ;;  %v1411_v10 = vcvt.s32.f32 %v1409_v43 }
 0xa03   : > { %v1406_v23 = vsel %vm1402_vm2, %v3484_v50, 128 }
 0xa04   : > { %1413 = vmin.xlane.f32.xlu0 %v1412_v19  ;;  %v1424_v3 = vshra.s32 %v1406_v23, 16  ;;  %v1423_v46 = vand.u32 65535, %v1406_v23 }
 0xa06   : > { %v1426_v55 = vcvt.s32.f32 %v1424_v3  ;;  %v1425_v57 = vcvt.s32.f32 %v1423_v46 }
 0xa08   : > { %1427 = vmin.xlane.f32.xlu1 %v1426_v55 }
 0xa24   : > { %v1400_v51 = vpop.xlane.xlu0 %1399 }
 0xa25   : > { %vm1404_vm3 = vcmp.eq.f32.partialorder %v3698_v48, %v1400_v51 }
 0xa26   : > { %v1408_v30 = vsel %vm1404_vm3, %v3484_v50, 128 }
 0xa27   : > { %v1452_v35 = vshra.s32 %v1408_v30, 16  ;;  %v1451_v22 = vand.u32 65535, %v1408_v30 }
 0xa28   : > { %v1398_v56 = vpop.xlane.xlu1 %1397 }
 0xa29   : > { %vm1403_vm4 = vcmp.eq.f32.partialorder %v3707_v54, %v1398_v56  ;;  %v1454_v40 = vcvt.s32.f32 %v1452_v35  ;;  %v1453_v52 = vcvt.s32.f32 %v1451_v22 }
 0xa2a   : > { %v1407_v25 = vsel %vm1403_vm4, %v3484_v50, 128 }
 0xa2b   : > { %1455 = vmin.xlane.f32.xlu0 %v1454_v40  ;;  %v1438_v41 = vshra.s32 %v1407_v25, 16  ;;  %v1437_v61 = vand.u32 65535, %v1407_v25 }
 0xa2d   : > { %v1440_v42 = vcvt.s32.f32 %v1438_v41  ;;  %v1439_v14 = vcvt.s32.f32 %v1437_v61 }
 0xa2f   : > { %1441 = vmin.xlane.f32.xlu1 %v1440_v42 }
 0xa8d   : > { %v1414_v44 = vpop.xlane.xlu0 %1413 }
 0xa8e   : > { %vm1415_vm5 = vcmp.eq.f32.partialorder %v1412_v19, %v1414_v44  ;;  %v1420_v1 = vcvt.f32.s32 %v1414_v44 }
 0xa8f   : > { %v1416_v9 = vsel %vm1415_vm5, %v1411_v10, inf }
 0xa90   : > { %1417 = vmin.xlane.f32.xlu0 %v1416_v9  ;;  %v1421_v47 = vshll.u32 %v1420_v1, 16 }
 0xa91   : > { %v1428_v11 = vpop.xlane.xlu1 %1427 }
 0xa92   : > { %vm1429_vm6 = vcmp.eq.f32.partialorder %v1426_v55, %v1428_v11  ;;  %v1434_v33 = vcvt.f32.s32 %v1428_v11 }
 0xa93   : > { %v1430_v49 = vsel %vm1429_vm6, %v1425_v57, inf }
 0xa94   : > { %1431 = vmin.xlane.f32.xlu1 %v1430_v49  ;;  %v1435_v45 = vshll.u32 %v1434_v33, 16 }
 0xab4   : > { %v1456_v59 = vpop.xlane.xlu0 %1455 }
 0xab5   : > { %vm1457_vm7 = vcmp.eq.f32.partialorder %v1454_v40, %v1456_v59 }
 0xab6   : > { %v1458_v53 = vsel %vm1457_vm7, %v1453_v52, inf }
 0xab7   : > { %1459 = vmin.xlane.f32.xlu0 %v1458_v53 }
 0xab8   : > { %v1442_v20 = vpop.xlane.xlu1 %1441 }
 0xab9   : > { %vm1443_vm8 = vcmp.eq.f32.partialorder %v1440_v42, %v1442_v20 }
 0xaba   : > { %v1444_v62 = vsel %vm1443_vm8, %v1439_v14, inf }
 0xabb   : > { %1445 = vmin.xlane.f32.xlu1 %v1444_v62 }
 0xb19   : > { %v1418_v4 = vpop.xlane.xlu0 %1417 }
 0xb1a   : > { %v1419_v39 = vcvt.f32.s32 %v1418_v4 }
 0xb1c   : > { %v1422_v63 = vadd.s32 %v1421_v47, %v1419_v39 }
 0xb1d   : > { %v1432_v58 = vpop.xlane.xlu1 %1431 }
 0xb1e   : > { %v1433_v2 = vcvt.f32.s32 %v1432_v58  ;;  %vm1465_vm9 = vcmp.eq.s32.totalorder %v3484_v50, %v1422_v63 }
 0xb1f   : > { %v2980_v36 = vsel %vm1465_vm9, 1.0, %v3300_v0 }
 0xb20   : > { %v1436_v19 = vadd.s32 %v1435_v45, %v1433_v2  ;;  %vm1481_vm10 = vcmp.gt.f32.partialorder %v2980_v36, 0.0  ;;  %v3721_v23 = vadd.f32 %v2980_v36, %v3677_v12  ;;  %v1462_v12 = vcvt.f32.s32 %v1456_v59 }
 0xb21   : > { %v3724_v3 = vsel %vm1481_vm10, -inf, %v3680_v31  ;;  %v1448_v31 = vcvt.f32.s32 %v1442_v20 }
 0xb22   : > { %1489 = vmax.xlane.f32.xlu0 %v3724_v3  ;;  %vm1466_vm11 = vcmp.eq.s32.totalorder %v3484_v50, %v1436_v19  ;;  %v1463_v56 = vshll.u32 %v1462_v12, 16 }
 0xb23   : > { %v2981_v55 = vsel %vm1466_vm11, 1.0, %v3300_v0  ;;  %v1449_v42 = vshll.u32 %v1448_v31, 16 }
 0xb24   : > { %vm1482_vm12 = vcmp.gt.f32.partialorder %v2981_v55, 0.0  ;;  %v3730_v51 = vadd.f32 %v2981_v55, %v3686_v17 }
 0xb25   : > { %v3733_v30 = vsel %vm1482_vm12, -inf, %v3689_v60 }
 0xb26   : > { %1491 = vmax.xlane.f32.xlu1 %v3733_v30 }
 0xb40   : > { %v1460_v35 = vpop.xlane.xlu0 %1459 }
 0xb41   : > { %v1461_v40 = vcvt.f32.s32 %v1460_v35 }
 0xb43   : > { %v1464_v25 = vadd.s32 %v1463_v56, %v1461_v40 }
 0xb44   : > { %v1446_v41 = vpop.xlane.xlu1 %1445 }
 0xb45   : > { %v1447_v43 = vcvt.f32.s32 %v1446_v41  ;;  %vm1468_vm13 = vcmp.eq.s32.totalorder %v3484_v50, %v1464_v25 }
 0xb46   : > { %v2983_v44 = vsel %vm1468_vm13, 1.0, %v3300_v0 }
 0xb47   : > { %v1450_v17 = vadd.s32 %v1449_v42, %v1447_v43  ;;  %vm1484_vm14 = vcmp.gt.f32.partialorder %v2983_v44, 0.0  ;;  %v3739_v60 = vadd.f32 %v2983_v44, %v3695_v24 }
 0xb48   : > { %v3742_v10 = vsel %vm1484_vm14, -inf, %v3698_v48 }
 0xb49   : > { %1495 = vmax.xlane.f32.xlu0 %v3742_v10  ;;  %vm1467_vm15 = vcmp.eq.s32.totalorder %v3484_v50, %v1450_v17 }
 0xb4a   : > { %v2982_v46 = vsel %vm1467_vm15, 1.0, %v3300_v0 }
 0xb4b   : > { %vm1483_vm0 = vcmp.gt.f32.partialorder %v2982_v46, 0.0  ;;  %v3748_v9 = vadd.f32 %v2982_v46, %v3704_v18 }
 0xb4c   : > { %v3751_v11 = vsel %vm1483_vm0, -inf, %v3707_v54 }
 0xb4d   : > { %1493 = vmax.xlane.f32.xlu1 %v3751_v11 }
 0xbab   : > { %v1490_v24 = vpop.xlane.xlu0 %1489 }
 0xbac   : > { %vm1497_vm1 = vcmp.eq.f32.partialorder %v3724_v3, %v1490_v24 }
 0xbad   : > { %v1501_v48 = vsel %vm1497_vm1, %v3484_v50, 128 }
 0xbae   : > { %v1506_v57 = vshra.s32 %v1501_v48, 16  ;;  %v1505_v47 = vand.u32 65535, %v1501_v48 }
 0xbaf   : > { %v1492_v49 = vpop.xlane.xlu1 %1491 }
 0xbb0   : > { %vm1498_vm2 = vcmp.eq.f32.partialorder %v3733_v30, %v1492_v49  ;;  %v1508_v22 = vcvt.s32.f32 %v1506_v57  ;;  %v1507_v39 = vcvt.s32.f32 %v1505_v47 }
 0xbb1   : > { %v1502_v59 = vsel %vm1498_vm2, %v3484_v50, 128 }
 0xbb2   : > { %1509 = vmin.xlane.f32.xlu0 %v1508_v22  ;;  %v1520_v18 = vshra.s32 %v1502_v59, 16  ;;  %v1519_v63 = vand.u32 65535, %v1502_v59 }
 0xbb4   : > { %v1522_v52 = vcvt.s32.f32 %v1520_v18  ;;  %v1521_v2 = vcvt.s32.f32 %v1519_v63 }
 0xbb6   : > { %1523 = vmin.xlane.f32.xlu1 %v1522_v52 }
 0xbd2   : > { %v1496_v54 = vpop.xlane.xlu0 %1495 }
 0xbd3   : > { %vm1500_vm3 = vcmp.eq.f32.partialorder %v3742_v10, %v1496_v54 }
 0xbd4   : > { %v1504_v61 = vsel %vm1500_vm3, %v3484_v50, 128 }
 0xbd5   : > { %v1548_v53 = vshra.s32 %v1504_v61, 16  ;;  %v1547_v19 = vand.u32 65535, %v1504_v61 }
 0xbd6   : > { %v1494_v20 = vpop.xlane.xlu1 %1493 }
 0xbd7   : > { %vm1499_vm4 = vcmp.eq.f32.partialorder %v3751_v11, %v1494_v20  ;;  %v1550_v14 = vcvt.s32.f32 %v1548_v53  ;;  %v1549_v12 = vcvt.s32.f32 %v1547_v19 }
 0xbd8   : > { %v1503_v62 = vsel %vm1499_vm4, %v3484_v50, 128 }
 0xbd9   : > { %1551 = vmin.xlane.f32.xlu0 %v1550_v14  ;;  %v1534_v1 = vshra.s32 %v1503_v62, 16  ;;  %v1533_v35 = vand.u32 65535, %v1503_v62 }
 0xbdb   : > { %v1536_v4 = vcvt.s32.f32 %v1534_v1  ;;  %v1535_v40 = vcvt.s32.f32 %v1533_v35 }
 0xbdd   : > { %1537 = vmin.xlane.f32.xlu1 %v1536_v4 }
 0xc3b   : > { %v1510_v33 = vpop.xlane.xlu0 %1509 }
 0xc3c   : > { %vm1511_vm5 = vcmp.eq.f32.partialorder %v1508_v22, %v1510_v33  ;;  %v1516_v41 = vcvt.f32.s32 %v1510_v33 }
 0xc3d   : > { %v1512_v58 = vsel %vm1511_vm5, %v1507_v39, inf }
 0xc3e   : > { %1513 = vmin.xlane.f32.xlu0 %v1512_v58  ;;  %v1517_v43 = vshll.u32 %v1516_v41, 16 }
 0xc3f   : > { %v1524_v45 = vpop.xlane.xlu1 %1523 }
 0xc40   : > { %vm1525_vm6 = vcmp.eq.f32.partialorder %v1522_v52, %v1524_v45  ;;  %v1530_v44 = vcvt.f32.s32 %v1524_v45 }
 0xc41   : > { %v1526_v36 = vsel %vm1525_vm6, %v1521_v2, inf }
 0xc42   : > { %1527 = vmin.xlane.f32.xlu1 %v1526_v36  ;;  %v1531_v48 = vshll.u32 %v1530_v44, 16 }
 0xc62   : > { %v1552_v55 = vpop.xlane.xlu0 %1551 }
 0xc63   : > { %vm1553_vm7 = vcmp.eq.f32.partialorder %v1550_v14, %v1552_v55  ;;  %v1558_v53 = vcvt.f32.s32 %v1552_v55 }
 0xc64   : > { %v1554_v56 = vsel %vm1553_vm7, %v1549_v12, inf }
 0xc65   : > { %1555 = vmin.xlane.f32.xlu0 %v1554_v56  ;;  %v1559_v14 = vshll.u32 %v1558_v53, 16 }
 0xc66   : > { %v1538_v31 = vpop.xlane.xlu1 %1537 }
 0xc67   : > { %vm1539_vm8 = vcmp.eq.f32.partialorder %v1536_v4, %v1538_v31  ;;  %v1544_v62 = vcvt.f32.s32 %v1538_v31 }
 0xc68   : > { %v1540_v25 = vsel %vm1539_vm8, %v1535_v40, inf }
 0xc69   : > { %1541 = vmin.xlane.f32.xlu1 %v1540_v25 }
 0xcc7   : > { %v1514_v42 = vpop.xlane.xlu0 %1513 }
 0xcc8   : > { %v1515_v17 = vcvt.f32.s32 %v1514_v42 }
 0xcca   : > { %v1518_v46 = vadd.s32 %v1517_v43, %v1515_v17 }
 0xccb   : > { %v1528_v24 = vpop.xlane.xlu1 %1527 }
 0xccc   : > { %v1529_v57 = vcvt.f32.s32 %v1528_v24  ;;  %vm1561_vm9 = vcmp.eq.s32.totalorder %v3484_v50, %v1518_v46 }
 0xccd   : > { %v2984_v49 = vsel %vm1561_vm9, 1.0, %v3300_v0 }
 0xcce   : > { %v1532_v22 = vadd.s32 %v1531_v48, %v1529_v57  ;;  %vm1577_vm10 = vcmp.gt.f32.partialorder %v2984_v49, 0.0  ;;  %v3765_v59 = vadd.f32 %v2984_v49, %v3721_v23 }
 0xccf   : > { %v1581_v18 = vsel %vm1577_vm10, -inf, %v3724_v3  ;;  %v1545_v3 = vshll.u32 %v1544_v62, 16 }
 0xcd0   : > { %1585 = vmax.xlane.f32.xlu0 %v1581_v18  ;;  %vm1562_vm11 = vcmp.eq.s32.totalorder %v3484_v50, %v1532_v22 }
 0xcd1   : > { %v2985_v52 = vsel %vm1562_vm11, 1.0, %v3300_v0 }
 0xcd2   : > { %vm1578_vm12 = vcmp.gt.f32.partialorder %v2985_v52, 0.0  ;;  %v3771_v54 = vadd.f32 %v2985_v52, %v3730_v51 }
 0xcd3   : > { %v1582_v61 = vsel %vm1578_vm12, -inf, %v3733_v30 }
 0xcd4   : > { %1587 = vmax.xlane.f32.xlu1 %v1582_v61 }
 0xcee   : > { %v1556_v20 = vpop.xlane.xlu0 %1555 }
 0xcef   : > { %v1557_v23 = vcvt.f32.s32 %v1556_v20 }
 0xcf1   : > { %v1560_v1 = vadd.s32 %v1559_v14, %v1557_v23 }
 0xcf2   : > { %v1542_v4 = vpop.xlane.xlu1 %1541 }
 0xcf3   : > { %v1543_v47 = vcvt.f32.s32 %v1542_v4  ;;  %vm1564_vm13 = vcmp.eq.s32.totalorder %v3484_v50, %v1560_v1 }
 0xcf4   : > { %v2987_v33 = vsel %vm1564_vm13, 1.0, %v3300_v0 }
 0xcf5   : > { %v1546_v39 = vadd.s32 %v1545_v3, %v1543_v47  ;;  %vm1580_vm14 = vcmp.gt.f32.partialorder %v2987_v33, 0.0  ;;  %v3777_v51 = vadd.f32 %v2987_v33, %v3739_v60 }
 0xcf6   : > { %v1584_v30 = vsel %vm1580_vm14, -inf, %v3742_v10 }
 0xcf7   : > { %1591 = vmax.xlane.f32.xlu0 %v1584_v30  ;;  %vm1563_vm15 = vcmp.eq.s32.totalorder %v3484_v50, %v1546_v39 }
 0xcf8   : > { %v2986_v63 = vsel %vm1563_vm15, 1.0, %v3300_v0 }
 0xcf9   : > { %vm1579_vm0 = vcmp.gt.f32.partialorder %v2986_v63, 0.0  ;;  %v3783_v58 = vadd.f32 %v2986_v63, %v3748_v9 }
 0xcfa   : > { %v1583_v45 = vsel %vm1579_vm0, -inf, %v3751_v11 }
 0xcfb   : > { %1589 = vmax.xlane.f32.xlu1 %v1583_v45 }
 0xd59   : > { %v1586_v2 = vpop.xlane.xlu0 %1585 }
 0xd5a   : > { %vm1593_vm1 = vcmp.eq.f32.partialorder %v1581_v18, %v1586_v2 }
 0xd5b   : > { %v1597_v36 = vsel %vm1593_vm1, %v3484_v50, 128 }
 0xd5c   : > { %v1602_v60 = vshra.s32 %v1597_v36, 16  ;;  %v1601_v43 = vand.u32 65535, %v1597_v36 }
 0xd5d   : > { %v1588_v19 = vpop.xlane.xlu1 %1587 }
 0xd5e   : > { %vm1594_vm2 = vcmp.eq.f32.partialorder %v1582_v61, %v1588_v19  ;;  %v1604_v10 = vcvt.s32.f32 %v1602_v60  ;;  %v1603_v17 = vcvt.s32.f32 %v1601_v43 }
 0xd5f   : > { %v1598_v55 = vsel %vm1594_vm2, %v3484_v50, 128 }
 0xd60   : > { %1605 = vmin.xlane.f32.xlu0 %v1604_v10  ;;  %v1616_v12 = vshra.s32 %v1598_v55, 16  ;;  %v1615_v46 = vand.u32 65535, %v1598_v55 }
 0xd62   : > { %v1618_v35 = vcvt.s32.f32 %v1616_v12  ;;  %v1617_v57 = vcvt.s32.f32 %v1615_v46 }
 0xd64   : > { %1619 = vmin.xlane.f32.xlu1 %v1618_v35 }
 0xd80   : > { %v1592_v56 = vpop.xlane.xlu0 %1591 }
 0xd81   : > { %vm1596_vm3 = vcmp.eq.f32.partialorder %v1584_v30, %v1592_v56 }
 0xd82   : > { %v1600_v9 = vsel %vm1596_vm3, %v3484_v50, 128 }
 0xd83   : > { %v1644_v11 = vshra.s32 %v1600_v9, 16  ;;  %v1643_v22 = vand.u32 65535, %v1600_v9 }
 0xd84   : > { %v1590_v31 = vpop.xlane.xlu1 %1589 }
 0xd85   : > { %vm1595_vm4 = vcmp.eq.f32.partialorder %v1583_v45, %v1590_v31  ;;  %v1646_v40 = vcvt.s32.f32 %v1644_v11  ;;  %v1645_v52 = vcvt.s32.f32 %v1643_v22 }
 0xd86   : > { %v1599_v25 = vsel %vm1595_vm4, %v3484_v50, 128 }
 0xd87   : > { %1647 = vmin.xlane.f32.xlu0 %v1646_v40  ;;  %v1630_v41 = vshra.s32 %v1599_v25, 16  ;;  %v1629_v61 = vand.u32 65535, %v1599_v25 }
 0xd89   : > { %v1632_v42 = vcvt.s32.f32 %v1630_v41  ;;  %v1631_v14 = vcvt.s32.f32 %v1629_v61 }
 0xd8b   : > { %1633 = vmin.xlane.f32.xlu1 %v1632_v42 }
 0xde9   : > { %v1606_v44 = vpop.xlane.xlu0 %1605 }
 0xdea   : > { %vm1607_vm5 = vcmp.eq.f32.partialorder %v1604_v10, %v1606_v44  ;;  %v1612_v1 = vcvt.f32.s32 %v1606_v44 }
 0xdeb   : > { %v1608_v24 = vsel %vm1607_vm5, %v1603_v17, inf }
 0xdec   : > { %1609 = vmin.xlane.f32.xlu0 %v1608_v24  ;;  %v1613_v33 = vshll.u32 %v1612_v1, 16 }
 0xded   : > { %v1620_v48 = vpop.xlane.xlu1 %1619 }
 0xdee   : > { %vm1621_vm6 = vcmp.eq.f32.partialorder %v1618_v35, %v1620_v48  ;;  %v1626_v3 = vcvt.f32.s32 %v1620_v48 }
 0xdef   : > { %v1622_v49 = vsel %vm1621_vm6, %v1617_v57, inf }
 0xdf0   : > { %1623 = vmin.xlane.f32.xlu1 %v1622_v49  ;;  %v1627_v30 = vshll.u32 %v1626_v3, 16 }
 0xe10   : > { %v1648_v18 = vpop.xlane.xlu0 %1647 }
 0xe11   : > { %vm1649_vm7 = vcmp.eq.f32.partialorder %v1646_v40, %v1648_v18  ;;  %v1654_v36 = vcvt.f32.s32 %v1648_v18 }
 0xe12   : > { %v1650_v53 = vsel %vm1649_vm7, %v1645_v52, inf }
 0xe13   : > { %1651 = vmin.xlane.f32.xlu0 %v1650_v53  ;;  %v1655_v12 = vshll.u32 %v1654_v36, 16 }
 0xe14   : > { %v1634_v20 = vpop.xlane.xlu1 %1633 }
 0xe15   : > { %vm1635_vm8 = vcmp.eq.f32.partialorder %v1632_v42, %v1634_v20  ;;  %v1640_v35 = vcvt.f32.s32 %v1634_v20 }
 0xe16   : > { %v1636_v62 = vsel %vm1635_vm8, %v1631_v14, inf }
 0xe17   : > { %1637 = vmin.xlane.f32.xlu1 %v1636_v62  ;;  %v1641_v43 = vshll.u32 %v1640_v35, 16 }
 0xe75   : > { %v1610_v23 = vpop.xlane.xlu0 %1609 }
 0xe76   : > { %v1611_v47 = vcvt.f32.s32 %v1610_v23 }
 0xe78   : > { %v1614_v63 = vadd.s32 %v1613_v33, %v1611_v47 }
 0xe79   : > { %v1624_v4 = vpop.xlane.xlu1 %1623 }
 0xe7a   : > { %v1625_v39 = vcvt.f32.s32 %v1624_v4  ;;  %vm1657_vm9 = vcmp.eq.s32.totalorder %v3484_v50, %v1614_v63 }
 0xe7b   : > { %v2988_v2 = vsel %vm1657_vm9, 1.0, %v3300_v0 }
 0xe7c   : > { %v1628_v45 = vadd.s32 %v1627_v30, %v1625_v39  ;;  %v1669_v19 = vadd.f32 %v2988_v2, %v3765_v59 }
 0xe7e   : > { %vm1658_vm10 = vcmp.eq.s32.totalorder %v3484_v50, %v1628_v45  ;;  %v1673_v9 = vmul.f32 %v1669_v19, %v3424_v5  ;;  %v1675_v11 = vmul.f32 %v1669_v19, %v3426_v6  ;;  %v1677_v40 = vmul.f32 %v1669_v19, %v3436_v13 }
 0xe7f   : > { %v2989_v60 = vsel %vm1658_vm10, 1.0, %v3300_v0  ;;  %v1679_v59 = vmul.f32 %v1669_v19, %v3439_v15 }
 0xe80   : > { %v1670_v10 = vadd.f32 %v2989_v60, %v3771_v54  ;;  %v1689_v17 = vmul.f32 -1.6250916, %v1673_v9  ;;  %v1694_v24 = vmul.f32 0.1823057, %v1677_v40 }
 0xe82   : > { %v1674_v25 = vmul.f32 %v1670_v10, %v3428_v7  ;;  %v1676_v41 = vmul.f32 %v1670_v10, %v3430_v8  ;;  %v1678_v5 = vmul.f32 %v1670_v10, %v3441_v16  ;;  %v1680_v6 = vmul.f32 %v1670_v10, %v3445_v21 }
 0xe83   : > { %v1691_v7 = vmul.f32 -2.6015801, %v1675_v11  ;;  %v1697_v8 = vmul.f32 4.0442476, %v1679_v59 }
 0xe84   : > { %v1707_v48 = vmul.f32 -1.6250916, %v1674_v25  ;;  %v1709_v57 = vmul.f32 -2.6015801, %v1676_v41  ;;  %v1712_v18 = vmul.f32 0.1823057, %v1678_v5 }
 0xe9c   : > { %v1652_v55 = vpop.xlane.xlu0 %1651 }
 0xe9d   : > { %v1653_v56 = vcvt.f32.s32 %v1652_v55 }
 0xe9f   : > { %v1656_v31 = vadd.s32 %v1655_v12, %v1653_v56 }
 0xea0   : > { %v1638_v42 = vpop.xlane.xlu1 %1637 }
 0xea1   : > { %vm1660_vm11 = vcmp.eq.s32.totalorder %v3484_v50, %v1656_v31  ;;  %v1639_v54 = vcvt.f32.s32 %v1638_v42 }
 0xea2   : > { %v2991_v44 = vsel %vm1660_vm11, 1.0, %v3300_v0 }
 0xea3   : > { %v1672_v13 = vadd.f32 %v2991_v44, %v3777_v51  ;;  %v1642_v46 = vadd.s32 %v1641_v43, %v1639_v54  ;;  %v1715_v51 = vmul.f32 4.0442476, %v1680_v6 }
 0xea5   : > { %vm1659_vm12 = vcmp.eq.s32.totalorder %v3484_v50, %v1642_v46  ;;  %v1682_v15 = vmul.f32 %v1672_v13, %v3458_v28  ;;  %v1684_v49 = vmul.f32 %v1672_v13, %v3460_v29  ;;  %v1686_v22 = vmul.f32 %v1672_v13, %v3470_v37 }
 0xea6   : > { %v2990_v16 = vsel %vm1659_vm12, 1.0, %v3300_v0  ;;  %v1688_v21 = vmul.f32 %v1672_v13, %v3472_v38 }
 0xea7   : > { %v1671_v52 = vadd.f32 %v2990_v16, %v3783_v58  ;;  %v1700_v61 = vmul.f32 %v1689_v17, %v1682_v15  ;;  %v1701_v53 = vmul.f32 %v1691_v7, %v1684_v49  ;;  %v1703_v20 = vmul.f32 %v1694_v24, %v1686_v22 }
 0xea8   : > { %v1705_v14 = vmul.f32 %v1697_v8, %v1688_v21  ;;  %v1718_v62 = vmul.f32 %v1707_v48, %v1682_v15  ;;  %v1719_v23 = vmul.f32 %v1709_v57, %v1684_v49  ;;  %v1721_v1 = vmul.f32 %v1712_v18, %v1686_v22 }
 0xea9   : > { %v1702_v28 = vadd.f32 %v1701_v53, %v1700_v61  ;;  %v1723_v4 = vmul.f32 %v1715_v51, %v1688_v21  ;;  %v1681_v29 = vmul.f32 %v1671_v52, %v3454_v26  ;;  %v1683_v37 = vmul.f32 %v1671_v52, %v3456_v27 }
 0xeaa   : > { %v1720_v3 = vadd.f32 %v1719_v23, %v1718_v62  ;;  %v1685_v38 = vmul.f32 %v1671_v52, %v3464_v32  ;;  %v1687_v47 = vmul.f32 %v1671_v52, %v3466_v34 }
 0xeab   : > { %v1704_v33 = vadd.f32 %v1703_v20, %v1702_v28  ;;  %v1708_v58 = vmul.f32 %v1707_v48, %v1681_v29  ;;  %v1710_v39 = vmul.f32 %v1709_v57, %v1683_v37  ;;  %v1690_v30 = vmul.f32 %v1689_v17, %v1681_v29 }
 0xeac   : > { %v1722_v63 = vadd.f32 %v1721_v1, %v1720_v3  ;;  %v1713_v45 = vmul.f32 %v1712_v18, %v1685_v38  ;;  %v1716_v2 = vmul.f32 %v1715_v51, %v1687_v47  ;;  %v1692_v36 = vmul.f32 %v1691_v7, %v1683_v37 }
 0xead   : > { %v3818_v60 = vadd.f32 %v1705_v14, %v1704_v33  ;;  %v1711_v19 = vadd.f32 %v1710_v39, %v1708_v58  ;;  %v1695_v10 = vmul.f32 %v1694_v24, %v1685_v38  ;;  %v1698_v26 = vmul.f32 %v1697_v8, %v1687_v47 }
 0xeae   : > { %v3820_v55 = vadd.f32 %v1723_v4, %v1722_v63  ;;  %v1693_v27 = vadd.f32 %v1692_v36, %v1690_v30 }
 0xeaf   : > { %1727 = vmax.xlane.f32.xlu0 %v3818_v60  ;;  %v1714_v32 = vadd.f32 %v1713_v45, %v1711_v19 }
 0xeb0   : > { %1731 = vmax.xlane.f32.xlu1 %v3820_v55  ;;  %v1696_v34 = vadd.f32 %v1695_v10, %v1693_v27 }
 0xeb1   : > { %v3824_v12 = vadd.f32 %v1716_v2, %v1714_v32 }
 0xeb2   : > { %v3826_v35 = vadd.f32 %v1698_v26, %v1696_v34 }
 0xeb4   : > { %1729 = vmax.xlane.f32.xlu1 %v3824_v12  ;;  %1725 = vmax.xlane.f32.xlu0 %v3826_v35 }
 0xf38   : > { %v3830_v56 = vpop.xlane.xlu0 %1727 }
 0xf39   : > { %vm1762_vm13 = vcmp.eq.f32.partialorder %v3818_v60, %v3830_v56  ;;  %v3834_v9 = vpop.xlane.xlu1 %1731 }
 0xf3a   : > { %v1766_v11 = vsel %vm1762_vm13, %v3484_v50, 128  ;;  %vm1764_vm14 = vcmp.eq.f32.partialorder %v3820_v55, %v3834_v9 }
 0xf3b   : > { %v1768_v31 = vsel %vm1764_vm14, %v3484_v50, 128  ;;  %v1784_v40 = vshra.s32 %v1766_v11, 16  ;;  %v1783_v46 = vand.u32 65535, %v1766_v11 }
 0xf3c   : > { %v1812_v25 = vshra.s32 %v1768_v31, 16  ;;  %v1811_v7 = vand.u32 65535, %v1768_v31 }
 0xf3d   : > { %v3840_v41 = vpop.xlane.xlu0 %1725  ;;  %v3842_v42 = vpop.xlane.xlu1 %1729  ;;  %v1786_v59 = vcvt.s32.f32 %v1784_v40  ;;  %v1785_v8 = vcvt.s32.f32 %v1783_v46 }
 0xf3e   : > { %vm1761_vm15 = vcmp.eq.f32.partialorder %v3826_v35, %v3840_v41  ;;  %vm1763_vm0 = vcmp.eq.f32.partialorder %v3824_v12, %v3842_v42  ;;  %v1814_v54 = vcvt.s32.f32 %v1812_v25  ;;  %v1813_v49 = vcvt.s32.f32 %v1811_v7 }
 0xf3f   : > { %v1765_v43 = vsel %vm1761_vm15, %v3484_v50, 128  ;;  %1787 = vmin.xlane.f32.xlu0 %v1786_v59  ;;  %v1767_v17 = vsel %vm1763_vm0, %v3484_v50, 128 }
 0xf40   : > { %v1770_v44 = vshra.s32 %v1765_v43, 16  ;;  %1815 = vmin.xlane.f32.xlu1 %v1814_v54  ;;  %v1798_v5 = vshra.s32 %v1767_v17, 16  ;;  %v1769_v48 = vand.u32 65535, %v1765_v43  ;;  %v1797_v22 = vand.u32 65535, %v1767_v17 }
 0xf42   : > { %v1772_v6 = vcvt.s32.f32 %v1770_v44  ;;  %v1800_v13 = vcvt.s32.f32 %v1798_v5  ;;  %v1771_v18 = vcvt.s32.f32 %v1769_v48  ;;  %v1799_v61 = vcvt.s32.f32 %v1797_v22 }
 0xf44   : > { %1773 = vmin.xlane.f32.xlu0 %v1772_v6  ;;  %1801 = vmin.xlane.f32.xlu1 %v1800_v13 }
 0xfc8   : > { %v1788_v24 = vpop.xlane.xlu0 %1787 }
 0xfc9   : > { %vm1789_vm1 = vcmp.eq.f32.partialorder %v1786_v59, %v1788_v24  ;;  %v1816_v57 = vpop.xlane.xlu1 %1815  ;;  %v1794_v20 = vcvt.f32.s32 %v1788_v24 }
 0xfca   : > { %v1790_v15 = vsel %vm1789_vm1, %v1785_v8, inf  ;;  %vm1817_vm2 = vcmp.eq.f32.partialorder %v1814_v54, %v1816_v57  ;;  %v1822_v14 = vcvt.f32.s32 %v1816_v57 }
 0xfcb   : > { %1791 = vmin.xlane.f32.xlu0 %v1790_v15  ;;  %v1818_v16 = vsel %vm1817_vm2, %v1813_v49, inf  ;;  %v1795_v23 = vshll.u32 %v1794_v20, 16 }
 0xfcc   : > { %1819 = vmin.xlane.f32.xlu1 %v1818_v16  ;;  %v1823_v29 = vshll.u32 %v1822_v14, 16 }
 0xfcd   : > { %v1774_v21 = vpop.xlane.xlu0 %1773  ;;  %v1802_v51 = vpop.xlane.xlu1 %1801 }
 0xfce   : > { %vm1775_vm3 = vcmp.eq.f32.partialorder %v1772_v6, %v1774_v21  ;;  %vm1803_vm4 = vcmp.eq.f32.partialorder %v1800_v13, %v1802_v51  ;;  %v1780_v28 = vcvt.f32.s32 %v1774_v21  ;;  %v1808_v37 = vcvt.f32.s32 %v1802_v51 }
 0xfcf   : > { %v1776_v52 = vsel %vm1775_vm3, %v1771_v18, inf  ;;  %v1804_v53 = vsel %vm1803_vm4, %v1799_v61, inf }
 0xfd0   : > { %1777 = vmin.xlane.f32.xlu0 %v1776_v52  ;;  %1805 = vmin.xlane.f32.xlu1 %v1804_v53  ;;  %v1781_v58 = vshll.u32 %v1780_v28, 16  ;;  %v1809_v63 = vshll.u32 %v1808_v37, 16 }
0x1054   : > { %v1792_v62 = vpop.xlane.xlu0 %1791 }
0x1055   : > { %v1793_v1 = vcvt.f32.s32 %v1792_v62  ;;  %v1820_v4 = vpop.xlane.xlu1 %1819 }
0x1056   : > { %v1821_v38 = vcvt.f32.s32 %v1820_v4 }
0x1057   : > { %v1796_v3 = vadd.s32 %v1795_v23, %v1793_v1 }
0x1058   : > { %v1824_v47 = vadd.s32 %v1823_v29, %v1821_v38 }
0x1059   : > { %vm1826_vm5 = vcmp.eq.s32.totalorder %v3484_v50, %v1796_v3  ;;  %v1778_v33 = vpop.xlane.xlu0 %1777  ;;  %v1806_v45 = vpop.xlane.xlu1 %1805 }
0x105a   : > { %v1779_v39 = vcvt.f32.s32 %v1778_v33  ;;  %v3852_v30 = vsel %vm1826_vm5, 1.0, %v3300_v0  ;;  %vm1828_vm6 = vcmp.eq.s32.totalorder %v3484_v50, %v1824_v47  ;;  %v1807_v36 = vcvt.f32.s32 %v1806_v45 }
0x105b   : > { %vm1842_vm7 = vcmp.gt.f32.partialorder %v3852_v30, 0.0  ;;  %v3860_v10 = vsel %vm1828_vm6, 1.0, %v3300_v0 }
0x105c   : > { %v1782_v2 = vadd.s32 %v1781_v58, %v1779_v39  ;;  %v3857_v19 = vsel %vm1842_vm7, -inf, %v3818_v60  ;;  %vm1844_vm8 = vcmp.gt.f32.partialorder %v3860_v10, 0.0  ;;  %v1810_v26 = vadd.s32 %v1809_v63, %v1807_v36 }
0x105d   : > { %1851 = vmax.xlane.f32.xlu0 %v3857_v19  ;;  %v3866_v27 = vsel %vm1844_vm8, -inf, %v3820_v55 }
0x105e   : > { %vm1825_vm9 = vcmp.eq.s32.totalorder %v3484_v50, %v1782_v2  ;;  %1855 = vmax.xlane.f32.xlu1 %v3866_v27  ;;  %vm1827_vm10 = vcmp.eq.s32.totalorder %v3484_v50, %v1810_v26 }
0x105f   : > { %v3870_v32 = vsel %vm1825_vm9, 1.0, %v3300_v0  ;;  %v3878_v11 = vsel %vm1827_vm10, 1.0, %v3300_v0 }
0x1060   : > { %vm1841_vm11 = vcmp.gt.f32.partialorder %v3870_v32, 0.0  ;;  %vm1843_vm12 = vcmp.gt.f32.partialorder %v3878_v11, 0.0 }
0x1061   : > { %v3875_v34 = vsel %vm1841_vm11, -inf, %v3826_v35  ;;  %v3883_v31 = vsel %vm1843_vm12, -inf, %v3824_v12 }
0x1062   : > { %1849 = vmax.xlane.f32.xlu0 %v3875_v34  ;;  %1853 = vmax.xlane.f32.xlu1 %v3883_v31 }
0x10e6   : > { %v1852_v40 = vpop.xlane.xlu0 %1851 }
0x10e7   : > { %vm1858_vm13 = vcmp.eq.f32.partialorder %v3857_v19, %v1852_v40  ;;  %v1856_v59 = vpop.xlane.xlu1 %1855 }
0x10e8   : > { %v1862_v25 = vsel %vm1858_vm13, %v3484_v50, 128  ;;  %vm1860_vm14 = vcmp.eq.f32.partialorder %v3866_v27, %v1856_v59 }
0x10e9   : > { %v1880_v43 = vshra.s32 %v1862_v25, 16  ;;  %v1864_v54 = vsel %vm1860_vm14, %v3484_v50, 128  ;;  %v1879_v15 = vand.u32 65535, %v1862_v25 }
0x10ea   : > { %v1908_v17 = vshra.s32 %v1864_v54, 16  ;;  %v1907_v49 = vand.u32 65535, %v1864_v54 }
0x10eb   : > { %v1882_v44 = vcvt.s32.f32 %v1880_v43  ;;  %v1850_v5 = vpop.xlane.xlu0 %1849  ;;  %v1854_v46 = vpop.xlane.xlu1 %1853  ;;  %v1881_v22 = vcvt.s32.f32 %v1879_v15 }
0x10ec   : > { %vm1857_vm15 = vcmp.eq.f32.partialorder %v3875_v34, %v1850_v5  ;;  %v1910_v6 = vcvt.s32.f32 %v1908_v17  ;;  %vm1859_vm0 = vcmp.eq.f32.partialorder %v3883_v31, %v1854_v46  ;;  %v1909_v18 = vcvt.s32.f32 %v1907_v49 }
0x10ed   : > { %v1861_v13 = vsel %vm1857_vm15, %v3484_v50, 128  ;;  %1883 = vmin.xlane.f32.xlu0 %v1882_v44  ;;  %v1863_v24 = vsel %vm1859_vm0, %v3484_v50, 128 }
0x10ee   : > { %v1866_v7 = vshra.s32 %v1861_v13, 16  ;;  %1911 = vmin.xlane.f32.xlu1 %v1910_v6  ;;  %v1894_v48 = vshra.s32 %v1863_v24, 16  ;;  %v1865_v21 = vand.u32 65535, %v1861_v13  ;;  %v1893_v61 = vand.u32 65535, %v1863_v24 }
0x10f0   : > { %v1868_v8 = vcvt.s32.f32 %v1866_v7  ;;  %v1896_v57 = vcvt.s32.f32 %v1894_v48  ;;  %v1867_v20 = vcvt.s32.f32 %v1865_v21  ;;  %v1895_v62 = vcvt.s32.f32 %v1893_v61 }
0x10f2   : > { %1869 = vmin.xlane.f32.xlu0 %v1868_v8  ;;  %1897 = vmin.xlane.f32.xlu1 %v1896_v57 }
0x1176   : > { %v1884_v16 = vpop.xlane.xlu0 %1883 }
0x1177   : > { %vm1885_vm1 = vcmp.eq.f32.partialorder %v1882_v44, %v1884_v16  ;;  %v1912_v51 = vpop.xlane.xlu1 %1911  ;;  %v1890_v4 = vcvt.f32.s32 %v1884_v16 }
0x1178   : > { %v1886_v52 = vsel %vm1885_vm1, %v1881_v22, inf  ;;  %vm1913_vm2 = vcmp.eq.f32.partialorder %v1910_v6, %v1912_v51  ;;  %v1918_v29 = vcvt.f32.s32 %v1912_v51 }
0x1179   : > { %1887 = vmin.xlane.f32.xlu0 %v1886_v52  ;;  %v1914_v53 = vsel %vm1913_vm2, %v1909_v18, inf  ;;  %v1891_v3 = vshll.u32 %v1890_v4, 16 }
0x117a   : > { %1915 = vmin.xlane.f32.xlu1 %v1914_v53  ;;  %v1919_v58 = vshll.u32 %v1918_v29, 16 }
0x117b   : > { %v1870_v14 = vpop.xlane.xlu0 %1869  ;;  %v1898_v23 = vpop.xlane.xlu1 %1897 }
0x117c   : > { %vm1871_vm3 = vcmp.eq.f32.partialorder %v1868_v8, %v1870_v14  ;;  %vm1899_vm4 = vcmp.eq.f32.partialorder %v1896_v57, %v1898_v23  ;;  %v1876_v47 = vcvt.f32.s32 %v1870_v14  ;;  %v1904_v39 = vcvt.f32.s32 %v1898_v23 }
0x117d   : > { %v1872_v1 = vsel %vm1871_vm3, %v1867_v20, inf  ;;  %v1900_v28 = vsel %vm1899_vm4, %v1895_v62, inf }
0x117e   : > { %1873 = vmin.xlane.f32.xlu0 %v1872_v1  ;;  %1901 = vmin.xlane.f32.xlu1 %v1900_v28  ;;  %v1877_v26 = vshll.u32 %v1876_v47, 16  ;;  %v1905_v59 = vshll.u32 %v1904_v39, 16 }
0x1202   : > { %v1888_v37 = vpop.xlane.xlu0 %1887 }
0x1203   : > { %v1889_v38 = vcvt.f32.s32 %v1888_v37  ;;  %v1916_v33 = vpop.xlane.xlu1 %1915 }
0x1204   : > { %v1917_v45 = vcvt.f32.s32 %v1916_v33 }
0x1205   : > { %v1892_v63 = vadd.s32 %v1891_v3, %v1889_v38 }
0x1206   : > { %v1920_v2 = vadd.s32 %v1919_v58, %v1917_v45 }
0x1207   : > { %vm1922_vm5 = vcmp.eq.s32.totalorder %v3484_v50, %v1892_v63  ;;  %v1874_v36 = vpop.xlane.xlu0 %1873  ;;  %v1902_v43 = vpop.xlane.xlu1 %1901 }
0x1208   : > { %v1875_v40 = vcvt.f32.s32 %v1874_v36  ;;  %v3896_v25 = vsel %vm1922_vm5, 1.0, %v3300_v0  ;;  %vm1924_vm6 = vcmp.eq.s32.totalorder %v3484_v50, %v1920_v2  ;;  %v1903_v44 = vcvt.f32.s32 %v1902_v43 }
0x1209   : > { %vm1938_vm7 = vcmp.gt.f32.partialorder %v3896_v25, 0.0  ;;  %v3904_v5 = vsel %vm1924_vm6, 1.0, %v3300_v0 }
0x120a   : > { %v1878_v54 = vadd.s32 %v1877_v26, %v1875_v40  ;;  %v3901_v17 = vsel %vm1938_vm7, -inf, %v3857_v19  ;;  %vm1940_vm8 = vcmp.gt.f32.partialorder %v3904_v5, 0.0  ;;  %v1906_v6 = vadd.s32 %v1905_v59, %v1903_v44 }
0x120b   : > { %1947 = vmax.xlane.f32.xlu0 %v3901_v17  ;;  %v3910_v13 = vsel %vm1940_vm8, -inf, %v3866_v27 }
0x120c   : > { %vm1921_vm9 = vcmp.eq.s32.totalorder %v3484_v50, %v1878_v54  ;;  %1951 = vmax.xlane.f32.xlu1 %v3910_v13  ;;  %vm1923_vm10 = vcmp.eq.s32.totalorder %v3484_v50, %v1906_v6 }
0x120d   : > { %v3914_v46 = vsel %vm1921_vm9, 1.0, %v3300_v0  ;;  %v3922_v7 = vsel %vm1923_vm10, 1.0, %v3300_v0 }
0x120e   : > { %vm1937_vm11 = vcmp.gt.f32.partialorder %v3914_v46, 0.0  ;;  %vm1939_vm12 = vcmp.gt.f32.partialorder %v3922_v7, 0.0 }
0x120f   : > { %v3919_v19 = vsel %vm1937_vm11, -inf, %v3875_v34  ;;  %v3927_v27 = vsel %vm1939_vm12, -inf, %v3883_v31 }
0x1210   : > { %1945 = vmax.xlane.f32.xlu0 %v3919_v19  ;;  %1949 = vmax.xlane.f32.xlu1 %v3927_v27 }
0x1294   : > { %v1948_v24 = vpop.xlane.xlu0 %1947 }
0x1295   : > { %vm1954_vm13 = vcmp.eq.f32.partialorder %v3901_v17, %v1948_v24  ;;  %v1952_v48 = vpop.xlane.xlu1 %1951 }
0x1296   : > { %v1958_v8 = vsel %vm1954_vm13, %v3484_v50, 128  ;;  %vm1956_vm14 = vcmp.eq.f32.partialorder %v3910_v13, %v1952_v48 }
0x1297   : > { %v1976_v34 = vshra.s32 %v1958_v8, 16  ;;  %v1960_v57 = vsel %vm1956_vm14, %v3484_v50, 128  ;;  %v1975_v20 = vand.u32 65535, %v1958_v8  ;;  %v1934_v8 = vadd.f32 %v3896_v25, %v3852_v30 }
0x1298   : > { %v2004_v49 = vshra.s32 %v1960_v57, 16  ;;  %v2003_v14 = vand.u32 65535, %v1960_v57  ;;  %v1936_v57 = vadd.f32 %v3904_v5, %v3860_v10  ;;  %v1933_v5 = vadd.f32 %v3914_v46, %v3870_v32 }
0x1299   : > { %v1978_v15 = vcvt.s32.f32 %v1976_v34  ;;  %v1946_v22 = vpop.xlane.xlu0 %1945  ;;  %v1950_v21 = vpop.xlane.xlu1 %1949  ;;  %v1977_v62 = vcvt.s32.f32 %v1975_v20 }
0x129a   : > { %vm1953_vm15 = vcmp.eq.f32.partialorder %v3919_v19, %v1946_v22  ;;  %v2006_v31 = vcvt.s32.f32 %v2004_v49  ;;  %vm1955_vm0 = vcmp.eq.f32.partialorder %v3927_v27, %v1950_v21  ;;  %v2005_v28 = vcvt.s32.f32 %v2003_v14 }
0x129b   : > { %v1957_v16 = vsel %vm1953_vm15, %v3484_v50, 128  ;;  %1979 = vmin.xlane.f32.xlu0 %v1978_v15  ;;  %v1959_v51 = vsel %vm1955_vm0, %v3484_v50, 128 }
0x129c   : > { %v1962_v18 = vshra.s32 %v1957_v16, 16  ;;  %2007 = vmin.xlane.f32.xlu1 %v2006_v31  ;;  %v1990_v61 = vshra.s32 %v1959_v51, 16  ;;  %v1961_v1 = vand.u32 65535, %v1957_v16  ;;  %v1989_v37 = vand.u32 65535, %v1959_v51 }
0x129e   : > { %v1964_v52 = vcvt.s32.f32 %v1962_v18  ;;  %v1992_v53 = vcvt.s32.f32 %v1990_v61  ;;  %v1963_v38 = vcvt.s32.f32 %v1961_v1  ;;  %v1991_v33 = vcvt.s32.f32 %v1989_v37 }
0x12a0   : > { %1965 = vmin.xlane.f32.xlu0 %v1964_v52  ;;  %1993 = vmin.xlane.f32.xlu1 %v1992_v53 }
0x1324   : > { %v1980_v23 = vpop.xlane.xlu0 %1979 }
0x1325   : > { %vm1981_vm1 = vcmp.eq.f32.partialorder %v1978_v15, %v1980_v23  ;;  %v2008_v4 = vpop.xlane.xlu1 %2007  ;;  %v1986_v45 = vcvt.f32.s32 %v1980_v23 }
0x1326   : > { %v1982_v29 = vsel %vm1981_vm1, %v1977_v62, inf  ;;  %vm2009_vm2 = vcmp.eq.f32.partialorder %v2006_v31, %v2008_v4  ;;  %v2014_v2 = vcvt.f32.s32 %v2008_v4 }
0x1327   : > { %1983 = vmin.xlane.f32.xlu0 %v1982_v29  ;;  %v2010_v3 = vsel %vm2009_vm2, %v2005_v28, inf  ;;  %v1987_v26 = vshll.u32 %v1986_v45, 16 }
0x1328   : > { %2011 = vmin.xlane.f32.xlu1 %v2010_v3  ;;  %v2015_v54 = vshll.u32 %v2014_v2, 16 }
0x1329   : > { %v1966_v47 = vpop.xlane.xlu0 %1965  ;;  %v1994_v58 = vpop.xlane.xlu1 %1993 }
0x132a   : > { %vm1967_vm3 = vcmp.eq.f32.partialorder %v1964_v52, %v1966_v47  ;;  %vm1995_vm4 = vcmp.eq.f32.partialorder %v1992_v53, %v1994_v58  ;;  %v1972_v59 = vcvt.f32.s32 %v1966_v47  ;;  %v2000_v44 = vcvt.f32.s32 %v1994_v58 }
0x132b   : > { %v1968_v39 = vsel %vm1967_vm3, %v1963_v38, inf  ;;  %v1996_v63 = vsel %vm1995_vm4, %v1991_v33, inf  ;;  %v1935_v53 = vadd.f32 %v3922_v7, %v3878_v11 }
0x132c   : > { %1969 = vmin.xlane.f32.xlu0 %v1968_v39  ;;  %1997 = vmin.xlane.f32.xlu1 %v1996_v63  ;;  %v1973_v15 = vshll.u32 %v1972_v59, 16  ;;  %v2001_v31 = vshll.u32 %v2000_v44, 16 }
0x13b0   : > { %v1984_v36 = vpop.xlane.xlu0 %1983 }
0x13b1   : > { %v1985_v40 = vcvt.f32.s32 %v1984_v36  ;;  %v2012_v43 = vpop.xlane.xlu1 %2011 }
0x13b2   : > { %v2013_v24 = vcvt.f32.s32 %v2012_v43 }
0x13b3   : > { %v1988_v6 = vadd.s32 %v1987_v26, %v1985_v40 }
0x13b4   : > { %v2016_v48 = vadd.s32 %v2015_v54, %v2013_v24 }
0x13b5   : > { %vm2018_vm5 = vcmp.eq.s32.totalorder %v3484_v50, %v1988_v6  ;;  %v1970_v34 = vpop.xlane.xlu0 %1969  ;;  %v1998_v16 = vpop.xlane.xlu1 %1997 }
0x13b6   : > { %v1971_v49 = vcvt.f32.s32 %v1970_v34  ;;  %v3001_v22 = vsel %vm2018_vm5, 1.0, %v3300_v0  ;;  %vm2020_vm6 = vcmp.eq.s32.totalorder %v3484_v50, %v2016_v48  ;;  %v1999_v30 = vcvt.f32.s32 %v1998_v16 }
0x13b7   : > { %vm2034_vm7 = vcmp.gt.f32.partialorder %v3001_v22, 0.0  ;;  %v3945_v21 = vadd.f32 %v3001_v22, %v1934_v8  ;;  %v3003_v51 = vsel %vm2020_vm6, 1.0, %v3300_v0 }
0x13b8   : > { %v1974_v18 = vadd.s32 %v1973_v15, %v1971_v49  ;;  %v3948_v25 = vsel %vm2034_vm7, -inf, %v3901_v17  ;;  %vm2036_vm8 = vcmp.gt.f32.partialorder %v3003_v51, 0.0  ;;  %v3952_v10 = vadd.f32 %v3003_v51, %v1936_v57 }
0x13b9   : > { %2043 = vmax.xlane.f32.xlu0 %v3948_v25  ;;  %v2002_v52 = vadd.s32 %v2001_v31, %v1999_v30  ;;  %v3958_v61 = vsel %vm2036_vm8, -inf, %v3910_v13 }
0x13ba   : > { %vm2017_vm9 = vcmp.eq.s32.totalorder %v3484_v50, %v1974_v18  ;;  %2047 = vmax.xlane.f32.xlu1 %v3958_v61 }
0x13bb   : > { %v3000_v17 = vsel %vm2017_vm9, 1.0, %v3300_v0  ;;  %vm2019_vm10 = vcmp.eq.s32.totalorder %v3484_v50, %v2002_v52 }
0x13bc   : > { %vm2033_vm11 = vcmp.gt.f32.partialorder %v3000_v17, 0.0  ;;  %v3965_v20 = vadd.f32 %v3000_v17, %v1933_v5  ;;  %v3002_v46 = vsel %vm2019_vm10, 1.0, %v3300_v0 }
0x13bd   : > { %v3968_v32 = vsel %vm2033_vm11, -inf, %v3919_v19  ;;  %vm2035_vm12 = vcmp.gt.f32.partialorder %v3002_v46, 0.0  ;;  %v3972_v13 = vadd.f32 %v3002_v46, %v1935_v53 }
0x13be   : > { %2041 = vmax.xlane.f32.xlu0 %v3968_v32  ;;  %v3975_v14 = vsel %vm2035_vm12, -inf, %v3927_v27 }
0x13bf   : > { %2045 = vmax.xlane.f32.xlu1 %v3975_v14 }
0x1442   : > { %v2044_v11 = vpop.xlane.xlu0 %2043 }
0x1443   : > { %vm2050_vm13 = vcmp.eq.f32.partialorder %v3948_v25, %v2044_v11  ;;  %v2048_v62 = vpop.xlane.xlu1 %2047 }
0x1444   : > { %v2054_v7 = vsel %vm2050_vm13, %v3484_v50, 128  ;;  %vm2052_vm14 = vcmp.eq.f32.partialorder %v3958_v61, %v2048_v62 }
0x1445   : > { %v2072_v19 = vshra.s32 %v2054_v7, 16  ;;  %v2056_v23 = vsel %vm2052_vm14, %v3484_v50, 128  ;;  %v2071_v39 = vand.u32 65535, %v2054_v7 }
0x1446   : > { %v2100_v28 = vshra.s32 %v2056_v23, 16  ;;  %v2099_v63 = vand.u32 65535, %v2056_v23 }
0x1447   : > { %v2074_v1 = vcvt.s32.f32 %v2072_v19  ;;  %v2042_v4 = vpop.xlane.xlu0 %2041  ;;  %v2073_v45 = vcvt.s32.f32 %v2071_v39 }
0x1448   : > { %vm2049_vm15 = vcmp.eq.f32.partialorder %v3968_v32, %v2042_v4  ;;  %v2102_v27 = vcvt.s32.f32 %v2100_v28  ;;  %v2046_v37 = vpop.xlane.xlu1 %2045  ;;  %v2101_v26 = vcvt.s32.f32 %v2099_v63 }
0x1449   : > { %v2053_v29 = vsel %vm2049_vm15, %v3484_v50, 128  ;;  %2075 = vmin.xlane.f32.xlu0 %v2074_v1  ;;  %vm2051_vm0 = vcmp.eq.f32.partialorder %v3975_v14, %v2046_v37 }
0x144a   : > { %v2058_v3 = vshra.s32 %v2053_v29, 16  ;;  %v2055_v38 = vsel %vm2051_vm0, %v3484_v50, 128  ;;  %2103 = vmin.xlane.f32.xlu1 %v2102_v27  ;;  %v2057_v36 = vand.u32 65535, %v2053_v29 }
0x144b   : > { %v2086_v33 = vshra.s32 %v2055_v38, 16  ;;  %v2085_v43 = vand.u32 65535, %v2055_v38 }
0x144c   : > { %v2060_v47 = vcvt.s32.f32 %v2058_v3  ;;  %v2059_v44 = vcvt.s32.f32 %v2057_v36 }
0x144d   : > { %v2088_v58 = vcvt.s32.f32 %v2086_v33  ;;  %v2087_v24 = vcvt.s32.f32 %v2085_v43 }
0x144e   : > { %2061 = vmin.xlane.f32.xlu0 %v2060_v47 }
0x144f   : > { %2089 = vmin.xlane.f32.xlu1 %v2088_v58 }
0x14d2   : > { %v2076_v2 = vpop.xlane.xlu0 %2075 }
0x14d3   : > { %vm2077_vm1 = vcmp.eq.f32.partialorder %v2074_v1, %v2076_v2  ;;  %v2104_v40 = vpop.xlane.xlu1 %2103  ;;  %v2082_v57 = vcvt.f32.s32 %v2076_v2 }
0x14d4   : > { %v2078_v59 = vsel %vm2077_vm1, %v2073_v45, inf  ;;  %vm2105_vm2 = vcmp.eq.f32.partialorder %v2102_v27, %v2104_v40  ;;  %v2110_v15 = vcvt.f32.s32 %v2104_v40 }
0x14d5   : > { %2079 = vmin.xlane.f32.xlu0 %v2078_v59  ;;  %v2106_v54 = vsel %vm2105_vm2, %v2101_v26, inf  ;;  %v2083_v22 = vshll.u32 %v2082_v57, 16 }
0x14d6   : > { %2107 = vmin.xlane.f32.xlu1 %v2106_v54  ;;  %v2111_v30 = vshll.u32 %v2110_v15, 16 }
0x14d7   : > { %v2062_v6 = vpop.xlane.xlu0 %2061 }
0x14d8   : > { %vm2063_vm3 = vcmp.eq.f32.partialorder %v2060_v47, %v2062_v6  ;;  %v2090_v8 = vpop.xlane.xlu1 %2089  ;;  %v2068_v16 = vcvt.f32.s32 %v2062_v6 }
0x14d9   : > { %v2064_v48 = vsel %vm2063_vm3, %v2059_v44, inf  ;;  %vm2091_vm4 = vcmp.eq.f32.partialorder %v2088_v58, %v2090_v8  ;;  %v2096_v51 = vcvt.f32.s32 %v2090_v8 }
0x14da   : > { %2065 = vmin.xlane.f32.xlu0 %v2064_v48  ;;  %v2092_v34 = vsel %vm2091_vm4, %v2087_v24, inf  ;;  %v2069_v46 = vshll.u32 %v2068_v16, 16 }
0x14db   : > { %2093 = vmin.xlane.f32.xlu1 %v2092_v34  ;;  %v2097_v62 = vshll.u32 %v2096_v51, 16 }
0x155e   : > { %v2080_v49 = vpop.xlane.xlu0 %2079 }
0x155f   : > { %v2081_v31 = vcvt.f32.s32 %v2080_v49  ;;  %v2108_v18 = vpop.xlane.xlu1 %2107 }
0x1560   : > { %v2109_v52 = vcvt.f32.s32 %v2108_v18 }
0x1561   : > { %v2084_v5 = vadd.s32 %v2083_v22, %v2081_v31 }
0x1562   : > { %v2112_v17 = vadd.s32 %v2111_v30, %v2109_v52 }
0x1563   : > { %vm2114_vm5 = vcmp.eq.s32.totalorder %v3484_v50, %v2084_v5  ;;  %v2066_v53 = vpop.xlane.xlu0 %2065 }
0x1564   : > { %v2067_v11 = vcvt.f32.s32 %v2066_v53  ;;  %v3005_v7 = vsel %vm2114_vm5, 1.0, %v3300_v0  ;;  %vm2116_vm6 = vcmp.eq.s32.totalorder %v3484_v50, %v2112_v17  ;;  %v2094_v19 = vpop.xlane.xlu1 %2093 }
0x1565   : > { %vm2130_vm7 = vcmp.gt.f32.partialorder %v3005_v7, 0.0  ;;  %v3990_v23 = vadd.f32 %v3005_v7, %v3945_v21  ;;  %v2095_v28 = vcvt.f32.s32 %v2094_v19  ;;  %v3007_v27 = vsel %vm2116_vm6, 1.0, %v3300_v0 }
0x1566   : > { %v2070_v1 = vadd.s32 %v2069_v46, %v2067_v11  ;;  %v3993_v4 = vsel %vm2130_vm7, -inf, %v3948_v25  ;;  %vm2132_vm8 = vcmp.gt.f32.partialorder %v3007_v27, 0.0  ;;  %v3998_v29 = vadd.f32 %v3007_v27, %v3952_v10 }
0x1567   : > { %2139 = vmax.xlane.f32.xlu0 %v3993_v4  ;;  %v2098_v37 = vadd.s32 %v2097_v62, %v2095_v28  ;;  %v4002_v3 = vsel %vm2132_vm8, -inf, %v3958_v61 }
0x1568   : > { %vm2113_vm9 = vcmp.eq.s32.totalorder %v3484_v50, %v2070_v1  ;;  %2143 = vmax.xlane.f32.xlu1 %v4002_v3 }
0x1569   : > { %v3004_v21 = vsel %vm2113_vm9, 1.0, %v3300_v0  ;;  %vm2115_vm10 = vcmp.eq.s32.totalorder %v3484_v50, %v2098_v37 }
0x156a   : > { %vm2129_vm11 = vcmp.gt.f32.partialorder %v3004_v21, 0.0  ;;  %v4008_v25 = vadd.f32 %v3004_v21, %v3965_v20  ;;  %v3006_v10 = vsel %vm2115_vm10, 1.0, %v3300_v0 }
0x156b   : > { %v4011_v38 = vsel %vm2129_vm11, -inf, %v3968_v32  ;;  %vm2131_vm12 = vcmp.gt.f32.partialorder %v3006_v10, 0.0  ;;  %v4016_v61 = vadd.f32 %v3006_v10, %v3972_v13 }
0x156c   : > { %2137 = vmax.xlane.f32.xlu0 %v4011_v38  ;;  %v4019_v47 = vsel %vm2131_vm12, -inf, %v3975_v14 }
0x156d   : > { %2141 = vmax.xlane.f32.xlu1 %v4019_v47 }
0x15f0   : > { %v2140_v33 = vpop.xlane.xlu0 %2139 }
0x15f1   : > { %vm2146_vm13 = vcmp.eq.f32.partialorder %v3993_v4, %v2140_v33  ;;  %v2144_v32 = vpop.xlane.xlu1 %2143 }
0x15f2   : > { %v2150_v20 = vsel %vm2146_vm13, %v3484_v50, 128  ;;  %vm2148_vm14 = vcmp.eq.f32.partialorder %v4002_v3, %v2144_v32 }
0x15f3   : > { %v2168_v58 = vshra.s32 %v2150_v20, 16  ;;  %v2152_v39 = vsel %vm2148_vm14, %v3484_v50, 128  ;;  %v2167_v44 = vand.u32 65535, %v2150_v20 }
0x15f4   : > { %v2196_v45 = vshra.s32 %v2152_v39, 16  ;;  %v2195_v6 = vand.u32 65535, %v2152_v39 }
0x15f5   : > { %v2170_v63 = vcvt.s32.f32 %v2168_v58  ;;  %v2138_v13 = vpop.xlane.xlu0 %2137  ;;  %v2169_v24 = vcvt.s32.f32 %v2167_v44 }
0x15f6   : > { %vm2145_vm15 = vcmp.eq.f32.partialorder %v4011_v38, %v2138_v13  ;;  %v2198_v14 = vcvt.s32.f32 %v2196_v45  ;;  %v2142_v36 = vpop.xlane.xlu1 %2141  ;;  %v2197_v34 = vcvt.s32.f32 %v2195_v6 }
0x15f7   : > { %v2149_v2 = vsel %vm2145_vm15, %v3484_v50, 128  ;;  %2171 = vmin.xlane.f32.xlu0 %v2170_v63  ;;  %vm2147_vm0 = vcmp.eq.f32.partialorder %v4019_v47, %v2142_v36 }
0x15f8   : > { %v2154_v26 = vshra.s32 %v2149_v2, 16  ;;  %v2151_v40 = vsel %vm2147_vm0, %v3484_v50, 128  ;;  %2199 = vmin.xlane.f32.xlu1 %v2198_v14  ;;  %v2153_v48 = vand.u32 65535, %v2149_v2 }
0x15f9   : > { %v2182_v43 = vshra.s32 %v2151_v40, 16  ;;  %v2181_v49 = vand.u32 65535, %v2151_v40 }
0x15fa   : > { %v2156_v59 = vcvt.s32.f32 %v2154_v26  ;;  %v2155_v31 = vcvt.s32.f32 %v2153_v48 }
0x15fb   : > { %v2184_v54 = vcvt.s32.f32 %v2182_v43  ;;  %v2183_v18 = vcvt.s32.f32 %v2181_v49 }
0x15fc   : > { %2157 = vmin.xlane.f32.xlu0 %v2156_v59 }
0x15fd   : > { %2185 = vmin.xlane.f32.xlu1 %v2184_v54 }
0x1680   : > { %v2172_v8 = vpop.xlane.xlu0 %2171 }
0x1681   : > { %vm2173_vm1 = vcmp.eq.f32.partialorder %v2170_v63, %v2172_v8  ;;  %v2200_v57 = vpop.xlane.xlu1 %2199  ;;  %v2178_v52 = vcvt.f32.s32 %v2172_v8 }
0x1682   : > { %v2174_v15 = vsel %vm2173_vm1, %v2169_v24, inf  ;;  %vm2201_vm2 = vcmp.eq.f32.partialorder %v2198_v14, %v2200_v57  ;;  %v2206_v17 = vcvt.f32.s32 %v2200_v57 }
0x1683   : > { %2175 = vmin.xlane.f32.xlu0 %v2174_v15  ;;  %v2202_v22 = vsel %vm2201_vm2, %v2197_v34, inf  ;;  %v2179_v46 = vshll.u32 %v2178_v52, 16 }
0x1684   : > { %2203 = vmin.xlane.f32.xlu1 %v2202_v22  ;;  %v2207_v19 = vshll.u32 %v2206_v17, 16 }
0x1685   : > { %v2158_v16 = vpop.xlane.xlu0 %2157 }
0x1686   : > { %vm2159_vm3 = vcmp.eq.f32.partialorder %v2156_v59, %v2158_v16  ;;  %v2186_v30 = vpop.xlane.xlu1 %2185  ;;  %v2164_v7 = vcvt.f32.s32 %v2158_v16 }
0x1687   : > { %v2160_v51 = vsel %vm2159_vm3, %v2155_v31, inf  ;;  %vm2187_vm4 = vcmp.eq.f32.partialorder %v2184_v54, %v2186_v30  ;;  %v2192_v1 = vcvt.f32.s32 %v2186_v30 }
0x1688   : > { %2161 = vmin.xlane.f32.xlu0 %v2160_v51  ;;  %v2188_v5 = vsel %vm2187_vm4, %v2183_v18, inf  ;;  %v2165_v10 = vshll.u32 %v2164_v7, 16 }
0x1689   : > { %2189 = vmin.xlane.f32.xlu1 %v2188_v5  ;;  %v2193_v32 = vshll.u32 %v2192_v1, 16 }
0x170c   : > { %v2176_v53 = vpop.xlane.xlu0 %2175 }
0x170d   : > { %v2177_v11 = vcvt.f32.s32 %v2176_v53  ;;  %v2204_v62 = vpop.xlane.xlu1 %2203 }
0x170e   : > { %v2205_v27 = vcvt.f32.s32 %v2204_v62 }
0x170f   : > { %v2180_v28 = vadd.s32 %v2179_v46, %v2177_v11 }
0x1710   : > { %v2208_v37 = vadd.s32 %v2207_v19, %v2205_v27 }
0x1711   : > { %vm2210_vm5 = vcmp.eq.s32.totalorder %v3484_v50, %v2180_v28  ;;  %v2162_v21 = vpop.xlane.xlu0 %2161 }
0x1712   : > { %v2163_v33 = vcvt.f32.s32 %v2162_v21  ;;  %v3009_v20 = vsel %vm2210_vm5, 1.0, %v3300_v0  ;;  %vm2212_vm6 = vcmp.eq.s32.totalorder %v3484_v50, %v2208_v37  ;;  %v2190_v58 = vpop.xlane.xlu1 %2189 }
0x1713   : > { %vm2226_vm7 = vcmp.gt.f32.partialorder %v3009_v20, 0.0  ;;  %v4034_v39 = vadd.f32 %v3009_v20, %v3990_v23  ;;  %v2191_v45 = vcvt.f32.s32 %v2190_v58  ;;  %v3011_v14 = vsel %vm2212_vm6, 1.0, %v3300_v0 }
0x1714   : > { %v2166_v63 = vadd.s32 %v2165_v10, %v2163_v33  ;;  %v4037_v13 = vsel %vm2226_vm7, -inf, %v3993_v4  ;;  %vm2228_vm8 = vcmp.gt.f32.partialorder %v3011_v14, 0.0  ;;  %v4042_v2 = vadd.f32 %v3011_v14, %v3998_v29 }
0x1715   : > { %2235 = vmax.xlane.f32.xlu0 %v4037_v13  ;;  %v2194_v36 = vadd.s32 %v2193_v32, %v2191_v45  ;;  %v4046_v26 = vsel %vm2228_vm8, -inf, %v4002_v3 }
0x1716   : > { %vm2209_vm9 = vcmp.eq.s32.totalorder %v3484_v50, %v2166_v63  ;;  %2239 = vmax.xlane.f32.xlu1 %v4046_v26 }
0x1717   : > { %v3008_v23 = vsel %vm2209_vm9, 1.0, %v3300_v0  ;;  %vm2211_vm10 = vcmp.eq.s32.totalorder %v3484_v50, %v2194_v36 }
0x1718   : > { %vm2225_vm11 = vcmp.gt.f32.partialorder %v3008_v23, 0.0  ;;  %v4052_v4 = vadd.f32 %v3008_v23, %v4008_v25  ;;  %v3010_v29 = vsel %vm2211_vm10, 1.0, %v3300_v0 }
0x1719   : > { %v4055_v40 = vsel %vm2225_vm11, -inf, %v4011_v38  ;;  %vm2227_vm12 = vcmp.gt.f32.partialorder %v3010_v29, 0.0  ;;  %v4060_v3 = vadd.f32 %v3010_v29, %v4016_v61 }
0x171a   : > { %2233 = vmax.xlane.f32.xlu0 %v4055_v40  ;;  %v4063_v59 = vsel %vm2227_vm12, -inf, %v4019_v47 }
0x171b   : > { %2237 = vmax.xlane.f32.xlu1 %v4063_v59 }
0x179e   : > { %v2236_v43 = vpop.xlane.xlu0 %2235 }
0x179f   : > { %vm2242_vm13 = vcmp.eq.f32.partialorder %v4037_v13, %v2236_v43  ;;  %v2240_v38 = vpop.xlane.xlu1 %2239 }
0x17a0   : > { %v2246_v25 = vsel %vm2242_vm13, %v3484_v50, 128  ;;  %vm2244_vm14 = vcmp.eq.f32.partialorder %v4046_v26, %v2240_v38 }
0x17a1   : > { %v2264_v54 = vshra.s32 %v2246_v25, 16  ;;  %v2248_v44 = vsel %vm2244_vm14, %v3484_v50, 128  ;;  %v2263_v31 = vand.u32 65535, %v2246_v25 }
0x17a2   : > { %v2292_v24 = vshra.s32 %v2248_v44, 16  ;;  %v2291_v16 = vand.u32 65535, %v2248_v44 }
0x17a3   : > { %v2266_v6 = vcvt.s32.f32 %v2264_v54  ;;  %v2234_v61 = vpop.xlane.xlu0 %2233  ;;  %v2265_v18 = vcvt.s32.f32 %v2263_v31 }
0x17a4   : > { %vm2241_vm15 = vcmp.eq.f32.partialorder %v4055_v40, %v2234_v61  ;;  %v2294_v47 = vcvt.s32.f32 %v2292_v24  ;;  %v2238_v48 = vpop.xlane.xlu1 %2237  ;;  %v2293_v5 = vcvt.s32.f32 %v2291_v16 }
0x17a5   : > { %v2245_v8 = vsel %vm2241_vm15, %v3484_v50, 128  ;;  %2267 = vmin.xlane.f32.xlu0 %v2266_v6  ;;  %vm2243_vm0 = vcmp.eq.f32.partialorder %v4063_v59, %v2238_v48 }
0x17a6   : > { %v2250_v34 = vshra.s32 %v2245_v8, 16  ;;  %v2247_v57 = vsel %vm2243_vm0, %v3484_v50, 128  ;;  %2295 = vmin.xlane.f32.xlu1 %v2294_v47  ;;  %v2249_v51 = vand.u32 65535, %v2245_v8 }
0x17a7   : > { %v2278_v49 = vshra.s32 %v2247_v57, 16  ;;  %v2277_v53 = vand.u32 65535, %v2247_v57 }
0x17a8   : > { %v2252_v15 = vcvt.s32.f32 %v2250_v34  ;;  %v2251_v11 = vcvt.s32.f32 %v2249_v51 }
0x17a9   : > { %v2280_v22 = vcvt.s32.f32 %v2278_v49  ;;  %v2279_v62 = vcvt.s32.f32 %v2277_v53 }
0x17aa   : > { %2253 = vmin.xlane.f32.xlu0 %v2252_v15 }
0x17ab   : > { %2281 = vmin.xlane.f32.xlu1 %v2280_v22 }
0x182e   : > { %v2268_v30 = vpop.xlane.xlu0 %2267 }
0x182f   : > { %vm2269_vm1 = vcmp.eq.f32.partialorder %v2266_v6, %v2268_v30  ;;  %v2296_v52 = vpop.xlane.xlu1 %2295  ;;  %v2274_v27 = vcvt.f32.s32 %v2268_v30 }
0x1830   : > { %v2270_v17 = vsel %vm2269_vm1, %v2265_v18, inf  ;;  %vm2297_vm2 = vcmp.eq.f32.partialorder %v2294_v47, %v2296_v52  ;;  %v2302_v37 = vcvt.f32.s32 %v2296_v52 }
0x1831   : > { %2271 = vmin.xlane.f32.xlu0 %v2270_v17  ;;  %v2298_v46 = vsel %vm2297_vm2, %v2293_v5, inf  ;;  %v2275_v10 = vshll.u32 %v2274_v27, 16 }
0x1832   : > { %2299 = vmin.xlane.f32.xlu1 %v2298_v46  ;;  %v2303_v58 = vshll.u32 %v2302_v37, 16 }
0x1833   : > { %v2254_v7 = vpop.xlane.xlu0 %2253 }
0x1834   : > { %vm2255_vm3 = vcmp.eq.f32.partialorder %v2252_v15, %v2254_v7  ;;  %v2282_v19 = vpop.xlane.xlu1 %2281  ;;  %v2260_v20 = vcvt.f32.s32 %v2254_v7 }
0x1835   : > { %v2256_v1 = vsel %vm2255_vm3, %v2251_v11, inf  ;;  %vm2283_vm4 = vcmp.eq.f32.partialorder %v2280_v22, %v2282_v19  ;;  %v2288_v63 = vcvt.f32.s32 %v2282_v19 }
0x1836   : > { %2257 = vmin.xlane.f32.xlu0 %v2256_v1  ;;  %v2284_v28 = vsel %vm2283_vm4, %v2279_v62, inf  ;;  %v2261_v29 = vshll.u32 %v2260_v20, 16 }
0x1837   : > { %2285 = vmin.xlane.f32.xlu1 %v2284_v28  ;;  %v2289_v38 = vshll.u32 %v2288_v63, 16 }
0x18ba   : > { %v2272_v21 = vpop.xlane.xlu0 %2271 }
0x18bb   : > { %v2273_v33 = vcvt.f32.s32 %v2272_v21  ;;  %v2300_v32 = vpop.xlane.xlu1 %2299 }
0x18bc   : > { %v2301_v14 = vcvt.f32.s32 %v2300_v32 }
0x18bd   : > { %v2276_v45 = vadd.s32 %v2275_v10, %v2273_v33 }
0x18be   : > { %v2304_v36 = vadd.s32 %v2303_v58, %v2301_v14 }
0x18bf   : > { %vm2306_vm5 = vcmp.eq.s32.totalorder %v3484_v50, %v2276_v45  ;;  %v2258_v23 = vpop.xlane.xlu0 %2257 }
0x18c0   : > { %v2259_v43 = vcvt.f32.s32 %v2258_v23  ;;  %v3013_v25 = vsel %vm2306_vm5, 1.0, %v3300_v0  ;;  %vm2308_vm6 = vcmp.eq.s32.totalorder %v3484_v50, %v2304_v36  ;;  %v2286_v54 = vpop.xlane.xlu1 %2285 }
0x18c1   : > { %vm2322_vm7 = vcmp.gt.f32.partialorder %v3013_v25, 0.0  ;;  %v4078_v44 = vadd.f32 %v3013_v25, %v4034_v39  ;;  %v2287_v24 = vcvt.f32.s32 %v2286_v54  ;;  %v3015_v47 = vsel %vm2308_vm6, 1.0, %v3300_v0 }
0x18c2   : > { %v2262_v6 = vadd.s32 %v2261_v29, %v2259_v43  ;;  %v4081_v61 = vsel %vm2322_vm7, -inf, %v4037_v13  ;;  %vm2324_vm8 = vcmp.gt.f32.partialorder %v3015_v47, 0.0  ;;  %v4086_v8 = vadd.f32 %v3015_v47, %v4042_v2 }
0x18c3   : > { %2331 = vmax.xlane.f32.xlu0 %v4081_v61  ;;  %v2290_v48 = vadd.s32 %v2289_v38, %v2287_v24  ;;  %v4090_v34 = vsel %vm2324_vm8, -inf, %v4046_v26 }
0x18c4   : > { %vm2305_vm9 = vcmp.eq.s32.totalorder %v3484_v50, %v2262_v6  ;;  %2335 = vmax.xlane.f32.xlu1 %v4090_v34 }
0x18c5   : > { %v3012_v39 = vsel %vm2305_vm9, 1.0, %v3300_v0  ;;  %vm2307_vm10 = vcmp.eq.s32.totalorder %v3484_v50, %v2290_v48 }
0x18c6   : > { %vm2321_vm11 = vcmp.gt.f32.partialorder %v3012_v39, 0.0  ;;  %v4096_v13 = vadd.f32 %v3012_v39, %v4052_v4  ;;  %v3014_v2 = vsel %vm2307_vm10, 1.0, %v3300_v0 }
0x18c7   : > { %v4099_v57 = vsel %vm2321_vm11, -inf, %v4055_v40  ;;  %vm2323_vm12 = vcmp.gt.f32.partialorder %v3014_v2, 0.0  ;;  %v4104_v26 = vadd.f32 %v3014_v2, %v4060_v3 }
0x18c8   : > { %2329 = vmax.xlane.f32.xlu0 %v4099_v57  ;;  %v4107_v15 = vsel %vm2323_vm12, -inf, %v4063_v59 }
0x18c9   : > { %2333 = vmax.xlane.f32.xlu1 %v4107_v15 }
0x194c   : > { %v2332_v49 = vpop.xlane.xlu0 %2331 }
0x194d   : > { %vm2338_vm13 = vcmp.eq.f32.partialorder %v4081_v61, %v2332_v49  ;;  %v2336_v40 = vpop.xlane.xlu1 %2335 }
0x194e   : > { %v2342_v4 = vsel %vm2338_vm13, %v3484_v50, 128  ;;  %vm2340_vm14 = vcmp.eq.f32.partialorder %v4090_v34, %v2336_v40 }
0x194f   : > { %v2360_v22 = vshra.s32 %v2342_v4, 16  ;;  %v2344_v31 = vsel %vm2340_vm14, %v3484_v50, 128  ;;  %v2359_v11 = vand.u32 65535, %v2342_v4 }
0x1950   : > { %v2388_v18 = vshra.s32 %v2344_v31, 16  ;;  %v2387_v7 = vand.u32 65535, %v2344_v31 }
0x1951   : > { %v2362_v16 = vcvt.s32.f32 %v2360_v22  ;;  %v2330_v3 = vpop.xlane.xlu0 %2329  ;;  %v2361_v62 = vcvt.s32.f32 %v2359_v11 }
0x1952   : > { %vm2337_vm15 = vcmp.eq.f32.partialorder %v4099_v57, %v2330_v3  ;;  %v2390_v59 = vcvt.s32.f32 %v2388_v18  ;;  %v2334_v51 = vpop.xlane.xlu1 %2333  ;;  %v2389_v28 = vcvt.s32.f32 %v2387_v7  ;;  %v1735_v7 = vsub.f32 %v3824_v12, %v3842_v42 }
0x1953   : > { %v2341_v30 = vsel %vm2337_vm15, %v3484_v50, 128  ;;  %2363 = vmin.xlane.f32.xlu0 %v2362_v16  ;;  %vm2339_vm0 = vcmp.eq.f32.partialorder %v4107_v15, %v2334_v51 }
0x1954   : > { %v2346_v5 = vshra.s32 %v2341_v30, 16  ;;  %v2343_v52 = vsel %vm2339_vm0, %v3484_v50, 128  ;;  %2391 = vmin.xlane.f32.xlu1 %v2390_v59  ;;  %v2345_v1 = vand.u32 65535, %v2341_v30 }
0x1955   : > { %v2374_v53 = vshra.s32 %v2343_v52, 16  ;;  %v2373_v21 = vand.u32 65535, %v2343_v52 }
0x1956   : > { %v2348_v17 = vcvt.s32.f32 %v2346_v5  ;;  %v2347_v33 = vcvt.s32.f32 %v2345_v1 }
0x1957   : > { %v2376_v46 = vcvt.s32.f32 %v2374_v53  ;;  %v2375_v32 = vcvt.s32.f32 %v2373_v21  ;;  %v1734_v53 = vsub.f32 %v3818_v60, %v3830_v56 }
0x1958   : > { %2349 = vmin.xlane.f32.xlu0 %v2348_v17 }
0x1959   : > { %2377 = vmin.xlane.f32.xlu1 %v2376_v46 }
0x19dc   : > { %v2364_v19 = vpop.xlane.xlu0 %2363 }
0x19dd   : > { %vm2365_vm1 = vcmp.eq.f32.partialorder %v2362_v16, %v2364_v19  ;;  %v2392_v27 = vpop.xlane.xlu1 %2391  ;;  %v2370_v14 = vcvt.f32.s32 %v2364_v19 }
0x19de   : > { %v2366_v37 = vsel %vm2365_vm1, %v2361_v62, inf  ;;  %vm2393_vm2 = vcmp.eq.f32.partialorder %v2390_v59, %v2392_v27  ;;  %v2398_v36 = vcvt.f32.s32 %v2392_v27 }
0x19df   : > { %2367 = vmin.xlane.f32.xlu0 %v2366_v37  ;;  %v2394_v10 = vsel %vm2393_vm2, %v2389_v28, inf  ;;  %v2371_v29 = vshll.u32 %v2370_v14, 16  ;;  %v3159_v14 = vld [vmem:[%s4368_s2 + $0x38] sm:$0xff]  }
0x19e0   : > { %2395 = vmin.xlane.f32.xlu1 %v2394_v10  ;;  %v2399_v54 = vshll.u32 %v2398_v36, 16  ;;  %v3160_v36 = vld [vmem:[%s4368_s2 + $0xb8] sm:$0xff]  }
0x19e1   : > { %v2350_v20 = vpop.xlane.xlu0 %2349 }
0x19e2   : > { %vm2351_vm3 = vcmp.eq.f32.partialorder %v2348_v17, %v2350_v20  ;;  %v2378_v58 = vpop.xlane.xlu1 %2377  ;;  %v2356_v25 = vcvt.f32.s32 %v2350_v20 }
0x19e3   : > { %v2352_v63 = vsel %vm2351_vm3, %v2347_v33, inf  ;;  %vm2379_vm4 = vcmp.eq.f32.partialorder %v2376_v46, %v2378_v58  ;;  %v2384_v6 = vcvt.f32.s32 %v2378_v58  ;;  %v1736_v46 = vsub.f32 %v3820_v55, %v3834_v9 }
0x19e4   : > { %2353 = vmin.xlane.f32.xlu0 %v2352_v63  ;;  %v2380_v45 = vsel %vm2379_vm4, %v2375_v32, inf  ;;  %v2357_v2 = vshll.u32 %v2356_v25, 16  ;;  %v1741_v55 = vmul.f32 1.442695, %v1735_v7  ;;  %v3157_v63 = vld [vmem:[%s4368_s2 + $0x78] sm:$0xff]   ;;  %v3164_v25 = vld [vmem:[%s4368_s2 + $0xb0] sm:$0xff]  }
0x19e5   : > { %2381 = vmin.xlane.f32.xlu1 %v2380_v45  ;;  %v2385_v40 = vshll.u32 %v2384_v6, 16  ;;  %v1743_v11 = vmul.f32 1.442695, %v1736_v46  ;;  %v3158_v45 = vld [vmem:[%s4368_s2 + $0xf8] sm:$0xff]   ;;  %3060 = vmatprep.subr.bf16.mxu0 %v3157_v63  ;;  %v3167_v6 = vld [vmem:[%s4368_s2 + $0x28] sm:$0xff]  }
0x19e6   : > { %3082 = vmatprep.subr.bf16.mxu1 %v3158_v45  ;;  %3061 = vmatpush3.bf16.msra.mxu0 %v3159_v14  ;;  %v3176_v7 = vld [vmem:[%s4368_s2 + $0x98] sm:$0xff]  }
0x19e7   : > { %3083 = vmatpush3.bf16.msra.mxu1 %v3160_v36 }
0x1a68   : > { %v2368_v23 = vpop.xlane.xlu0 %2367 }
0x1a69   : > { %v2369_v43 = vcvt.f32.s32 %v2368_v23  ;;  %v2396_v38 = vpop.xlane.xlu1 %2395  ;;  %v3161_v23 = vld [vmem:[%s4368_s2 + $0x70] sm:$0xff]  }
0x1a6a   : > { %v2397_v47 = vcvt.f32.s32 %v2396_v38  ;;  %3062 = vmatprep.subr.bf16.mxu0 %v3161_v23  ;;  %v3165_v38 = vld [vmem:[%s4368_s2 + $0x68] sm:$0xff]  }
0x1a6b   : > { %v2372_v24 = vadd.s32 %v2371_v29, %v2369_v43  ;;  %v3162_v29 = vld [vmem:[%s4368_s2 + $0xf0] sm:$0xff]  }
0x1a6c   : > { %v2400_v48 = vadd.s32 %v2399_v54, %v2397_v47  ;;  %v3163_v43 = vld [vmem:[%s4368_s2 + $0x30] sm:$0xff]   ;;  %3084 = vmatprep.subr.bf16.mxu1 %v3162_v29  ;;  %v3166_v54 = vld [vmem:[%s4368_s2 + $0xe8] sm:$0xff]   ;;  %v3169_v47 = vld [vmem:[%s4368_s2 + $0x60] sm:$0xff]  }
0x1a6d   : > { %vm2402_vm5 = vcmp.eq.s32.totalorder %v3484_v50, %v2372_v24  ;;  %v2354_v39 = vpop.xlane.xlu0 %2353  ;;  %3063 = vmatpush3.bf16.msra.mxu0 %v3163_v43  ;;  %3085 = vmatpush3.bf16.msra.mxu1 %v3164_v25  ;;  %v3168_v24 = vld [vmem:[%s4368_s2 + $0xa8] sm:$0xff]  }
0x1a6e   : > { %v2355_v49 = vcvt.f32.s32 %v2354_v39  ;;  %v3017_v4 = vsel %vm2402_vm5, 1.0, %v3300_v0  ;;  %vm2404_vm6 = vcmp.eq.s32.totalorder %v3484_v50, %v2400_v48  ;;  %v2382_v22 = vpop.xlane.xlu1 %2381  ;;  %3064 = vmatprep.subr.bf16.mxu0 %v3165_v38  ;;  %3086 = vmatprep.subr.bf16.mxu1 %v3166_v54  ;;  %v3170_v48 = vld [vmem:[%s4368_s2 + $0xe0] sm:$0xff]  }
0x1a6f   : > { %vm2418_vm7 = vcmp.gt.f32.partialorder %v3017_v4, 0.0  ;;  %v4122_v31 = vadd.f32 %v3017_v4, %v4078_v44  ;;  %v2383_v18 = vcvt.f32.s32 %v2382_v22  ;;  %v3019_v59 = vsel %vm2404_vm6, 1.0, %v3300_v0  ;;  %v3171_v39 = vld [vmem:[%s4368_s2 + $0x20] sm:$0xff]  }
0x1a70   : > { %v2358_v16 = vadd.s32 %v2357_v2, %v2355_v49  ;;  %v2422_v3 = vsel %vm2418_vm7, -inf, %v4081_v61  ;;  %vm2420_vm8 = vcmp.gt.f32.partialorder %v3019_v59, 0.0  ;;  %v4127_v30 = vadd.f32 %v3019_v59, %v4086_v8  ;;  %v3172_v2 = vld [vmem:[%s4368_s2 + $0xa0] sm:$0xff]  }
0x1a71   : > { %2427 = vmax.xlane.f32.xlu0 %v2422_v3  ;;  %v2386_v51 = vadd.s32 %v2385_v40, %v2383_v18  ;;  %v2424_v5 = vsel %vm2420_vm8, -inf, %v4090_v34  ;;  %3065 = vmatpush3.bf16.msra.mxu0 %v3167_v6 }
0x1a72   : > { %vm2401_vm9 = vcmp.eq.s32.totalorder %v3484_v50, %v2358_v16  ;;  %2431 = vmax.xlane.f32.xlu1 %v2424_v5  ;;  %3087 = vmatpush3.bf16.msra.mxu1 %v3168_v24 }
0x1a73   : > { %v3016_v44 = vsel %vm2401_vm9, 1.0, %v3300_v0  ;;  %vm2403_vm10 = vcmp.eq.s32.totalorder %v3484_v50, %v2386_v51  ;;  %3066 = vmatprep.subr.bf16.mxu0 %v3169_v47  ;;  %3088 = vmatprep.subr.bf16.mxu1 %v3170_v48  ;;  %vm2857_vm9 = vcmask 261120  }
0x1a74   : > { %vm2417_vm11 = vcmp.gt.f32.partialorder %v3016_v44, 0.0  ;;  %v4134_v61 = vadd.f32 %v3016_v44, %v4096_v13  ;;  %v3018_v17 = vsel %vm2403_vm10, 1.0, %v3300_v0  ;;  %v1739_v13 = vmul.f32 1.442695, %v1734_v53 }
0x1a75   : > { %v2421_v52 = vsel %vm2417_vm11, -inf, %v4099_v57  ;;  %vm2419_vm12 = vcmp.gt.f32.partialorder %v3018_v17, 0.0  ;;  %v4139_v8 = vadd.f32 %v3018_v17, %v4104_v26  ;;  %v1733_v57 = vsub.f32 %v3826_v35, %v3840_v41  ;;  %3067 = vmatpush3.bf16.msra.mxu0 %v3171_v39 }
0x1a76   : > { %2425 = vmax.xlane.f32.xlu0 %v2421_v52  ;;  %v2423_v34 = vsel %vm2419_vm12, -inf, %v4107_v15  ;;  %3189 = vpow2.f32 %v1739_v13  ;;  %3089 = vmatpush3.bf16.msra.mxu1 %v3172_v2  ;;  %v3173_v13 = vld [vmem:[%s4368_s2 + $0x58] sm:$0xff]  }
0x1a77   : > { %2429 = vmax.xlane.f32.xlu1 %v2423_v34  ;;  %v1737_v26 = vmul.f32 1.442695, %v1733_v57  ;;  %3191 = vpow2.f32 %v1743_v11  ;;  %v3174_v57 = vld [vmem:[%s4368_s2 + $0xd8] sm:$0xff]   ;;  %3068 = vmatprep.subr.bf16.mxu0 %v3173_v13 }
0x1a78   : > { %v3175_v11 = vld [vmem:[%s4368_s2 + $0x18] sm:$0xff]   ;;  %3090 = vmatprep.subr.bf16.mxu1 %v3174_v57 }
0x1a79   : > { %3193 = vpow2.f32 %v1737_v26  ;;  %3069 = vmatpush3.bf16.msra.mxu0 %v3175_v11  ;;  %v3178_v26 = vld [vmem:[%s4368_s2 + $0xd0] sm:$0xff]  }
0x1a7a   : > { %3195 = vpow2.f32 %v1741_v55  ;;  %3091 = vmatpush3.bf16.msra.mxu1 %v3176_v7  ;;  %v3182_v55 = vld [vmem:[%s4368_s2 + $0xc8] sm:$0xff]  }
0x1a7b   : > { %3092 = vmatprep.subr.bf16.mxu1 %v3178_v26 }
0x1a83   : > { %v4178_v33 = vpop.eup %3189 }
0x1a84   : > { %v4181_v20 = vpop.eup %3191 }
0x1a86   : > { %v4184_v32 = vpop.eup %3193 }
0x1a87   : > { %v4187_v58 = vpop.eup %3195 }
0x1afa   : > { %v2428_v62 = vpop.xlane.xlu0 %2427 }
0x1afb   : > { %vm2434_vm13 = vcmp.eq.f32.partialorder %v2422_v3, %v2428_v62  ;;  %v2432_v19 = vpop.xlane.xlu1 %2431  ;;  %v3177_v62 = vld [vmem:[%s4368_s2 + $0x50] sm:$0xff]  }
0x1afc   : > { %v4151_v15 = vsel %vm2434_vm13, %v3484_v50, 128  ;;  %vm2436_vm14 = vcmp.eq.f32.partialorder %v2424_v5, %v2432_v19  ;;  %v3180_v19 = vld [vmem:[%s4368_s2 + $0x90] sm:$0xff]   ;;  %3070 = vmatprep.subr.bf16.mxu0 %v3177_v62 }
0x1afd   : > { %v2456_v60 = vshra.s32 %v4151_v15, 16  ;;  %v4155_v56 = vsel %vm2436_vm14, %v3484_v50, 128  ;;  %v2455_v49 = vand.u32 65535, %v4151_v15  ;;  %v3179_v15 = vld [vmem:[%s4368_s2 + $0x10] sm:$0xff]   ;;  %3093 = vmatpush3.bf16.msra.mxu1 %v3180_v19 }
0x1afe   : > { %v2484_v12 = vshra.s32 %v4155_v56, 16  ;;  %v2483_v4 = vand.u32 65535, %v4155_v56  ;;  %3071 = vmatpush3.bf16.msra.mxu0 %v3179_v15  ;;  %v3183_v56 = vld [vmem:[%s4368_s2 + $0x8] sm:$0xff]   ;;  %3094 = vmatprep.subr.bf16.mxu1 %v3182_v55 }
0x1aff   : > { %v4157_v35 = vcvt.s32.f32 %v2456_v60  ;;  %v2426_v9 = vpop.xlane.xlu0 %2425  ;;  %v2457_v40 = vcvt.s32.f32 %v2455_v49  ;;  %v3181_v60 = vld [vmem:[%s4368_s2 + $0x48] sm:$0xff]  }
0x1b00   : > { %vm2433_vm15 = vcmp.eq.f32.partialorder %v2421_v52, %v2426_v9  ;;  %v4160_v41 = vcvt.s32.f32 %v2484_v12  ;;  %v2430_v1 = vpop.xlane.xlu1 %2429  ;;  %v2485_v18 = vcvt.s32.f32 %v2483_v4  ;;  %3072 = vmatprep.subr.bf16.mxu0 %v3181_v60  ;;  %v3185_v12 = vld [vmem:[%s4368_s2 + $0x40] sm:$0xff]  }
0x1b01   : > { %v4163_v42 = vsel %vm2433_vm15, %v3484_v50, 128  ;;  %2459 = vmin.xlane.f32.xlu0 %v4157_v35  ;;  %vm2435_vm0 = vcmp.eq.f32.partialorder %v2423_v34, %v2430_v1  ;;  %v3186_v9 = vld [vmem:[%s4368_s2 + $0xc0] sm:$0xff]  }
0x1b02   : > { %v2442_v28 = vshra.s32 %v4163_v42, 16  ;;  %v4168_v27 = vsel %vm2435_vm0, %v3484_v50, 128  ;;  %2487 = vmin.xlane.f32.xlu1 %v4160_v41  ;;  %v2441_v16 = vand.u32 65535, %v4163_v42  ;;  %3073 = vmatpush3.bf16.msra.mxu0 %v3183_v56  ;;  %v3188_v42 = vld [vmem:[%s4368_s2 + $0x80] sm:$0xff]  }
0x1b03   : > { %v2470_v21 = vshra.s32 %v4168_v27, 16  ;;  %v2469_v51 = vand.u32 65535, %v4168_v27  ;;  %3074 = vmatprep.subr.bf16.mxu0 %v3185_v12 }
0x1b04   : > { %v4171_v37 = vcvt.s32.f32 %v2442_v28  ;;  %v2443_v44 = vcvt.s32.f32 %v2441_v16 }
0x1b05   : > { %v4174_v10 = vcvt.s32.f32 %v2470_v21  ;;  %v2471_v17 = vcvt.s32.f32 %v2469_v51 }
0x1b06   : > { %2445 = vmin.xlane.f32.xlu0 %v4171_v37 }
0x1b07   : > { %2473 = vmin.xlane.f32.xlu1 %v4174_v10 }
0x1b0a   : > { %1747 = vadd.xlane.f32.xlu0 %v4178_v33 }
0x1b0b   : > { %1751 = vadd.xlane.f32.xlu1 %v4181_v20 }
0x1b0e   : > { %1745 = vadd.xlane.f32.xlu0 %v4184_v32 }
0x1b0f   : > { %1749 = vadd.xlane.f32.xlu1 %v4187_v58 }
0x1b8a   : > { %v4240_v22 = vpop.xlane.xlu0 %2459 }
0x1b8b   : > { %vm2461_vm1 = vcmp.eq.f32.partialorder %v4157_v35, %v4240_v22  ;;  %v4245_v3 = vpop.xlane.xlu1 %2487  ;;  %v3184_v35 = vld [vmem:[%s4368_s2 + $0x88] sm:$0xff]   ;;  %v2466_v21 = vcvt.f32.s32 %v4240_v22 }
0x1b8c   : > { %v2462_v59 = vsel %vm2461_vm1, %v2457_v40, inf  ;;  %vm2489_vm2 = vcmp.eq.f32.partialorder %v4160_v41, %v4245_v3  ;;  %3095 = vmatpush3.bf16.msra.mxu1 %v3184_v35  ;;  %v3187_v41 = vld [vmem:[%s4368_s2] sm:$0xff]  }
0x1b8d   : > { %2463 = vmin.xlane.f32.xlu0 %v2462_v59  ;;  %v2490_v5 = vsel %vm2489_vm2, %v2485_v18, inf  ;;  %3096 = vmatprep.subr.bf16.mxu1 %v3186_v9  ;;  %v2467_v45 = vshll.u32 %v2466_v21, 16 }
0x1b8e   : > { %2491 = vmin.xlane.f32.xlu1 %v2490_v5  ;;  %3075 = vmatpush3.bf16.msra.mxu0 %v3187_v41 }
0x1b8f   : > { %v4250_v52 = vpop.xlane.xlu0 %2445 }
0x1b90   : > { %vm2447_vm3 = vcmp.eq.f32.partialorder %v4171_v37, %v4250_v52  ;;  %v4254_v34 = vpop.xlane.xlu1 %2473  ;;  %3097 = vmatpush3.bf16.msra.mxu1 %v3188_v42  ;;  %v2452_v36 = vcvt.f32.s32 %v4250_v52 }
0x1b91   : > { %v2448_v53 = vsel %vm2447_vm3, %v2443_v44, inf  ;;  %vm2475_vm4 = vcmp.eq.f32.partialorder %v4174_v10, %v4254_v34  ;;  %v2494_v10 = vcvt.f32.s32 %v4245_v3  ;;  %v2480_v54 = vcvt.f32.s32 %v4254_v34 }
0x1b92   : > { %2449 = vmin.xlane.f32.xlu0 %v2448_v53  ;;  %v2476_v46 = vsel %vm2475_vm4, %v2471_v17, inf  ;;  %v2453_v48 = vshll.u32 %v2452_v36, 16 }
0x1b93   : > { %2477 = vmin.xlane.f32.xlu1 %v2476_v46  ;;  %v1748_v1 = vpop.xlane.xlu0 %1747  ;;  %v2495_v29 = vshll.u32 %v2494_v10, 16  ;;  %v2481_v22 = vshll.u32 %v2480_v54, 16 }
0x1b94   : > { %v1752_v28 = vpop.xlane.xlu1 %1751  ;;  %3197 = vrcp.f32 %v1748_v1 }
0x1b95   : > { %3199 = vrcp.f32 %v1752_v28 }
0x1b97   : > { %v1746_v27 = vpop.xlane.xlu0 %1745 }
0x1b98   : > { %v1750_v37 = vpop.xlane.xlu1 %1749  ;;  %3201 = vrcp.f32 %v1746_v27 }
0x1b99   : > { %3203 = vrcp.f32 %v1750_v37 }
0x1ba1   : > { %v3198_v38 = vpop.eup %3197 }
0x1ba2   : > { %v3200_v47 = vpop.eup %3199  ;;  %v1758_v4 = vmul.f32 %v3198_v38, %v4178_v33 }
0x1ba3   : > { %v1760_v5 = vmul.f32 %v3200_v47, %v4181_v20 }
0x1ba5   : > { %v3202_v59 = vpop.eup %3201 }
0x1ba6   : > { %v3204_v17 = vpop.eup %3203 }
0x1ba7   : > { %v1759_v57 = vmul.f32 %v3204_v17, %v4187_v58 }
0x1c16   : > { %v2464_v63 = vpop.xlane.xlu0 %2463 }
0x1c17   : > { %v2465_v14 = vcvt.f32.s32 %v2464_v63  ;;  %v2492_v23 = vpop.xlane.xlu1 %2491 }
0x1c18   : > { %v2493_v25 = vcvt.f32.s32 %v2492_v23 }
0x1c19   : > { %v2468_v43 = vadd.s32 %v2467_v45, %v2465_v14 }
0x1c1a   : > { %v2496_v6 = vadd.s32 %v2495_v29, %v2493_v25 }
0x1c1b   : > { %vm2498_vm5 = vcmp.eq.s32.totalorder %v3484_v50, %v2468_v43  ;;  %v2450_v24 = vpop.xlane.xlu0 %2449 }
0x1c1c   : > { %v3021_v39 = vsel %vm2498_vm5, 1.0, %v3300_v0  ;;  %v2451_v2 = vcvt.f32.s32 %v2450_v24  ;;  %vm2500_vm6 = vcmp.eq.s32.totalorder %v3484_v50, %v2496_v6  ;;  %v2478_v49 = vpop.xlane.xlu1 %2477 }
0x1c1d   : > { %v2510_v40 = vadd.f32 %v3021_v39, %v4122_v31  ;;  %v3023_v16 = vsel %vm2500_vm6, 1.0, %v3300_v0  ;;  %v2479_v3 = vcvt.f32.s32 %v2478_v49  ;;  %v1757_v31 = vmul.f32 %v3202_v59, %v4184_v32 }
0x1c1e   : > { %v2454_v18 = vadd.s32 %v2453_v48, %v2451_v2  ;;  %v2512_v44 = vadd.f32 %v3023_v16, %v4127_v30 }
0x1c1f   : > { %v2514_v51 = vmul.f32 %v2510_v40, %v1758_v4  ;;  %v2482_v52 = vadd.s32 %v2481_v22, %v2479_v3 }
0x1c20   : > { %vm2497_vm7 = vcmp.eq.s32.totalorder %v3484_v50, %v2454_v18  ;;  %v2516_v53 = vmul.f32 %v2512_v44, %v1760_v5 }
0x1c21   : > { %v3020_v34 = vsel %vm2497_vm7, 1.0, %v3300_v0  ;;  %v2518_v33 = vpack.c.bf16 %v2514_v51, %v2514_v51  ;;  %vm2499_vm8 = vcmp.eq.s32.totalorder %v3484_v50, %v2482_v52 }
0x1c22   : > { %v2509_v46 = vadd.f32 %v3020_v34, %v4134_v61  ;;  %v3022_v13 = vsel %vm2499_vm8, 1.0, %v3300_v0  ;;  %v2520_v20 = vpack.c.bf16 %v2516_v53, %v2516_v53 }
0x1c23   : > { %2809 = vmatprep.mubr.bf16.mxu0 %v2518_v33  ;;  %v2511_v11 = vadd.f32 %v3022_v13, %v4139_v8 }
0x1c24   : > { %v2513_v30 = vmul.f32 %v2509_v46, %v1757_v31  ;;  %2849 = vmatprep.mubr.bf16.mxu1 %v2520_v20 }
0x1c25   : > { %v2515_v7 = vmul.f32 %v2511_v11, %v1759_v57 }
0x1c26   : > { %v2517_v62 = vpack.c.bf16 %v2513_v30, %v2513_v30 }
0x1c27   : > { %v2519_v26 = vpack.c.bf16 %v2515_v7, %v2515_v7 }
0x1c28   : > { %2810 = vmatmul.mubr.bf16.vlgmr.msra.gmra.mxu0 %v2517_v62 }
0x1c29   : > { %2850 = vmatmul.mubr.bf16.vlgmr.msra.gmra.mxu1 %v2519_v26 }
0x1ce8   : > { %v3076_v61 = vpop.f32.mrf.mxu0 }
0x1ce9   : > { %v3098_v50 = vpop.f32.mrf.mxu1 }
0x1cea   : > { %v3077_v32 = vpop.f32.mrf.mxu0 }
0x1ceb   : > { %v3078_v0 = vadd.f32 %v3077_v32, %v3076_v61  ;;  %v3099_v15 = vpop.f32.mrf.mxu1 }
0x1cec   : > { %v3079_v19 = vpop.f32.mrf.mxu0  ;;  %v3100_v58 = vadd.f32 %v3099_v15, %v3098_v50 }
0x1ced   : > { %v3101_v8 = vpop.f32.mrf.mxu1 }
0x1cee   : > { %v3080_v60 = vpop.f32.mrf.mxu0  ;;  %v2852_v55 = vadd.f32 %v3100_v58, %v3078_v0 }
0x1cef   : > { %v3102_v56 = vpop.f32.mrf.mxu1 }
0x1cf0   : > { %2858 = vst.msk [vmem:[%s176_s5] sm:$0xff] %vm2857_vm9, %v2852_v55 }
0x1cf1   : > { %3244 = shalt.err (!%p3241_p0)
}
0x1cf2   : > { %s3245_s20 = scalar_lea.hbm %s4331_s9, 128  ;;  %s3249_s26 = scalar_lea.hbm %s4369_s3, 256 }
0x1cf3   : > { %p3246_p1 = scmp.ne.s32.totalorder %s4331_s9, %s3245_s20  ;;  %p3250_p4 = scmp.lt.s32.totalorder %s4331_s9, %s4369_s3 }
0x1cf4   : > { %p3251_p7 = scmp.lt.s32.totalorder %s3249_s26, %s3245_s20 }
0x1cf5   : > { %p3247_p2 = pnand %p3246_p1, %p3360_p5 }
0x1cf6   : > { %p3252_p6 = por %p3251_p7, %p3250_p4 }
0x1cf7   : > { %p3248_p3 = pneg %p3247_p2 }
0x1cf9   : > { %p3253_p8 = pnand %p3252_p6, %p3248_p3 }
0x1cfb   : > { %3256 = shalt.err (!%p3253_p8)
}
0x1cfc   : > { %3108 = dma.vmem_to_hbm [thread:$0]  (%p3360_p5), %s2874_s6, 128, %s4331_s9, %s2860_s10  }
0x1cfd PF: > { %p3120_p9 = scmp.ge.s32.totalorder %s3295_s15, 2  ;;  %s2885_s29 = sand.u32 1, %s3283_s12  }
0x1cfe   : > { %p4373_p10 = scmp.ne.s32.totalorder %s4371_s23, 0  ;;  %s2886_s30 = scalar_lea.sflag [#allocation4], %s2885_s29 }
0x1d00   : > { %p3115_p11 = pnand %p3120_p9, %p4373_p10 }
0x1d02   : > { %p3116_p12 = pneg %p3115_p11 }
0x1d04   : > { %3278 = dma.done.wait (%p3116_p12), %s2886_s30, 128  }
0x1d05   : > { %3280 = vsyncadd (%p3116_p12), %s2886_s30, 4294967168  ;;  %p14_p13 = scmp.ge.s32.totalorder %s3347_s18, 4   ;;  %s4374_s12 = smov %s3287_s13 }
0x1d06   : > { %s4375_s13 = smov %s3291_s14  ;;  %s4376_s14 = smov %s3358_s21 }
0x1d07   : > { %s4377_s15 = smov %s3347_s18  ;;  %16 = sbr.rel (!%p14_p13) target bundleno = 4 (0x4), region = 72 }
0x1d0c   :  { %2891 = vsyncpa [#allocation3], 1 }
0x1d0d   :  { %2893 = vsyncpa [#allocation3 + $0x1], 1 }
0x1d0e   :  { %2894 = vsyncpa [#allocation4], 1 }
0x1d0f   :  { %2896 = vsyncpa [#allocation4 + $0x1], 1 }

</bundles_post_ra>
